<compile_context>
chip_gen: v7x
topology: tpu7x:2x2x1
jax: 0.10.0
libtpu: 0.0.40
codegen_flags: <defaults>
</compile_context>

<pallas_src>
import functools

import jax
import jax.numpy as jnp
from jax.experimental import pallas as pl
from jax.experimental.pallas import tpu as pltpu

EMB_DIM = 300           # embedding dim in the PyTorch model
N_FILTERS = 100         # ConvolutionLayer(300, 300) -> 300 // 3 filters per n-gram
KSIZES = (3, 4, 5)
KMAX = max(KSIZES)
N_BRANCH = len(KSIZES)
N_TAPS = sum(KSIZES)    # 12 conv taps in total

CP = 128                # padded filter count per n-gram branch (100 -> 128)
DP = 384                # padded embedding dim (300 -> 384, multiple of 128)
NCP = 128               # padded class dim
TOT_COLS = N_TAPS * CP  # 1536 columns in the fused conv-weight slab


def _round_up(x, m):
    return (x + m - 1) // m * m


def _pad2(a, rows, cols):
    """Zero-pad a 2-D array up to (rows, cols)."""
    return jnp.zeros((rows, cols), a.dtype).at[: a.shape[0], : a.shape[1]].set(a)


def sencnn_kernel(x_ref, w_ref, b_ref, fcw_ref, fcb_ref, out_ref, *, seq_len):
    """One batch block of the SenCNN forward pass.

    x_ref   : (Bblk, LP, DP)      bf16  summed static+non-static embeddings (padded)
    w_ref   : (DP, N_TAPS*CP)     bf16  all conv taps, lane-concatenated
    b_ref   : (1, N_BRANCH*CP)    f32   2 * conv bias per branch (padded)
    fcw_ref : (N_BRANCH*CP, NCP)  bf16  fc weight blocks per branch (padded)
    fcb_ref : (1, NCP)            f32   fc bias (padded)
    out_ref : (Bblk, NCP)         f32   logits (padded classes)
    """
    bblk, lp, dp = x_ref.shape
    n_rows = bblk * lp
    lp_out = lp - (KMAX - 1)          # room for every shifted tap (LP has slack)

    # --- one big MXU matmul: every tap of every n-gram size at once --------
    x2 = x_ref[...].reshape(n_rows, dp)                       # (Bblk*LP, DP) bf16
    y = jnp.dot(x2, w_ref[...], preferred_element_type=jnp.float32)
    y3 = y.reshape(bblk, lp, TOT_COLS)                        # (Bblk, LP, TOT) f32

    bias = b_ref[...]                                         # (1, N_BRANCH*CP)
    # position index along the (padded) time axis, hoisted out of the loops
    pos = jax.lax.broadcasted_iota(jnp.int32, (bblk, lp_out, CP), 1)

    out = jnp.zeros((bblk, out_ref.shape[1]), jnp.float32)
    col = 0
    for bi, k in enumerate(KSIZES):
        # Rebuild conv output positions by shifting the matmul *result* along
        # the time (sublane) axis — never by re-slicing the activations.
        # TODO(synk): pltpu.roll on the flattened rows would avoid the small
        # relayout copies of these unaligned result slices entirely.
        c0 = col * CP
        acc = y3[:, 0:lp_out, c0:c0 + CP]
        for j in range(1, k):
            cj = (col + j) * CP
            acc = acc + y3[:, j:j + lp_out, cj:cj + CP]
        col += k

        # conv(static)+conv(non_static) == conv(static+non_static) + 2*bias;
        # the factor 2 is folded into b_ref in the wrapper.
        acc = acc + bias[:, bi * CP:(bi + 1) * CP][:, None, :]
        acc = jnp.maximum(acc, 0.0)                           # ReLU (f32, VPU)
        # Mask positions past the valid conv length (padding / slack rows);
        # ReLU output is >= 0, so zeroing them leaves the max unchanged.
        acc = jnp.where(pos < (seq_len - k + 1), acc, 0.0)
        feat = jnp.max(acc, axis=1)                           # (Bblk, CP)

        # FC contribution of this branch (replaces the 100|100|100 concat).
        out = out + jnp.dot(feat.astype(fcw_ref.dtype),
                            fcw_ref[bi * CP:(bi + 1) * CP, :],
                            preferred_element_type=jnp.float32)

    # TODO(synk): training-mode nn.Dropout() not implemented; identity (eval mode).
    out_ref[...] = out + fcb_ref[...]


def init_params(key, vocab_size, num_classes):
    keys = jax.random.split(key, 10)

    def nrm(k, shape, scale=0.1):
        return (scale * jax.random.normal(k, shape)).astype(jnp.float32)

    return {
        'emb_static':     nrm(keys[0], (vocab_size, EMB_DIM)),
        'emb_non_static': nrm(keys[1], (vocab_size, EMB_DIM)),
        'w3': nrm(keys[2], (N_FILTERS, EMB_DIM, 3)), 'b3': nrm(keys[3], (N_FILTERS,)),
        'w4': nrm(keys[4], (N_FILTERS, EMB_DIM, 4)), 'b4': nrm(keys[5], (N_FILTERS,)),
        'w5': nrm(keys[6], (N_FILTERS, EMB_DIM, 5)), 'b5': nrm(keys[7], (N_FILTERS,)),
        'fc_w': nrm(keys[8], (num_classes, EMB_DIM)),
        'fc_b': nrm(keys[9], (num_classes,)),
    }


def _pack_params(params):
    """Re-lay out PyTorch-style parameters into lane-aligned kernel slabs."""
    # Conv weight slab: columns [tap*128 : tap*128+100] hold w_k[:, :, j].T .
    tap_blocks = []
    for name in ('w3', 'w4', 'w5'):
        w = params[name]                                  # (C, D, k)
        for j in range(w.shape[-1]):
            tap_blocks.append(_pad2(w[:, :, j].T, DP, CP))
    w_all = jnp.concatenate(tap_blocks, axis=1).astype(jnp.bfloat16)   # (DP, 1536)

    # Fold the factor 2 into the conv bias here (wrapper, not hot path).
    b_blocks = [_pad2((2.0 * params[bn]).reshape(1, -1), 1, CP)
                for bn in ('b3', 'b4', 'b5')]
    b_all = jnp.concatenate(b_blocks, axis=1).astype(jnp.float32)      # (1, 384)

    fcw_t = params['fc_w'].T                              # (300, num_classes)
    fc_blocks = [_pad2(fcw_t[bi * N_FILTERS:(bi + 1) * N_FILTERS, :], CP, NCP)
                 for bi in range(N_BRANCH)]
    fcw_p = jnp.concatenate(fc_blocks, axis=0).astype(jnp.bfloat16)    # (384, 128)
    fcb_p = _pad2(params['fc_b'].reshape(1, -1), 1, NCP).astype(jnp.float32)
    return w_all, b_all, fcw_p, fcb_p


def sencnn_forward(token_ids, params, num_classes):
    B, L = token_ids.shape

    # Embedding gather + channel sum stay in plain JAX; activations ship to the
    # kernel in bf16 to halve HBM traffic.
    # TODO(synk): fuse the gather into the kernel via scalar-prefetched token
    # ids + per-block DMA of embedding rows for very large vocab/batch.
    emb = (params['emb_static'][token_ids]
           + params['emb_non_static'][token_ids]).astype(jnp.bfloat16)

    # Padded geometry: lane-aligned D, sublane-aligned (plus shift-slack) L,
    # batch padded to the block size.
    LP = _round_up(L + KMAX - 1, 16)
    bblk = max(8, min(128, _round_up(B, 8), max(8, (1024 // LP) // 8 * 8)))
    BP = _round_up(B, bblk)

    xp = jnp.zeros((BP, LP, DP), jnp.bfloat16).at[:B, :L, :EMB_DIM].set(emb)
    w_all, b_all, fcw_p, fcb_p = _pack_params(params)

    flops = 2 * BP * LP * DP * TOT_COLS + 2 * BP * N_BRANCH * CP * NCP
    bytes_accessed = (xp.size * 2 + w_all.size * 2 + fcw_p.size * 2
                      + b_all.size * 4 + fcb_p.size * 4 + BP * NCP * 4)

    grid_spec = pltpu.PrefetchScalarGridSpec(
        num_scalar_prefetch=0,
        grid=(BP // bblk,),
        in_specs=[
            pl.BlockSpec((bblk, LP, DP), lambda i: (i, 0, 0)),      # activations
            pl.BlockSpec((DP, TOT_COLS), lambda i: (0, 0)),         # conv weight slab
            pl.BlockSpec((1, N_BRANCH * CP), lambda i: (0, 0)),     # 2*conv bias
            pl.BlockSpec((N_BRANCH * CP, NCP), lambda i: (0, 0)),   # fc weight
            pl.BlockSpec((1, NCP), lambda i: (0, 0)),               # fc bias
        ],
        out_specs=pl.BlockSpec((bblk, NCP), lambda i: (i, 0)),
    )

    out_padded = pl.pallas_call(
        functools.partial(sencnn_kernel, seq_len=L),
        out_shape=jax.ShapeDtypeStruct((BP, NCP), jnp.float32),
        grid_spec=grid_spec,
        compiler_params=pltpu.CompilerParams(
            dimension_semantics=("parallel",),
            vmem_limit_bytes=64 * 1024 * 1024),
        cost_estimate=pl.CostEstimate(
            flops=flops, transcendentals=0, bytes_accessed=bytes_accessed),
    )(xp, w_all, b_all, fcw_p, fcb_p)

    return out_padded[:B, :num_classes]


def sencnn_reference(token_ids, params):
    """Pure-JAX f32 replica of the PyTorch forward (eval mode) for verification."""
    emb_s = params['emb_static'][token_ids]
    emb_n = params['emb_non_static'][token_ids]

    def conv1d(x_bld, w_cdk, b_c):
        B, L, D = x_bld.shape
        C, _, k = w_cdk.shape
        Lout = L - k + 1
        out = jnp.zeros((B, Lout, C), jnp.float32)
        for j in range(k):
            out = out + jnp.einsum('bld,cd->blc', x_bld[:, j:j + Lout, :], w_cdk[:, :, j])
        return out + b_c[None, None, :]

    feats = []
    for wn, bn in (('w3', 'b3'), ('w4', 'b4'), ('w5', 'b5')):
        w, b = params[wn], params[bn]
        fmap = jax.nn.relu(conv1d(emb_s, w, b) + conv1d(emb_n, w, b))
        feats.append(jnp.max(fmap, axis=1))
    feature = jnp.concatenate(feats, axis=-1)
    return feature @ params['fc_w'].T + params['fc_b'][None, :]


if __name__ == "__main__":
    key = jax.random.PRNGKey(0)
    pkey, xkey = jax.random.split(key)

    vocab_size, num_classes = 50, 4
    B, L = 2, 8                     # small seq (>= largest kernel size 5)

    params = init_params(pkey, vocab_size, num_classes)
    token_ids = jax.random.randint(xkey, (B, L), 0, vocab_size, dtype=jnp.int32)

    out = jax.block_until_ready(sencnn_forward(token_ids, params, num_classes))
    ref = sencnn_reference(token_ids, params)

    assert out.shape == (B, num_classes), out.shape
    err = float(jnp.max(jnp.abs(out - ref)))
    # bf16 MXU inputs (f32 accumulation) -> loosened tolerance vs the f32 reference.
    assert jnp.allclose(out, ref, atol=5e-2, rtol=5e-2), f"mismatch vs reference, max|err|={err}"
    print("KERNEL_OK")
</pallas_src>

<mosaic_0001>
module attributes {stable_mosaic.version = 11 : i64} {
  func.func @sencnn_kernel(%arg0: i32, %arg1: memref<8x16x384xbf16, #tpu.memory_space<vmem>>, %arg2: memref<384x1536xbf16, #tpu.memory_space<vmem>>, %arg3: memref<1x384xf32, #tpu.memory_space<vmem>>, %arg4: memref<384x128xbf16, #tpu.memory_space<vmem>>, %arg5: memref<1x128xf32, #tpu.memory_space<vmem>>, %arg6: memref<8x128xf32, #tpu.memory_space<vmem>>) attributes {dimension_semantics = [#tpu.dimension_semantics<parallel>], iteration_bounds = array<i64: 1>, scalar_prefetch = 0 : i64, scratch_operands = 0 : i64, tpu.core_type = #tpu.core_type<tc>, window_params = [{transform_indices = @transform_0, window_bounds = array<i64: 8, 16, 384>}, {pipeline_mode = #tpu.pipeline_mode<synchronous>, transform_indices = @transform_1, window_bounds = array<i64: 384, 1536>}, {pipeline_mode = #tpu.pipeline_mode<synchronous>, transform_indices = @transform_2, window_bounds = array<i64: 1, 384>}, {pipeline_mode = #tpu.pipeline_mode<synchronous>, transform_indices = @transform_3, window_bounds = array<i64: 384, 128>}, {pipeline_mode = #tpu.pipeline_mode<synchronous>, transform_indices = @transform_4, window_bounds = array<i64: 1, 128>}, {transform_indices = @transform_5, window_bounds = array<i64: 8, 128>}]} {
    %c0 = arith.constant 0 : index
    %c0_0 = arith.constant 0 : index
    %c0_1 = arith.constant 0 : index
    %0 = vector.load %arg1[%c0, %c0_0, %c0_1] : memref<8x16x384xbf16, #tpu.memory_space<vmem>>, vector<8x16x384xbf16>
    %1 = vector.shape_cast %0 : vector<8x16x384xbf16> to vector<128x384xbf16>
    %c0_2 = arith.constant 0 : index
    %c0_3 = arith.constant 0 : index
    %2 = vector.load %arg2[%c0_2, %c0_3] : memref<384x1536xbf16, #tpu.memory_space<vmem>>, vector<384x1536xbf16>
    %cst = arith.constant dense<0.000000e+00> : vector<128x1536xf32>
    %3 = tpu.matmul %1, %2, %cst {dimension_numbers = #tpu.dot_dimension_numbers<[1], [0], [0], [1], [0, 0, 1, 1], [], []>} : vector<128x384xbf16>, vector<384x1536xbf16>, vector<128x1536xf32> -> vector<128x1536xf32>
    %4 = vector.shape_cast %3 : vector<128x1536xf32> to vector<8x16x1536xf32>
    %c0_4 = arith.constant 0 : index
    %c0_5 = arith.constant 0 : index
    %5 = vector.load %arg3[%c0_4, %c0_5] : memref<1x384xf32, #tpu.memory_space<vmem>>, vector<1x384xf32>
    %6 = tpu.iota {dimensions = array<i32: 1>} : vector<8x12x128xi32>
    %cst_6 = arith.constant 0.000000e+00 : f32
    %7 = vector.broadcast %cst_6 : f32 to vector<8x128xf32>
    %8 = vector.extract_strided_slice %4 {offsets = [0, 0, 0], sizes = [8, 12, 128], strides = [1, 1, 1]} : vector<8x16x1536xf32> to vector<8x12x128xf32>
    %9 = vector.extract_strided_slice %4 {offsets = [0, 1, 128], sizes = [8, 12, 128], strides = [1, 1, 1]} : vector<8x16x1536xf32> to vector<8x12x128xf32>
    %10 = arith.addf %8, %9 : vector<8x12x128xf32>
    %11 = vector.extract_strided_slice %4 {offsets = [0, 2, 256], sizes = [8, 12, 128], strides = [1, 1, 1]} : vector<8x16x1536xf32> to vector<8x12x128xf32>
    %12 = arith.addf %10, %11 : vector<8x12x128xf32>
    %13 = vector.extract_strided_slice %5 {offsets = [0, 0], sizes = [1, 128], strides = [1, 1]} : vector<1x384xf32> to vector<1x128xf32>
    %14 = vector.shape_cast %13 : vector<1x128xf32> to vector<1x1x128xf32>
    %15 = vector.broadcast %14 : vector<1x1x128xf32> to vector<8x12x128xf32>
    %16 = arith.addf %12, %15 : vector<8x12x128xf32>
    %cst_7 = arith.constant 0.000000e+00 : f32
    %17 = vector.broadcast %cst_7 : f32 to vector<8x12x128xf32>
    %18 = arith.maximumf %16, %17 : vector<8x12x128xf32>
    %c6_i32 = arith.constant 6 : i32
    %19 = vector.broadcast %c6_i32 : i32 to vector<8x12x128xi32>
    %20 = arith.cmpi slt, %6, %19 : vector<8x12x128xi32>
    %cst_8 = arith.constant 0.000000e+00 : f32
    %21 = vector.broadcast %cst_8 : f32 to vector<8x12x128xf32>
    %22 = arith.select %20, %18, %21 : vector<8x12x128xi1>, vector<8x12x128xf32>
    %cst_9 = arith.constant dense<0xFF800000> : vector<8x128xf32>
    %23 = vector.multi_reduction <maximumf>, %22, %cst_9 [1] : vector<8x12x128xf32> to vector<8x128xf32>
    %24 = arith.truncf %23 : vector<8x128xf32> to vector<8x128xbf16>
    %c0_10 = arith.constant 0 : index
    %c0_11 = arith.constant 0 : index
    %25 = vector.load %arg4[%c0_10, %c0_11] : memref<384x128xbf16, #tpu.memory_space<vmem>>, vector<128x128xbf16>
    %cst_12 = arith.constant dense<0.000000e+00> : vector<8x128xf32>
    %26 = tpu.matmul %24, %25, %cst_12 {dimension_numbers = #tpu.dot_dimension_numbers<[1], [0], [0], [1], [0, 0, 1, 1], [], []>} : vector<8x128xbf16>, vector<128x128xbf16>, vector<8x128xf32> -> vector<8x128xf32>
    %27 = arith.addf %7, %26 : vector<8x128xf32>
    %28 = vector.extract_strided_slice %4 {offsets = [0, 0, 384], sizes = [8, 12, 128], strides = [1, 1, 1]} : vector<8x16x1536xf32> to vector<8x12x128xf32>
    %29 = vector.extract_strided_slice %4 {offsets = [0, 1, 512], sizes = [8, 12, 128], strides = [1, 1, 1]} : vector<8x16x1536xf32> to vector<8x12x128xf32>
    %30 = arith.addf %28, %29 : vector<8x12x128xf32>
    %31 = vector.extract_strided_slice %4 {offsets = [0, 2, 640], sizes = [8, 12, 128], strides = [1, 1, 1]} : vector<8x16x1536xf32> to vector<8x12x128xf32>
    %32 = arith.addf %30, %31 : vector<8x12x128xf32>
    %33 = vector.extract_strided_slice %4 {offsets = [0, 3, 768], sizes = [8, 12, 128], strides = [1, 1, 1]} : vector<8x16x1536xf32> to vector<8x12x128xf32>
    %34 = arith.addf %32, %33 : vector<8x12x128xf32>
    %35 = vector.extract_strided_slice %5 {offsets = [0, 128], sizes = [1, 128], strides = [1, 1]} : vector<1x384xf32> to vector<1x128xf32>
    %36 = vector.shape_cast %35 : vector<1x128xf32> to vector<1x1x128xf32>
    %37 = vector.broadcast %36 : vector<1x1x128xf32> to vector<8x12x128xf32>
    %38 = arith.addf %34, %37 : vector<8x12x128xf32>
    %cst_13 = arith.constant 0.000000e+00 : f32
    %39 = vector.broadcast %cst_13 : f32 to vector<8x12x128xf32>
    %40 = arith.maximumf %38, %39 : vector<8x12x128xf32>
    %c5_i32 = arith.constant 5 : i32
    %41 = vector.broadcast %c5_i32 : i32 to vector<8x12x128xi32>
    %42 = arith.cmpi slt, %6, %41 : vector<8x12x128xi32>
    %cst_14 = arith.constant 0.000000e+00 : f32
    %43 = vector.broadcast %cst_14 : f32 to vector<8x12x128xf32>
    %44 = arith.select %42, %40, %43 : vector<8x12x128xi1>, vector<8x12x128xf32>
    %cst_15 = arith.constant dense<0xFF800000> : vector<8x128xf32>
    %45 = vector.multi_reduction <maximumf>, %44, %cst_15 [1] : vector<8x12x128xf32> to vector<8x128xf32>
    %46 = arith.truncf %45 : vector<8x128xf32> to vector<8x128xbf16>
    %c128 = arith.constant 128 : index
    %c0_16 = arith.constant 0 : index
    %47 = vector.load %arg4[%c128, %c0_16] : memref<384x128xbf16, #tpu.memory_space<vmem>>, vector<128x128xbf16>
    %cst_17 = arith.constant dense<0.000000e+00> : vector<8x128xf32>
    %48 = tpu.matmul %46, %47, %cst_17 {dimension_numbers = #tpu.dot_dimension_numbers<[1], [0], [0], [1], [0, 0, 1, 1], [], []>} : vector<8x128xbf16>, vector<128x128xbf16>, vector<8x128xf32> -> vector<8x128xf32>
    %49 = arith.addf %27, %48 : vector<8x128xf32>
    %50 = vector.extract_strided_slice %4 {offsets = [0, 0, 896], sizes = [8, 12, 128], strides = [1, 1, 1]} : vector<8x16x1536xf32> to vector<8x12x128xf32>
    %51 = vector.extract_strided_slice %4 {offsets = [0, 1, 1024], sizes = [8, 12, 128], strides = [1, 1, 1]} : vector<8x16x1536xf32> to vector<8x12x128xf32>
    %52 = arith.addf %50, %51 : vector<8x12x128xf32>
    %53 = vector.extract_strided_slice %4 {offsets = [0, 2, 1152], sizes = [8, 12, 128], strides = [1, 1, 1]} : vector<8x16x1536xf32> to vector<8x12x128xf32>
    %54 = arith.addf %52, %53 : vector<8x12x128xf32>
    %55 = vector.extract_strided_slice %4 {offsets = [0, 3, 1280], sizes = [8, 12, 128], strides = [1, 1, 1]} : vector<8x16x1536xf32> to vector<8x12x128xf32>
    %56 = arith.addf %54, %55 : vector<8x12x128xf32>
    %57 = vector.extract_strided_slice %4 {offsets = [0, 4, 1408], sizes = [8, 12, 128], strides = [1, 1, 1]} : vector<8x16x1536xf32> to vector<8x12x128xf32>
    %58 = arith.addf %56, %57 : vector<8x12x128xf32>
    %59 = vector.extract_strided_slice %5 {offsets = [0, 256], sizes = [1, 128], strides = [1, 1]} : vector<1x384xf32> to vector<1x128xf32>
    %60 = vector.shape_cast %59 : vector<1x128xf32> to vector<1x1x128xf32>
    %61 = vector.broadcast %60 : vector<1x1x128xf32> to vector<8x12x128xf32>
    %62 = arith.addf %58, %61 : vector<8x12x128xf32>
    %cst_18 = arith.constant 0.000000e+00 : f32
    %63 = vector.broadcast %cst_18 : f32 to vector<8x12x128xf32>
    %64 = arith.maximumf %62, %63 : vector<8x12x128xf32>
    %c4_i32 = arith.constant 4 : i32
    %65 = vector.broadcast %c4_i32 : i32 to vector<8x12x128xi32>
    %66 = arith.cmpi slt, %6, %65 : vector<8x12x128xi32>
    %cst_19 = arith.constant 0.000000e+00 : f32
    %67 = vector.broadcast %cst_19 : f32 to vector<8x12x128xf32>
    %68 = arith.select %66, %64, %67 : vector<8x12x128xi1>, vector<8x12x128xf32>
    %cst_20 = arith.constant dense<0xFF800000> : vector<8x128xf32>
    %69 = vector.multi_reduction <maximumf>, %68, %cst_20 [1] : vector<8x12x128xf32> to vector<8x128xf32>
    %70 = arith.truncf %69 : vector<8x128xf32> to vector<8x128xbf16>
    %c256 = arith.constant 256 : index
    %c0_21 = arith.constant 0 : index
    %71 = vector.load %arg4[%c256, %c0_21] : memref<384x128xbf16, #tpu.memory_space<vmem>>, vector<128x128xbf16>
    %cst_22 = arith.constant dense<0.000000e+00> : vector<8x128xf32>
    %72 = tpu.matmul %70, %71, %cst_22 {dimension_numbers = #tpu.dot_dimension_numbers<[1], [0], [0], [1], [0, 0, 1, 1], [], []>} : vector<8x128xbf16>, vector<128x128xbf16>, vector<8x128xf32> -> vector<8x128xf32>
    %73 = arith.addf %49, %72 : vector<8x128xf32>
    %c0_23 = arith.constant 0 : index
    %c0_24 = arith.constant 0 : index
    %74 = vector.load %arg5[%c0_23, %c0_24] : memref<1x128xf32, #tpu.memory_space<vmem>>, vector<1x128xf32>
    %75 = vector.broadcast %74 : vector<1x128xf32> to vector<8x128xf32>
    %76 = arith.addf %73, %75 : vector<8x128xf32>
    %c0_25 = arith.constant 0 : index
    %c0_26 = arith.constant 0 : index
    %77 = vector.load %arg6[%c0_25, %c0_26] : memref<8x128xf32, #tpu.memory_space<vmem>>, vector<8x128xf32>
    tpu.vector_store %arg6[%c0_25, %c0_26], %76 {strides = array<i32>} : memref<8x128xf32, #tpu.memory_space<vmem>>, vector<8x128xf32>,
    return
  }
  func.func @transform_0(%arg0: i32) -> (i32, i32, i32) {
    %c0_i32 = arith.constant 0 : i32
    %c0_i32_0 = arith.constant 0 : i32
    %c0_i32_1 = arith.constant 0 : i32
    return %arg0, %c0_i32, %c0_i32_0 : i32, i32, i32
  }
  func.func @transform_1(%arg0: i32) -> (i32, i32) {
    %c0_i32 = arith.constant 0 : i32
    %c0_i32_0 = arith.constant 0 : i32
    %c0_i32_1 = arith.constant 0 : i32
    return %c0_i32, %c0_i32_0 : i32, i32
  }
  func.func @transform_2(%arg0: i32) -> (i32, i32) {
    %c0_i32 = arith.constant 0 : i32
    %c0_i32_0 = arith.constant 0 : i32
    %c0_i32_1 = arith.constant 0 : i32
    return %c0_i32, %c0_i32_0 : i32, i32
  }
  func.func @transform_3(%arg0: i32) -> (i32, i32) {
    %c0_i32 = arith.constant 0 : i32
    %c0_i32_0 = arith.constant 0 : i32
    %c0_i32_1 = arith.constant 0 : i32
    return %c0_i32, %c0_i32_0 : i32, i32
  }
  func.func @transform_4(%arg0: i32) -> (i32, i32) {
    %c0_i32 = arith.constant 0 : i32
    %c0_i32_0 = arith.constant 0 : i32
    %c0_i32_1 = arith.constant 0 : i32
    return %c0_i32, %c0_i32_0 : i32, i32
  }
  func.func @transform_5(%arg0: i32) -> (i32, i32) {
    %c0_i32 = arith.constant 0 : i32
    %c0_i32_0 = arith.constant 0 : i32
    return %arg0, %c0_i32 : i32, i32
  }
}

</mosaic_0001>

<bundles_post_ra>
// kernel: tpu_custom_call.1
= control target key start
LH: loop header
LB: loop body
LE: loop exit
PB: predicated region body
PF: predicated region fallthrough
CT: control target
= control target key end

     0   :  { %10 = vsyncpa [#allocation3], 0  ;;  %s6968_s0 = inlined_call_operand.hbm [shape: bf16[8,16,384], index: 0, kind: input, shape index: {}]   ;;  %s6969_s1 = inlined_call_operand.hbm [shape: bf16[384,1536], index: 1, kind: input, shape index: {}]   ;;  %s6970_s2 = inlined_call_operand.hbm [shape: f32[1,384], index: 2, kind: input, shape index: {}]   ;;  %s6971_s3 = inlined_call_operand.hbm [shape: bf16[384,128], index: 3, kind: input, shape index: {}]   ;;  %s6972_s4 = inlined_call_operand.hbm [shape: f32[1,128], index: 4, kind: input, shape index: {}]   ;;  %s6973_s5 = inlined_call_operand.hbm [shape: f32[8,128], index: 5, kind: output, shape index: {}]  }
   0x1   :  { %11 = vsyncpa [#allocation6], 0 }
   0x2   :  { %12 = vsyncpa [#allocation9], 0 }
   0x3   :  { %13 = vsyncpa [#allocation4], 0  ;;  %s5988_s18 = smov [#allocation5]   ;;  %s5848_s22 = scalar_lea.hbm %s6969_s1, 36864 }
   0x4   :  { %s31_s19 = sshll.u32 %s5988_s18, 4  ;;  %p5849_p0 = scmp.ne.s32.totalorder %s6969_s1, %s5848_s22  ;;  %s32_s19 = int_to_ptr.vmem [resolvable:$true] %s31_s19 }
   0x5   :  { %p5852_p1 = scmp.lt.u32.totalorder %s5848_s22, %s6969_s1 }
   0x7   :  { %p5854_p2 = pnand %p5852_p1, %p5849_p0 }
   0x9   :  { %5857 = shalt.err (!%p5854_p2)
}
   0xa   :  { %s5858_s27 = scalar_lea.vmem %s32_s19, 36864  ;;  %p5863_p4 = scmp.lt.s32.totalorder %s32_s19, %s32_s19 }
   0xb   :  { %p5859_p3 = scmp.ne.s32.totalorder %s32_s19, %s5858_s27  ;;  %p5864_p5 = scmp.lt.s32.totalorder %s5858_s27, %s5858_s27 }
   0xd   :  { %p5865_p6 = por %p5864_p5, %p5863_p4 }
   0xf   :  { %p5866_p7 = pnand %p5865_p6, %p5859_p3 }
  0x11   :  { %5869 = shalt.err (!%p5866_p7)
}
  0x12   :  { %s5989_s28 = smov 768   ;;  %s5990_s29 = smov 48  }
  0x13   :  { %37 = dma.hbm_to_vmem [thread:$0]  %s6969_s1, 36864, %s32_s19, [#allocation6], %s5989_s28, %s5989_s28, %s5990_s29  }
  0x14   :  { %s5991_s7 = smov [#allocation8]   ;;  %s5870_s11 = scalar_lea.hbm %s6971_s3, 3072 }
  0x15   :  { %s53_s8 = sshll.u32 %s5991_s7, 4  ;;  %p5871_p8 = scmp.ne.s32.totalorder %s6971_s3, %s5870_s11  ;;  %s54_s8 = int_to_ptr.vmem [resolvable:$true] %s53_s8 }
  0x16   :  { %p5874_p9 = scmp.lt.u32.totalorder %s5870_s11, %s6971_s3 }
  0x18   :  { %p5876_p10 = pnand %p5874_p9, %p5871_p8 }
  0x1a   :  { %5879 = shalt.err (!%p5876_p10)
}
  0x1b   :  { %s5880_s16 = scalar_lea.vmem %s54_s8, 3072  ;;  %p5885_p12 = scmp.lt.s32.totalorder %s54_s8, %s54_s8 }
  0x1c   :  { %p5881_p11 = scmp.ne.s32.totalorder %s54_s8, %s5880_s16  ;;  %p5886_p13 = scmp.lt.s32.totalorder %s5880_s16, %s5880_s16 }
  0x1e   :  { %p5887_p0 = por %p5886_p13, %p5885_p12 }
  0x20   :  { %p5888_p1 = pnand %p5887_p0, %p5881_p11 }
  0x22   :  { %5891 = shalt.err (!%p5888_p1)
}
  0x23   :  { %s5992_s1 = smov 64   ;;  %s5993_s17 = smov 4  }
  0x24   :  { %59 = dma.hbm_to_vmem [thread:$0]  %s6971_s3, 3072, %s54_s8, [#allocation9], %s5992_s1, %s5992_s1, %s5993_s17  }
  0x25   :  { %s5994_s20 = smov [#allocation2]   ;;  %s5892_s24 = scalar_lea.hbm %s6968_s0, 3072 }
  0x26   :  { %s19_s21 = sshll.u32 %s5994_s20, 4  ;;  %p5893_p2 = scmp.ne.s32.totalorder %s6968_s0, %s5892_s24  ;;  %s20_s21 = int_to_ptr.vmem [resolvable:$true] %s19_s21 }
  0x27   :  { %p5896_p3 = scmp.lt.u32.totalorder %s5892_s24, %s6968_s0 }
  0x29   :  { %p5898_p4 = pnand %p5896_p3, %p5893_p2 }
  0x2b   :  { %5901 = shalt.err (!%p5898_p4)
}
  0x2c   :  { %s5902_s29 = scalar_lea.vmem %s20_s21, 3072  ;;  %p5907_p6 = scmp.lt.s32.totalorder %s20_s21, %s20_s21 }
  0x2d   :  { %p5903_p5 = scmp.ne.s32.totalorder %s20_s21, %s5902_s29  ;;  %p5908_p7 = scmp.lt.s32.totalorder %s5902_s29, %s5902_s29 }
  0x2f   :  { %p5909_p8 = por %p5908_p7, %p5907_p6 }
  0x31   :  { %p5910_p9 = pnand %p5909_p8, %p5903_p5 }
  0x33   :  { %5913 = shalt.err (!%p5910_p9)
}
  0x34   :  { %s5995_s3 = smov 192   ;;  %s5996_s30 = smov 12  }
  0x35   :  { %25 = dma.hbm_to_vmem [thread:$0]  %s6968_s0, 3072, %s20_s21, [#allocation3], %s5995_s3, %s5995_s3, %s5996_s30  }
  0x36   :  { %s5997_s8 = smov [#allocation7]   ;;  %s5998_s10 = smov [#allocation10]  }
  0x37   :  { %s44_s9 = sshll.u32 %s5997_s8, 4  ;;  %s66_s11 = sshll.u32 %s5998_s10, 4  ;;  %s45_s9 = int_to_ptr.vmem [resolvable:$true] %s44_s9  ;;  %s67_s11 = int_to_ptr.vmem [resolvable:$true] %s66_s11 }
  0x38   :  { %s5914_s14 = scalar_lea.hbm %s6970_s2, 48 }
  0x39   :  { %p5915_p10 = scmp.ne.s32.totalorder %s6970_s2, %s5914_s14  ;;  %p5918_p11 = scmp.lt.u32.totalorder %s5914_s14, %s6970_s2 }
  0x3b   :  { %p5920_p12 = pnand %p5918_p11, %p5915_p10 }
  0x3d   :  { %5923 = shalt.err (!%p5920_p12)
}
  0x3e   :  { %s5924_s0 = scalar_lea.vmem %s45_s9, 48  ;;  %s5928_s18 = scalar_lea.vmem %s45_s9, 64 }
  0x3f   :  { %p5925_p13 = scmp.ne.s32.totalorder %s45_s9, %s5924_s0  ;;  %p5929_p0 = scmp.lt.s32.totalorder %s45_s9, %s45_s9 }
  0x40   :  { %p5930_p1 = scmp.lt.s32.totalorder %s5928_s18, %s5924_s0 }
  0x42   :  { %p5931_p2 = por %p5930_p1, %p5929_p0 }
  0x44   :  { %p5932_p3 = pnand %p5931_p2, %p5925_p13 }
  0x46   :  { %5935 = shalt.err (!%p5932_p3)
}
  0x47   :  { %47 = dma.hbm_to_vmem [thread:$0]  %s6970_s2, 48, %s45_s9, [#allocation6]  }
  0x48   :  { %s5936_s23 = scalar_lea.hbm %s6972_s4, 16 }
  0x49   :  { %p5937_p4 = scmp.ne.s32.totalorder %s6972_s4, %s5936_s23  ;;  %p5940_p5 = scmp.lt.u32.totalorder %s5936_s23, %s6972_s4 }
  0x4b   :  { %p5942_p6 = pnand %p5940_p5, %p5937_p4 }
  0x4d   :  { %5945 = shalt.err (!%p5942_p6)
}
  0x4e   :  { %s5946_s28 = scalar_lea.vmem %s67_s11, 16  ;;  %s5950_s29 = scalar_lea.vmem %s67_s11, 32 }
  0x4f   :  { %p5947_p7 = scmp.ne.s32.totalorder %s67_s11, %s5946_s28  ;;  %p5951_p8 = scmp.lt.s32.totalorder %s67_s11, %s67_s11 }
  0x50   :  { %p5952_p9 = scmp.lt.s32.totalorder %s5950_s29, %s5946_s28 }
  0x52   :  { %p5953_p10 = por %p5952_p9, %p5951_p8 }
  0x54   :  { %p5954_p11 = pnand %p5953_p10, %p5947_p7 }
  0x56   :  { %5957 = shalt.err (!%p5954_p11)
}
  0x57   :  { %69 = dma.hbm_to_vmem [thread:$0]  %s6972_s4, 16, %s67_s11, [#allocation9]  }
  0x58   :  { %5980 = dma.done.wait [#allocation3], 3072  }
  0x59   :  { %5981 = vsyncadd [#allocation3], 4294964224 }
  0x5a   :  { %5982 = dma.done.wait [#allocation6], 36912  }
  0x5b   :  { %5983 = vsyncadd [#allocation6], 4294930384 }
  0x5c   :  { %5984 = dma.done.wait [#allocation9], 3088  }
  0x5d   :  { %5985 = vsyncadd [#allocation9], 4294964208  ;;  %v5999_v0 = vmov 0   ;;  %v5327_v1 = vld [vmem:[#allocation5 + $0x4] ss:$48 sps:$4 sm:$0xff]   ;;  %vm3350_vm0 = vcmask 1046528  }
  0x5e   :  { %2119 = vmatprep.mubr.bf16.mxu1 %v5999_v0  ;;  %v5329_v2 = vld [vmem:[#allocation5 + $0x604] ss:$48 sps:$4 sm:$0xff]   ;;  %1974 = vmatprep.subr.bf16.mxu0 %v5327_v1  ;;  %v5331_v3 = vld [vmem:[#allocation5] ss:$48 sps:$4 sm:$0xff]   ;;  %v5380_v34 = vld [vmem:[#allocation5 + $0xc] ss:$48 sps:$4 sm:$0xff]  }
  0x5f   :  { %v5332_v4 = vld [vmem:[#allocation5 + $0x600] ss:$48 sps:$4 sm:$0xff]   ;;  %2087 = vmatprep.subr.bf16.mxu1 %v5329_v2  ;;  %v5333_v5 = vld [vmem:[#allocation5 + $0x64] ss:$48 sps:$4 sm:$0xff]   ;;  %1975 = vmatpush1.bf16.msra.mxu0 %v5331_v3  ;;  %v5378_v36 = vld [vmem:[#allocation5 + $0x8] ss:$48 sps:$4 sm:$0xff]  }
  0x60   :  { %2088 = vmatpush1.bf16.msra.mxu1 %v5332_v4  ;;  %v5335_v6 = vld [vmem:[#allocation5 + $0x664] ss:$48 sps:$4 sm:$0xff]   ;;  %v5337_v7 = vld [vmem:[#allocation5 + $0x60] ss:$48 sps:$4 sm:$0xff]   ;;  %1976 = vmatprep.subr.bf16.mxu0 %v5333_v5  ;;  %v5386_v39 = vld [vmem:[#allocation5 + $0x6c] ss:$48 sps:$4 sm:$0xff]  }
  0x61   :  { %v5338_v8 = vld [vmem:[#allocation5 + $0x660] ss:$48 sps:$4 sm:$0xff]   ;;  %2089 = vmatprep.subr.bf16.mxu1 %v5335_v6  ;;  %v5339_v9 = vld [vmem:[#allocation5 + $0xc4] ss:$48 sps:$4 sm:$0xff]   ;;  %v5384_v40 = vld [vmem:[#allocation5 + $0x68] ss:$48 sps:$4 sm:$0xff]  }
  0x62   :  { %v5341_v10 = vld [vmem:[#allocation5 + $0x6c4] ss:$48 sps:$4 sm:$0xff]   ;;  %v5343_v11 = vld [vmem:[#allocation5 + $0xc0] ss:$48 sps:$4 sm:$0xff]   ;;  %v5393_v43 = vld [vmem:[#allocation5 + $0xcc] ss:$48 sps:$4 sm:$0xff]  }
  0x63   :  { %v5344_v12 = vld [vmem:[#allocation5 + $0x6c0] ss:$48 sps:$4 sm:$0xff]   ;;  %1977 = vmatpush1.bf16.msra.mxu0 %v5337_v7  ;;  %v5345_v13 = vld [vmem:[#allocation5 + $0x124] ss:$48 sps:$4 sm:$0xff]   ;;  %v5391_v45 = vld [vmem:[#allocation5 + $0xc8] ss:$48 sps:$4 sm:$0xff]  }
  0x64   :  { %2090 = vmatpush1.bf16.msra.mxu1 %v5338_v8  ;;  %1978 = vmatprep.subr.bf16.mxu0 %v5339_v9  ;;  %v5347_v14 = vld [vmem:[#allocation5 + $0x724] ss:$48 sps:$4 sm:$0xff]   ;;  %v5349_v15 = vld [vmem:[#allocation5 + $0x120] ss:$48 sps:$4 sm:$0xff]   ;;  %v5399_v48 = vld [vmem:[#allocation5 + $0x12c] ss:$48 sps:$4 sm:$0xff]  }
  0x65   :  { %2091 = vmatprep.subr.bf16.mxu1 %v5341_v10  ;;  %v5350_v16 = vld [vmem:[#allocation5 + $0x720] ss:$48 sps:$4 sm:$0xff]   ;;  %v5351_v17 = vld [vmem:[#allocation5 + $0x184] ss:$48 sps:$4 sm:$0xff]   ;;  %v5397_v49 = vld [vmem:[#allocation5 + $0x128] ss:$48 sps:$4 sm:$0xff]  }
  0x66   :  { %v5353_v18 = vld [vmem:[#allocation5 + $0x784] ss:$48 sps:$4 sm:$0xff]   ;;  %v5355_v19 = vld [vmem:[#allocation5 + $0x180] ss:$48 sps:$4 sm:$0xff]   ;;  %v5406_v52 = vld [vmem:[#allocation5 + $0x18c] ss:$48 sps:$4 sm:$0xff]  }
  0x67   :  { %1979 = vmatpush1.bf16.msra.mxu0 %v5343_v11  ;;  %v5356_v20 = vld [vmem:[#allocation5 + $0x780] ss:$48 sps:$4 sm:$0xff]   ;;  %v5357_v21 = vld [vmem:[#allocation5 + $0x1e4] ss:$48 sps:$4 sm:$0xff]   ;;  %v5404_v54 = vld [vmem:[#allocation5 + $0x188] ss:$48 sps:$4 sm:$0xff]  }
  0x68   :  { %2092 = vmatpush1.bf16.msra.mxu1 %v5344_v12  ;;  %1980 = vmatprep.subr.bf16.mxu0 %v5345_v13  ;;  %v5359_v22 = vld [vmem:[#allocation5 + $0x7e4] ss:$48 sps:$4 sm:$0xff]   ;;  %v5361_v23 = vld [vmem:[#allocation5 + $0x1e0] ss:$48 sps:$4 sm:$0xff]   ;;  %v5412_v58 = vld [vmem:[#allocation5 + $0x1ec] ss:$48 sps:$4 sm:$0xff]  }
  0x69   :  { %2093 = vmatprep.subr.bf16.mxu1 %v5347_v14  ;;  %v5362_v24 = vld [vmem:[#allocation5 + $0x7e0] ss:$48 sps:$4 sm:$0xff]   ;;  %v5363_v25 = vld [vmem:[#allocation5 + $0x244] ss:$48 sps:$4 sm:$0xff]   ;;  %v5410_v59 = vld [vmem:[#allocation5 + $0x1e8] ss:$48 sps:$4 sm:$0xff]  }
  0x6a   :  { %v5365_v26 = vld [vmem:[#allocation5 + $0x844] ss:$48 sps:$4 sm:$0xff]   ;;  %v5367_v27 = vld [vmem:[#allocation5 + $0x240] ss:$48 sps:$4 sm:$0xff]   ;;  %v5419_v62 = vld [vmem:[#allocation5 + $0x24c] ss:$48 sps:$4 sm:$0xff]  }
  0x6b   :  { %1981 = vmatpush1.bf16.msra.mxu0 %v5349_v15  ;;  %v5368_v28 = vld [vmem:[#allocation5 + $0x840] ss:$48 sps:$4 sm:$0xff]   ;;  %v5369_v29 = vld [vmem:[#allocation5 + $0x2a4] ss:$48 sps:$4 sm:$0xff]   ;;  %v5417_v1 = vld [vmem:[#allocation5 + $0x248] ss:$48 sps:$4 sm:$0xff]  }
  0x6c   :  { %2094 = vmatpush1.bf16.msra.mxu1 %v5350_v16  ;;  %1982 = vmatprep.subr.bf16.mxu0 %v5351_v17  ;;  %v5371_v30 = vld [vmem:[#allocation5 + $0x8a4] ss:$48 sps:$4 sm:$0xff]   ;;  %v5373_v31 = vld [vmem:[#allocation5 + $0x2a0] ss:$48 sps:$4 sm:$0xff]   ;;  %v5425_v4 = vld [vmem:[#allocation5 + $0x2ac] ss:$48 sps:$4 sm:$0xff]  }
  0x6d   :  { %2095 = vmatprep.subr.bf16.mxu1 %v5353_v18  ;;  %v5374_v32 = vld [vmem:[#allocation5 + $0x8a0] ss:$48 sps:$4 sm:$0xff]   ;;  %v5375_v33 = vld [vmem:[#allocation5 + $0x304] ss:$48 sps:$4 sm:$0xff]   ;;  %v5423_v5 = vld [vmem:[#allocation5 + $0x2a8] ss:$48 sps:$4 sm:$0xff]  }
  0x6e   :  { %v6095_v35 = vld [vmem:[#allocation2 + $0x8] ss:$12 sps:$4 sm:$0xff]   ;;  %v5381_v37 = vld [vmem:[#allocation5 + $0x300] ss:$48 sps:$4 sm:$0xff]   ;;  %v6103_v53 = vld [vmem:[#allocation2 + $0x38] ss:$12 sps:$4 sm:$0xff]  }
  0x6f   :  { %1983 = vmatpush1.bf16.msra.mxu0 %v5355_v19  ;;  %v5382_v38 = vld [vmem:[#allocation5 + $0x364] ss:$48 sps:$4 sm:$0xff]   ;;  %v5387_v41 = vld [vmem:[#allocation5 + $0x360] ss:$48 sps:$4 sm:$0xff]   ;;  %v5433_v7 = vld [vmem:[#allocation5 + $0x30c] ss:$48 sps:$4 sm:$0xff]  }
  0x70   :  { %2096 = vmatpush1.bf16.msra.mxu1 %v5356_v20  ;;  %1984 = vmatprep.subr.bf16.mxu0 %v5357_v21  ;;  %v5388_v42 = vld [vmem:[#allocation5 + $0x3c4] ss:$48 sps:$4 sm:$0xff]   ;;  %v6099_v44 = vld [vmem:[#allocation2 + $0x20] ss:$12 sps:$4 sm:$0xff]   ;;  %v6110_v63 = vld [vmem:[#allocation2 + $0x50] ss:$12 sps:$4 sm:$0xff]  }
  0x71   :  { %2097 = vmatprep.subr.bf16.mxu1 %v5359_v22  ;;  %v5394_v46 = vld [vmem:[#allocation5 + $0x3c0] ss:$48 sps:$4 sm:$0xff]   ;;  %v5395_v47 = vld [vmem:[#allocation5 + $0x424] ss:$48 sps:$4 sm:$0xff]   ;;  %v5436_v8 = vld [vmem:[#allocation5 + $0x60c] ss:$48 sps:$4 sm:$0xff]  }
  0x72   :  { %v5400_v50 = vld [vmem:[#allocation5 + $0x420] ss:$48 sps:$4 sm:$0xff]   ;;  %v5401_v51 = vld [vmem:[#allocation5 + $0x484] ss:$48 sps:$4 sm:$0xff]   ;;  %v5431_v11 = vld [vmem:[#allocation5 + $0x308] ss:$48 sps:$4 sm:$0xff]  }
  0x73   :  { %1985 = vmatpush1.bf16.msra.mxu0 %v5361_v23  ;;  %v5407_v55 = vld [vmem:[#allocation5 + $0x480] ss:$48 sps:$4 sm:$0xff]   ;;  %v5408_v57 = vld [vmem:[#allocation5 + $0x4e4] ss:$48 sps:$4 sm:$0xff]   ;;  %v5434_v12 = vld [vmem:[#allocation5 + $0x608] ss:$48 sps:$4 sm:$0xff]  }
  0x74   :  { %2098 = vmatpush1.bf16.msra.mxu1 %v5362_v24  ;;  %1986 = vmatprep.subr.bf16.mxu0 %v5363_v25  ;;  %v6105_v56 = vld [vmem:[#allocation2 + $0x4] ss:$12 sps:$4 sm:$0xff]   ;;  %v6114_v9 = vld [vmem:[#allocation2] ss:$12 sps:$4 sm:$0xff]   ;;  %v6116_v10 = vld [vmem:[#allocation2 + $0x68] ss:$12 sps:$4 sm:$0xff]  }
  0x75   :  { %2099 = vmatprep.subr.bf16.mxu1 %v5365_v26  ;;  %2006 = vmatprep.mubr.bf16.mxu0 %v6105_v56  ;;  %v5413_v60 = vld [vmem:[#allocation5 + $0x4e0] ss:$48 sps:$4 sm:$0xff]   ;;  %v5414_v61 = vld [vmem:[#allocation5 + $0x544] ss:$48 sps:$4 sm:$0xff]   ;;  %v5439_v13 = vld [vmem:[#allocation5 + $0x36c] ss:$48 sps:$4 sm:$0xff]  }
  0x76   :  { %v5420_v2 = vld [vmem:[#allocation5 + $0x540] ss:$48 sps:$4 sm:$0xff]   ;;  %v5421_v3 = vld [vmem:[#allocation5 + $0x5a4] ss:$48 sps:$4 sm:$0xff]   ;;  %v6118_v14 = vld [vmem:[#allocation2 + $0x1c] ss:$12 sps:$4 sm:$0xff]  }
  0x77   :  { %1987 = vmatpush1.bf16.msra.mxu0 %v5367_v27  ;;  %v5426_v6 = vld [vmem:[#allocation5 + $0x5a0] ss:$48 sps:$4 sm:$0xff]   ;;  %v5437_v15 = vld [vmem:[#allocation5 + $0x368] ss:$48 sps:$4 sm:$0xff]   ;;  %v5449_v16 = vld [vmem:[#allocation5 + $0x66c] ss:$48 sps:$4 sm:$0xff]  }
  0x78   :  { %2100 = vmatpush1.bf16.msra.mxu1 %v5368_v28  ;;  %1988 = vmatprep.subr.bf16.mxu0 %v5369_v29  ;;  %v5446_v17 = vld [vmem:[#allocation5 + $0x3cc] ss:$48 sps:$4 sm:$0xff]   ;;  %v5447_v18 = vld [vmem:[#allocation5 + $0x668] ss:$48 sps:$4 sm:$0xff]   ;;  %v6128_v23 = vld [vmem:[#allocation2 + $0x34] ss:$12 sps:$4 sm:$0xff]  }
  0x79   :  { %2101 = vmatprep.subr.bf16.mxu1 %v5371_v30  ;;  %v5462_v19 = vld [vmem:[#allocation5 + $0x6cc] ss:$48 sps:$4 sm:$0xff]   ;;  %v6124_v20 = vld [vmem:[#allocation2 + $0x18] ss:$12 sps:$4 sm:$0xff]   ;;  %vm3423_vm1 = vcmask 1045504   ;;  %vm3536_vm2 = vcmask 1043456  }
  0x7a   :  { %v6126_v21 = vld [vmem:[#allocation2 + $0x80] ss:$12 sps:$4 sm:$0xff]   ;;  %v5444_v22 = vld [vmem:[#allocation5 + $0x3c8] ss:$48 sps:$4 sm:$0xff]   ;;  %v6134_v29 = vld [vmem:[#allocation2 + $0x30] ss:$12 sps:$4 sm:$0xff]  }
  0x7b   :  { %1989 = vmatpush1.bf16.msra.mxu0 %v5373_v31  ;;  %v5452_v24 = vld [vmem:[#allocation5 + $0x42c] ss:$48 sps:$4 sm:$0xff]   ;;  %v5460_v25 = vld [vmem:[#allocation5 + $0x6c8] ss:$48 sps:$4 sm:$0xff]   ;;  %vm4002_vm4 = vcmask 1041409   ;;  %vm4004_vm5 = vcmask 1042434  }
  0x7c   :  { %2102 = vmatpush1.bf16.msra.mxu1 %v5374_v32  ;;  %1990 = vmatprep.subr.bf16.mxu0 %v5375_v33  ;;  %v5475_v26 = vld [vmem:[#allocation5 + $0x72c] ss:$48 sps:$4 sm:$0xff]   ;;  %v5450_v27 = vld [vmem:[#allocation5 + $0x428] ss:$48 sps:$4 sm:$0xff]   ;;  %vm4006_vm6 = vcmask 1043459   ;;  %vm4008_vm7 = vcmask 1044484  }
  0x7d   :  { %2200 = vmatprep.subr.bf16.mxu1 %v5380_v34  ;;  %v5459_v28 = vld [vmem:[#allocation5 + $0x48c] ss:$48 sps:$4 sm:$0xff]   ;;  %v5473_v30 = vld [vmem:[#allocation5 + $0x728] ss:$48 sps:$4 sm:$0xff]   ;;  %vm4010_vm8 = vcmask 1045509   ;;  %vm6002_vm9 = vmmov 0  }
  0x7e   :  { %v6136_v31 = vld [vmem:[#allocation2 + $0x98] ss:$12 sps:$4 sm:$0xff]   ;;  %v5465_v34 = vld [vmem:[#allocation5 + $0x4ec] ss:$48 sps:$4 sm:$0xff]   ;;  %vm4012_vm10 = vcmask 1046534   ;;  %vm4014_vm11 = vcmask 1047559  }
  0x7f   :  { %2120 = vmatmul.mubr.bf16.vlgmr.msra.gmra.mrb[0].mxu1 %v6095_v35  ;;  %1991 = vmatpush1.bf16.msra.mxu0 %v5381_v37  ;;  %v5457_v32 = vld [vmem:[#allocation5 + $0x488] ss:$48 sps:$4 sm:$0xff]   ;;  %vm3785_vm12 = vcmask 1044480   ;;  %s6003_s4 = smov [#allocation11]  }
  0x80   :  { %2201 = vmatpush1.bf16.msra.mxu1 %v5378_v36  ;;  %1992 = vmatprep.subr.bf16.mxu0 %v5382_v38  ;;  %v6138_v33 = vld [vmem:[#allocation2 + $0x4c] ss:$12 sps:$4 sm:$0xff]   ;;  %s4780_s30 = sshll.u32 %s6003_s4, 4  ;;  %s4781_s30 = int_to_ptr.vmem [resolvable:$true] %s4780_s30 }
  0x81   :  { %2202 = vmatprep.subr.bf16.mxu1 %v5386_v39  ;;  %2129 = vmatprep.mubr.bf16.mxu1 %v5999_v0  ;;  %v5484_v36 = vld [vmem:[#allocation5 + $0x78c] ss:$48 sps:$4 sm:$0xff]   ;;  %v5463_v37 = vld [vmem:[#allocation5 + $0x4e8] ss:$48 sps:$4 sm:$0xff]   ;;  %s5958_s6 = scalar_lea.vmem %s4781_s30, 128  ;;  %p5963_p13 = scmp.lt.s32.totalorder %s4781_s30, %s4781_s30 }
  0x82   :  { %v5482_v38 = vld [vmem:[#allocation5 + $0x788] ss:$48 sps:$4 sm:$0xff]   ;;  %v5496_v39 = vld [vmem:[#allocation5 + $0x7ec] ss:$48 sps:$4 sm:$0xff]   ;;  %p5959_p12 = scmp.ne.s32.totalorder %s4781_s30, %s5958_s6  ;;  %p5964_p0 = scmp.lt.s32.totalorder %s5958_s6, %s5958_s6 }
  0x83   :  { %1993 = vmatpush1.bf16.msra.mxu0 %v5387_v41  ;;  %v6144_v41 = vld [vmem:[#allocation2 + $0x48] ss:$12 sps:$4 sm:$0xff]  }
  0x84   :  { %2203 = vmatpush1.bf16.msra.mxu1 %v5384_v40  ;;  %1994 = vmatprep.subr.bf16.mxu0 %v5388_v42  ;;  %v5472_v40 = vld [vmem:[#allocation5 + $0x54c] ss:$48 sps:$4 sm:$0xff]   ;;  %p5965_p1 = por %p5964_p0, %p5963_p13 }
  0x85   :  { %2204 = vmatprep.subr.bf16.mxu1 %v5393_v43  ;;  %v6146_v42 = vld [vmem:[#allocation2 + $0xb0] ss:$12 sps:$4 sm:$0xff]   ;;  %v5470_v43 = vld [vmem:[#allocation5 + $0x548] ss:$48 sps:$4 sm:$0xff]  }
  0x86   :  { %p5966_p2 = pnand %p5965_p1, %p5959_p12 }
  0x87   :  { %2130 = vmatmul.mubr.bf16.gmra.mrb[4].mxu1 %v6099_v44  ;;  %1995 = vmatpush1.bf16.msra.mxu0 %v5394_v46  ;;  %v5478_v46 = vld [vmem:[#allocation5 + $0x5ac] ss:$48 sps:$4 sm:$0xff]  }
  0x88   :  { %2205 = vmatpush1.bf16.msra.mxu1 %v5391_v45  ;;  %1996 = vmatprep.subr.bf16.mxu0 %v5395_v47  ;;  %v6148_v45 = vld [vmem:[#allocation2 + $0x64] ss:$12 sps:$4 sm:$0xff]   ;;  %v5494_v47 = vld [vmem:[#allocation5 + $0x7e8] ss:$48 sps:$4 sm:$0xff]  }
  0x89   :  { %2206 = vmatprep.subr.bf16.mxu1 %v5399_v48  ;;  %2139 = vmatprep.mubr.bf16.mxu1 %v5999_v0  ;;  %v5508_v48 = vld [vmem:[#allocation5 + $0x84c] ss:$48 sps:$4 sm:$0xff]  }
  0x8b   :  { %1997 = vmatpush1.bf16.msra.mxu0 %v5400_v50  ;;  %v5487_v50 = vld [vmem:[#allocation5 + $0x14] ss:$48 sps:$4 sm:$0xff]  }
  0x8c   :  { %2207 = vmatpush1.bf16.msra.mxu1 %v5397_v49  ;;  %1998 = vmatprep.subr.bf16.mxu0 %v5401_v51  ;;  %v5476_v49 = vld [vmem:[#allocation5 + $0x5a8] ss:$48 sps:$4 sm:$0xff]  }
  0x8d   :  { %2208 = vmatprep.subr.bf16.mxu1 %v5406_v52  ;;  %v5506_v51 = vld [vmem:[#allocation5 + $0x848] ss:$48 sps:$4 sm:$0xff]   ;;  %v6154_v52 = vld [vmem:[#allocation2 + $0x60] ss:$12 sps:$4 sm:$0xff]  }
  0x8f   :  { %2140 = vmatmul.mubr.bf16.gmra.mrb[8].mxu1 %v6103_v53  ;;  %1999 = vmatpush1.bf16.msra.mxu0 %v5407_v55  ;;  %v6156_v55 = vld [vmem:[#allocation2 + $0x7c] ss:$12 sps:$4 sm:$0xff]  }
  0x90   :  { %2209 = vmatpush1.bf16.msra.mxu1 %v5404_v54  ;;  %2000 = vmatprep.subr.bf16.mxu0 %v5408_v57  ;;  %v5485_v54 = vld [vmem:[#allocation5 + $0x10] ss:$48 sps:$4 sm:$0xff]   ;;  %v5490_v57 = vld [vmem:[#allocation5 + $0x74] ss:$48 sps:$4 sm:$0xff]  }
  0x91   :  { %2210 = vmatprep.subr.bf16.mxu1 %v5412_v58  ;;  %2149 = vmatprep.mubr.bf16.mxu1 %v5999_v0  ;;  %v5520_v58 = vld [vmem:[#allocation5 + $0x8ac] ss:$48 sps:$4 sm:$0xff]  }
  0x93   :  { %2001 = vmatpush1.bf16.msra.mxu0 %v5413_v60  ;;  %v5518_v60 = vld [vmem:[#allocation5 + $0x8a8] ss:$48 sps:$4 sm:$0xff]  }
  0x94   :  { %2211 = vmatpush1.bf16.msra.mxu1 %v5410_v59  ;;  %2002 = vmatprep.subr.bf16.mxu0 %v5414_v61  ;;  %v5488_v59 = vld [vmem:[#allocation5 + $0x70] ss:$48 sps:$4 sm:$0xff]   ;;  %v5532_v61 = vld [vmem:[#allocation5 + $0x1c] ss:$48 sps:$4 sm:$0xff]  }
  0x95   :  { %2212 = vmatprep.subr.bf16.mxu1 %v5419_v62  ;;  %v5499_v62 = vld [vmem:[#allocation5 + $0xd4] ss:$48 sps:$4 sm:$0xff]  }
  0x97   :  { %2150 = vmatmul.mubr.bf16.gmra.mrb[12].mxu1 %v6110_v63  ;;  %2003 = vmatpush1.bf16.msra.mxu0 %v5420_v2  ;;  %v5497_v2 = vld [vmem:[#allocation5 + $0xd0] ss:$48 sps:$4 sm:$0xff]  }
  0x98   :  { %2213 = vmatpush1.bf16.msra.mxu1 %v5417_v1  ;;  %2004 = vmatprep.subr.bf16.mxu0 %v5421_v3  ;;  %v6162_v1 = vld [vmem:[#allocation2 + $0x78] ss:$12 sps:$4 sm:$0xff]   ;;  %v6164_v3 = vld [vmem:[#allocation2 + $0x94] ss:$12 sps:$4 sm:$0xff]  }
  0x99   :  { %2214 = vmatprep.subr.bf16.mxu1 %v5425_v4  ;;  %2159 = vmatprep.mubr.bf16.mxu1 %v5999_v0  ;;  %v5502_v4 = vld [vmem:[#allocation5 + $0x134] ss:$48 sps:$4 sm:$0xff]  }
  0x9b   :  { %2005 = vmatpush1.bf16.msra.mxu0 %v5426_v6  ;;  %v5511_v6 = vld [vmem:[#allocation5 + $0x194] ss:$48 sps:$4 sm:$0xff]  }
  0x9c   :  { %2215 = vmatpush1.bf16.msra.mxu1 %v5423_v5  ;;  %2313 = vmatprep.subr.bf16.mxu0 %v5436_v8  ;;  %v5500_v5 = vld [vmem:[#allocation5 + $0x130] ss:$48 sps:$4 sm:$0xff]  }
  0x9d   :  { %2216 = vmatprep.subr.bf16.mxu1 %v5433_v7  ;;  %v6170_v7 = vld [vmem:[#allocation2 + $0x90] ss:$12 sps:$4 sm:$0xff]  }
  0x9e   :  { %2007 = vmatmul.mubr.bf16.vlgmr.msra.gmra.mrb[0].mxu0 %v6114_v9  ;;  %v5509_v8 = vld [vmem:[#allocation5 + $0x190] ss:$48 sps:$4 sm:$0xff]  }
  0x9f   :  { %2160 = vmatmul.mubr.bf16.gmra.mrb[16].mxu1 %v6116_v10  ;;  %2314 = vmatpush1.bf16.msra.mxu0 %v5434_v12  ;;  %v5514_v12 = vld [vmem:[#allocation5 + $0x1f4] ss:$48 sps:$4 sm:$0xff]  }
  0xa0   :  { %2217 = vmatpush1.bf16.msra.mxu1 %v5431_v11  ;;  %2016 = vmatprep.mubr.bf16.mxu0 %v6118_v14  ;;  %v6172_v11 = vld [vmem:[#allocation2 + $0xac] ss:$12 sps:$4 sm:$0xff]  }
  0xa1   :  { %2218 = vmatprep.subr.bf16.mxu1 %v5439_v13  ;;  %2169 = vmatprep.mubr.bf16.mxu1 %v5999_v0  ;;  %v5512_v13 = vld [vmem:[#allocation5 + $0x1f0] ss:$48 sps:$4 sm:$0xff]  }
  0xa2   :  { %2315 = vmatprep.subr.bf16.mxu0 %v5449_v16  ;;  %v6178_v16 = vld [vmem:[#allocation2 + $0xa8] ss:$12 sps:$4 sm:$0xff]  }
  0xa3   :  { %2316 = vmatpush1.bf16.msra.mxu0 %v5447_v18  ;;  %v5526_v18 = vld [vmem:[#allocation5 + $0x2b4] ss:$48 sps:$4 sm:$0xff]  }
  0xa4   :  { %2219 = vmatpush1.bf16.msra.mxu1 %v5437_v15  ;;  %2317 = vmatprep.subr.bf16.mxu0 %v5462_v19  ;;  %v5523_v15 = vld [vmem:[#allocation5 + $0x254] ss:$48 sps:$4 sm:$0xff]   ;;  %v5524_v19 = vld [vmem:[#allocation5 + $0x2b0] ss:$48 sps:$4 sm:$0xff]  }
  0xa5   :  { %2220 = vmatprep.subr.bf16.mxu1 %v5446_v17  ;;  %v5521_v17 = vld [vmem:[#allocation5 + $0x250] ss:$48 sps:$4 sm:$0xff]  }
  0xa6   :  { %2017 = vmatmul.mubr.bf16.gmra.mrb[4].mxu0 %v6124_v20 }
  0xa7   :  { %2170 = vmatmul.mubr.bf16.gmra.mrb[20].mxu1 %v6126_v21  ;;  %2026 = vmatprep.mubr.bf16.mxu0 %v6128_v23 }
  0xa8   :  { %2221 = vmatpush1.bf16.msra.mxu1 %v5444_v22  ;;  %2179 = vmatprep.mubr.bf16.mxu1 %v5999_v0  ;;  %v5529_v22 = vld [vmem:[#allocation5 + $0x314] ss:$48 sps:$4 sm:$0xff]  }
  0xa9   :  { %2222 = vmatprep.subr.bf16.mxu1 %v5452_v24  ;;  %2318 = vmatpush1.bf16.msra.mxu0 %v5460_v25  ;;  %v5527_v24 = vld [vmem:[#allocation5 + $0x310] ss:$48 sps:$4 sm:$0xff]   ;;  %v5530_v25 = vld [vmem:[#allocation5 + $0x18] ss:$48 sps:$4 sm:$0xff]  }
  0xaa   :  { %2319 = vmatprep.subr.bf16.mxu0 %v5475_v26  ;;  %v5535_v26 = vld [vmem:[#allocation5 + $0x374] ss:$48 sps:$4 sm:$0xff]  }
  0xac   :  { %2223 = vmatpush1.bf16.msra.mxu1 %v5450_v27  ;;  %v5538_v27 = vld [vmem:[#allocation5 + $0x7c] ss:$48 sps:$4 sm:$0xff]  }
  0xad   :  { %2224 = vmatprep.subr.bf16.mxu1 %v5459_v28  ;;  %2320 = vmatpush1.bf16.msra.mxu0 %v5473_v30  ;;  %v5533_v28 = vld [vmem:[#allocation5 + $0x370] ss:$48 sps:$4 sm:$0xff]   ;;  %v5536_v30 = vld [vmem:[#allocation5 + $0x78] ss:$48 sps:$4 sm:$0xff]  }
  0xae   :  { %2027 = vmatmul.mubr.bf16.gmra.mrb[8].mxu0 %v6134_v29  ;;  %2321 = vmatprep.subr.bf16.mxu0 %v5484_v36  ;;  %v5539_v36 = vld [vmem:[#allocation5 + $0x3d0] ss:$48 sps:$4 sm:$0xff]  }
  0xaf   :  { %2180 = vmatmul.mubr.bf16.gmra.mrb[24].mxu1 %v6136_v31  ;;  %2036 = vmatprep.mubr.bf16.mxu0 %v6138_v33 }
  0xb0   :  { %2225 = vmatpush1.bf16.msra.mxu1 %v5457_v32  ;;  %2189 = vmatprep.mubr.bf16.mxu1 %v5999_v0  ;;  %v5541_v32 = vld [vmem:[#allocation5 + $0x3d4] ss:$48 sps:$4 sm:$0xff]  }
  0xb1   :  { %2226 = vmatprep.subr.bf16.mxu1 %v5465_v34  ;;  %2322 = vmatpush1.bf16.msra.mxu0 %v5482_v38  ;;  %v5544_v34 = vld [vmem:[#allocation5 + $0xdc] ss:$48 sps:$4 sm:$0xff]   ;;  %v5547_v38 = vld [vmem:[#allocation5 + $0x434] ss:$48 sps:$4 sm:$0xff]  }
  0xb2   :  { %2323 = vmatprep.subr.bf16.mxu0 %v5496_v39  ;;  %v5545_v39 = vld [vmem:[#allocation5 + $0x430] ss:$48 sps:$4 sm:$0xff]  }
  0xb4   :  { %2227 = vmatpush1.bf16.msra.mxu1 %v5463_v37  ;;  %v5542_v37 = vld [vmem:[#allocation5 + $0xd8] ss:$48 sps:$4 sm:$0xff]  }
  0xb5   :  { %2228 = vmatprep.subr.bf16.mxu1 %v5472_v40  ;;  %2324 = vmatpush1.bf16.msra.mxu0 %v5494_v47  ;;  %v5548_v40 = vld [vmem:[#allocation5 + $0x138] ss:$48 sps:$4 sm:$0xff]   ;;  %v5551_v47 = vld [vmem:[#allocation5 + $0x490] ss:$48 sps:$4 sm:$0xff]  }
  0xb6   :  { %2037 = vmatmul.mubr.bf16.gmra.mrb[12].mxu0 %v6144_v41  ;;  %2325 = vmatprep.subr.bf16.mxu0 %v5508_v48  ;;  %v5554_v48 = vld [vmem:[#allocation5 + $0x198] ss:$48 sps:$4 sm:$0xff]  }
  0xb7   :  { %2190 = vmatmul.mubr.bf16.gmra.mrb[28].mxu1 %v6146_v42  ;;  %2046 = vmatprep.mubr.bf16.mxu0 %v6148_v45 }
  0xb8   :  { %2229 = vmatpush1.bf16.msra.mxu1 %v5470_v43  ;;  %2232 = vmatprep.mubr.bf16.mxu1 %v6105_v56  ;;  %v5553_v43 = vld [vmem:[#allocation5 + $0x494] ss:$48 sps:$4 sm:$0xff]  }
  0xb9   :  { %2230 = vmatprep.subr.bf16.mxu1 %v5478_v46  ;;  %2326 = vmatpush1.bf16.msra.mxu0 %v5506_v51  ;;  %v5556_v46 = vld [vmem:[#allocation5 + $0x19c] ss:$48 sps:$4 sm:$0xff]   ;;  %v5560_v51 = vld [vmem:[#allocation5 + $0x1f8] ss:$48 sps:$4 sm:$0xff]  }
  0xba   :  { %2327 = vmatprep.subr.bf16.mxu0 %v5520_v58  ;;  %v5563_v58 = vld [vmem:[#allocation5 + $0x550] ss:$48 sps:$4 sm:$0xff]  }
  0xbc   :  { %2231 = vmatpush1.bf16.msra.mxu1 %v5476_v49  ;;  %v5559_v49 = vld [vmem:[#allocation5 + $0x4f4] ss:$48 sps:$4 sm:$0xff]  }
  0xbd   :  { %2426 = vmatprep.subr.bf16.mxu1 %v5487_v50  ;;  %2328 = vmatpush1.bf16.msra.mxu0 %v5518_v60  ;;  %v5557_v50 = vld [vmem:[#allocation5 + $0x4f0] ss:$48 sps:$4 sm:$0xff]   ;;  %v5571_v60 = vld [vmem:[#allocation5 + $0x5b4] ss:$48 sps:$4 sm:$0xff]  }
  0xbe   :  { %2047 = vmatmul.mubr.bf16.gmra.mrb[16].mxu0 %v6154_v52  ;;  %2652 = vmatprep.subr.bf16.mxu0 %v5532_v61  ;;  %v5569_v61 = vld [vmem:[#allocation5 + $0x5b0] ss:$48 sps:$4 sm:$0xff]  }
  0xbf   :  { %2233 = vmatmul.mubr.bf16.vlgmr.msra.gmra.mrb[32].mxu1 %v6114_v9  ;;  %2056 = vmatprep.mubr.bf16.mxu0 %v6156_v55 }
  0xc0   :  { %2427 = vmatpush1.bf16.msra.mxu1 %v5485_v54  ;;  %2242 = vmatprep.mubr.bf16.mxu1 %v6118_v14  ;;  %v5565_v54 = vld [vmem:[#allocation5 + $0x554] ss:$48 sps:$4 sm:$0xff]  }
  0xc1   :  { %2428 = vmatprep.subr.bf16.mxu1 %v5490_v57  ;;  %v5568_v57 = vld [vmem:[#allocation5 + $0x25c] ss:$48 sps:$4 sm:$0xff]  }
  0xc4   :  { %2429 = vmatpush1.bf16.msra.mxu1 %v5488_v59  ;;  %v5566_v59 = vld [vmem:[#allocation5 + $0x258] ss:$48 sps:$4 sm:$0xff]  }
  0xc5   :  { %2430 = vmatprep.subr.bf16.mxu1 %v5499_v62  ;;  %v5572_v62 = vld [vmem:[#allocation5 + $0x2b8] ss:$48 sps:$4 sm:$0xff]  }
  0xc6   :  { %2057 = vmatmul.mubr.bf16.gmra.mrb[20].mxu0 %v6162_v1 }
  0xc7   :  { %2243 = vmatmul.mubr.bf16.gmra.mrb[36].mxu1 %v6124_v20  ;;  %2066 = vmatprep.mubr.bf16.mxu0 %v6164_v3 }
  0xc8   :  { %2431 = vmatpush1.bf16.msra.mxu1 %v5497_v2  ;;  %2252 = vmatprep.mubr.bf16.mxu1 %v6128_v23  ;;  %v5577_v2 = vld [vmem:[#allocation5 + $0x31c] ss:$48 sps:$4 sm:$0xff]  }
  0xc9   :  { %2432 = vmatprep.subr.bf16.mxu1 %v5502_v4  ;;  %v5598_v4 = vld [vmem:[#allocation5 + $0x614] ss:$48 sps:$4 sm:$0xff]  }
  0xcc   :  { %2433 = vmatpush1.bf16.msra.mxu1 %v5500_v5  ;;  %v5575_v5 = vld [vmem:[#allocation5 + $0x318] ss:$48 sps:$4 sm:$0xff]  }
  0xcd   :  { %2434 = vmatprep.subr.bf16.mxu1 %v5511_v6  ;;  %v5580_v6 = vld [vmem:[#allocation5 + $0x37c] ss:$48 sps:$4 sm:$0xff]  }
  0xce   :  { %2067 = vmatmul.mubr.bf16.gmra.mrb[24].mxu0 %v6170_v7 }
  0xcf   :  { %2253 = vmatmul.mubr.bf16.gmra.mrb[40].mxu1 %v6134_v29  ;;  %2076 = vmatprep.mubr.bf16.mxu0 %v6172_v11 }
  0xd0   :  { %2435 = vmatpush1.bf16.msra.mxu1 %v5509_v8  ;;  %2262 = vmatprep.mubr.bf16.mxu1 %v6138_v33  ;;  %v5596_v8 = vld [vmem:[#allocation5 + $0x610] ss:$48 sps:$4 sm:$0xff]  }
  0xd1   :  { %2436 = vmatprep.subr.bf16.mxu1 %v5514_v12  ;;  %v5578_v12 = vld [vmem:[#allocation5 + $0x378] ss:$48 sps:$4 sm:$0xff]  }
  0xd4   :  { %2437 = vmatpush1.bf16.msra.mxu1 %v5512_v13  ;;  %v5605_v13 = vld [vmem:[#allocation5 + $0x670] ss:$48 sps:$4 sm:$0xff]  }
  0xd5   :  { %2438 = vmatprep.subr.bf16.mxu1 %v5523_v15  ;;  %v5581_v15 = vld [vmem:[#allocation5 + $0x3d8] ss:$48 sps:$4 sm:$0xff]  }
  0xd6   :  { %2077 = vmatmul.mubr.bf16.gmra.mrb[28].mxu0 %v6178_v16 }
  0xd7   :  { %2263 = vmatmul.mubr.bf16.gmra.mrb[44].mxu1 %v6144_v41  ;;  %2345 = vmatprep.mubr.bf16.mxu0 %v5999_v0 }
  0xd8   :  { %2439 = vmatpush1.bf16.msra.mxu1 %v5521_v17  ;;  %2272 = vmatprep.mubr.bf16.mxu1 %v6148_v45  ;;  %v5586_v17 = vld [vmem:[#allocation5 + $0x43c] ss:$48 sps:$4 sm:$0xff]  }
  0xd9   :  { %2440 = vmatprep.subr.bf16.mxu1 %v5526_v18  ;;  %v5608_v18 = vld [vmem:[#allocation5 + $0x6d0] ss:$48 sps:$4 sm:$0xff]  }
  0xdc   :  { %2441 = vmatpush1.bf16.msra.mxu1 %v5524_v19  ;;  %v5616_v19 = vld [vmem:[#allocation5 + $0x734] ss:$48 sps:$4 sm:$0xff]  }
  0xdd   :  { %2442 = vmatprep.subr.bf16.mxu1 %v5529_v22  ;;  %v5589_v22 = vld [vmem:[#allocation5 + $0x49c] ss:$48 sps:$4 sm:$0xff]  }
  0xde   :  { %2346 = vmatmul.mubr.bf16.vlgmr.msra.gmra.mrb[32].mxu0 %v6095_v35  ;;  %v5550_v35 = vld [vmem:[#allocation5 + $0x13c] ss:$48 sps:$4 sm:$0xff]  }
  0xdf   :  { %2273 = vmatmul.mubr.bf16.gmra.mrb[48].mxu1 %v6154_v52  ;;  %2653 = vmatpush1.bf16.msra.mxu0 %v5530_v25  ;;  %v5592_v25 = vld [vmem:[#allocation5 + $0x4fc] ss:$48 sps:$4 sm:$0xff]  }
  0xe0   :  { %2443 = vmatpush1.bf16.msra.mxu1 %v5527_v24  ;;  %2654 = vmatprep.subr.bf16.mxu0 %v5538_v27  ;;  %v5587_v24 = vld [vmem:[#allocation5 + $0x498] ss:$48 sps:$4 sm:$0xff]   ;;  %v5595_v27 = vld [vmem:[#allocation5 + $0x55c] ss:$48 sps:$4 sm:$0xff]  }
  0xe1   :  { %2444 = vmatprep.subr.bf16.mxu1 %v5535_v26  ;;  %2282 = vmatprep.mubr.bf16.mxu1 %v6156_v55  ;;  %v5590_v26 = vld [vmem:[#allocation5 + $0x4f8] ss:$48 sps:$4 sm:$0xff]  }
  0xe2   :  { %2355 = vmatprep.mubr.bf16.mxu0 %v5999_v0 }
  0xe3   :  { %2655 = vmatpush1.bf16.msra.mxu0 %v5536_v30  ;;  %v5593_v30 = vld [vmem:[#allocation5 + $0x558] ss:$48 sps:$4 sm:$0xff]  }
  0xe4   :  { %2445 = vmatpush1.bf16.msra.mxu1 %v5533_v28  ;;  %2656 = vmatprep.subr.bf16.mxu0 %v5544_v34  ;;  %v5617_v28 = vld [vmem:[#allocation5 + $0x790] ss:$48 sps:$4 sm:$0xff]   ;;  %v5599_v34 = vld [vmem:[#allocation5 + $0x5b8] ss:$48 sps:$4 sm:$0xff]  }
  0xe5   :  { %2446 = vmatprep.subr.bf16.mxu1 %v5541_v32  ;;  %v5601_v32 = vld [vmem:[#allocation5 + $0x5bc] ss:$48 sps:$4 sm:$0xff]  }
  0xe6   :  { %2356 = vmatmul.mubr.bf16.gmra.mrb[36].mxu0 %v6099_v44  ;;  %v5562_v44 = vld [vmem:[#allocation5 + $0x1fc] ss:$48 sps:$4 sm:$0xff]  }
  0xe7   :  { %2283 = vmatmul.mubr.bf16.gmra.mrb[52].mxu1 %v6162_v1  ;;  %2657 = vmatpush1.bf16.msra.mxu0 %v5542_v37  ;;  %v6215_v37 = vld [vmem:[#allocation2 + $0x4] ss:$12 sps:$4 sm:$0xff]  }
  0xe8   :  { %2447 = vmatpush1.bf16.msra.mxu1 %v5539_v36  ;;  %2658 = vmatprep.subr.bf16.mxu0 %v5550_v35  ;;  %v5628_v36 = vld [vmem:[#allocation5 + $0x854] ss:$48 sps:$4 sm:$0xff]   ;;  %v5602_v35 = vld [vmem:[#allocation5 + $0x618] ss:$48 sps:$4 sm:$0xff]  }
  0xe9   :  { %2448 = vmatprep.subr.bf16.mxu1 %v5547_v38  ;;  %2292 = vmatprep.mubr.bf16.mxu1 %v6164_v3  ;;  %v5604_v38 = vld [vmem:[#allocation5 + $0x61c] ss:$48 sps:$4 sm:$0xff]  }
  0xea   :  { %2365 = vmatprep.mubr.bf16.mxu0 %v5999_v0 }
  0xeb   :  { %2659 = vmatpush1.bf16.msra.mxu0 %v5548_v40  ;;  %v5611_v40 = vld [vmem:[#allocation5 + $0x678] ss:$48 sps:$4 sm:$0xff]  }
  0xec   :  { %2449 = vmatpush1.bf16.msra.mxu1 %v5545_v39  ;;  %2660 = vmatprep.subr.bf16.mxu0 %v5556_v46  ;;  %v5613_v39 = vld [vmem:[#allocation5 + $0x67c] ss:$48 sps:$4 sm:$0xff]  }
  0xed   :  { %2450 = vmatprep.subr.bf16.mxu1 %v5553_v43  ;;  %v5634_v43 = vld [vmem:[#allocation5 + $0x8b4] ss:$48 sps:$4 sm:$0xff]   ;;  %v6219_v46 = vld [vmem:[#allocation2] ss:$12 sps:$4 sm:$0xff]  }
  0xee   :  { %2366 = vmatmul.mubr.bf16.gmra.mrb[40].mxu0 %v6103_v53  ;;  %v5574_v53 = vld [vmem:[#allocation5 + $0x2bc] ss:$48 sps:$4 sm:$0xff]  }
  0xef   :  { %2293 = vmatmul.mubr.bf16.gmra.mrb[56].mxu1 %v6170_v7  ;;  %2661 = vmatpush1.bf16.msra.mxu0 %v5554_v48  ;;  %v5632_v48 = vld [vmem:[#allocation5 + $0x8b0] ss:$48 sps:$4 sm:$0xff]  }
  0xf0   :  { %2451 = vmatpush1.bf16.msra.mxu1 %v5551_v47  ;;  %2662 = vmatprep.subr.bf16.mxu0 %v5562_v44  ;;  %v5622_v47 = vld [vmem:[#allocation5 + $0x6dc] ss:$48 sps:$4 sm:$0xff]   ;;  %v5640_v44 = vld [vmem:[#allocation5 + $0x24] ss:$48 sps:$4 sm:$0xff]  }
  0xf1   :  { %2452 = vmatprep.subr.bf16.mxu1 %v5559_v49  ;;  %2302 = vmatprep.mubr.bf16.mxu1 %v6172_v11  ;;  %v5620_v49 = vld [vmem:[#allocation5 + $0x6d8] ss:$48 sps:$4 sm:$0xff]  }
  0xf2   :  { %2375 = vmatprep.mubr.bf16.mxu0 %v5999_v0 }
  0xf3   :  { %2663 = vmatpush1.bf16.msra.mxu0 %v5560_v51  ;;  %v6225_v51 = vld [vmem:[#allocation2 + $0x18] ss:$12 sps:$4 sm:$0xff]  }
  0xf4   :  { %2453 = vmatpush1.bf16.msra.mxu1 %v5557_v50  ;;  %2664 = vmatprep.subr.bf16.mxu0 %v5568_v57  ;;  %v5631_v50 = vld [vmem:[#allocation5 + $0x73c] ss:$48 sps:$4 sm:$0xff]   ;;  %v5635_v57 = vld [vmem:[#allocation5 + $0x798] ss:$48 sps:$4 sm:$0xff]  }
  0xf5   :  { %2454 = vmatprep.subr.bf16.mxu1 %v5565_v54  ;;  %v5637_v54 = vld [vmem:[#allocation5 + $0x79c] ss:$48 sps:$4 sm:$0xff]  }
  0xf6   :  { %2376 = vmatmul.mubr.bf16.gmra.mrb[44].mxu0 %v6110_v63  ;;  %v5607_v63 = vld [vmem:[#allocation5 + $0x674] ss:$48 sps:$4 sm:$0xff]  }
  0xf7   :  { %2303 = vmatmul.mubr.bf16.gmra.mrb[60].mxu1 %v6178_v16  ;;  %2665 = vmatpush1.bf16.msra.mxu0 %v5566_v59  ;;  %v6231_v59 = vld [vmem:[#allocation2 + $0x30] ss:$12 sps:$4 sm:$0xff]  }
  0xf8   :  { %2455 = vmatpush1.bf16.msra.mxu1 %v5563_v58  ;;  %2666 = vmatprep.subr.bf16.mxu0 %v5574_v53  ;;  %v5646_v58 = vld [vmem:[#allocation5 + $0x7fc] ss:$48 sps:$4 sm:$0xff]   ;;  %v5653_v53 = vld [vmem:[#allocation5 + $0x858] ss:$48 sps:$4 sm:$0xff]  }
  0xf9   :  { %2456 = vmatprep.subr.bf16.mxu1 %v5571_v60  ;;  %2385 = vmatprep.mubr.bf16.mxu0 %v5999_v0  ;;  %v5655_v60 = vld [vmem:[#allocation5 + $0x85c] ss:$48 sps:$4 sm:$0xff]  }
  0xfa   :  { %2458 = vmatprep.mubr.bf16.mxu1 %v6105_v56  ;;  %v5583_v56 = vld [vmem:[#allocation5 + $0x3dc] ss:$48 sps:$4 sm:$0xff]  }
  0xfb   :  { %2667 = vmatpush1.bf16.msra.mxu0 %v5572_v62  ;;  %v5662_v62 = vld [vmem:[#allocation5 + $0x8b8] ss:$48 sps:$4 sm:$0xff]  }
  0xfc   :  { %2457 = vmatpush1.bf16.msra.mxu1 %v5569_v61  ;;  %2668 = vmatprep.subr.bf16.mxu0 %v5577_v2  ;;  %v5664_v61 = vld [vmem:[#allocation5 + $0x8bc] ss:$48 sps:$4 sm:$0xff]   ;;  %v5638_v2 = vld [vmem:[#allocation5 + $0x20] ss:$48 sps:$4 sm:$0xff]  }
  0xfd   :  { %2539 = vmatprep.subr.bf16.mxu1 %v5598_v4  ;;  %v5643_v4 = vld [vmem:[#allocation5 + $0x84] ss:$48 sps:$4 sm:$0xff]  }
  0xfe   :  { %2386 = vmatmul.mubr.bf16.gmra.mrb[48].mxu0 %v6116_v10  ;;  %v5610_v10 = vld [vmem:[#allocation5 + $0x6d4] ss:$48 sps:$4 sm:$0xff]  }
  0xff   :  { %2459 = vmatmul.mubr.bf16.vlgmr.msra.gmra.mrb[64].mxu1 %v6114_v9  ;;  %2669 = vmatpush1.bf16.msra.mxu0 %v5575_v5  ;;  %v5584_v9 = vld [vmem:[#allocation5 + $0x438] ss:$48 sps:$4 sm:$0xff]  }
 0x100   :  { %2395 = vmatprep.mubr.bf16.mxu0 %v5999_v0  ;;  %2670 = vmatprep.subr.bf16.mxu0 %v5580_v6  ;;  %v6240_v5 = vld [vmem:[#allocation2 + $0x8] ss:$12 sps:$4 sm:$0xff]   ;;  %v5647_v6 = vld [vmem:[#allocation5 + $0xe0] ss:$48 sps:$4 sm:$0xff]  }
 0x101   :  { %2468 = vmatprep.mubr.bf16.mxu1 %v6118_v14  ;;  %2540 = vmatpush1.bf16.msra.mxu1 %v5596_v8  ;;  %v5652_v8 = vld [vmem:[#allocation5 + $0x144] ss:$48 sps:$4 sm:$0xff]  }
 0x102   :  { %2541 = vmatprep.subr.bf16.mxu1 %v5607_v63  ;;  %v6246_v63 = vld [vmem:[#allocation2 + $0x20] ss:$12 sps:$4 sm:$0xff]  }
 0x103   :  { %2671 = vmatpush1.bf16.msra.mxu0 %v5578_v12  ;;  %v5658_v12 = vld [vmem:[#allocation5 + $0x1a4] ss:$48 sps:$4 sm:$0xff]  }
 0x104   :  { %2672 = vmatprep.subr.bf16.mxu0 %v5583_v56  ;;  %v5661_v56 = vld [vmem:[#allocation5 + $0x204] ss:$48 sps:$4 sm:$0xff]  }
 0x105   :  { %2542 = vmatpush1.bf16.msra.mxu1 %v5605_v13  ;;  %v6252_v13 = vld [vmem:[#allocation2 + $0x38] ss:$12 sps:$4 sm:$0xff]  }
 0x106   :  { %2396 = vmatmul.mubr.bf16.gmra.mrb[52].mxu0 %v6126_v21  ;;  %2543 = vmatprep.subr.bf16.mxu1 %v5610_v10  ;;  %v5614_v21 = vld [vmem:[#allocation5 + $0x730] ss:$48 sps:$4 sm:$0xff]  }
 0x107   :  { %2469 = vmatmul.mubr.bf16.gmra.mrb[68].mxu1 %v6124_v20  ;;  %2673 = vmatpush1.bf16.msra.mxu0 %v5581_v15  ;;  %v5619_v20 = vld [vmem:[#allocation5 + $0x794] ss:$48 sps:$4 sm:$0xff]   ;;  %v5665_v10 = vld [vmem:[#allocation5 + $0x260] ss:$48 sps:$4 sm:$0xff]  }
 0x108   :  { %2405 = vmatprep.mubr.bf16.mxu0 %v5999_v0  ;;  %2674 = vmatprep.subr.bf16.mxu0 %v5586_v17  ;;  %v5667_v15 = vld [vmem:[#allocation5 + $0x264] ss:$48 sps:$4 sm:$0xff]  }
 0x109   :  { %2478 = vmatprep.mubr.bf16.mxu1 %v6128_v23  ;;  %2544 = vmatpush1.bf16.msra.mxu1 %v5608_v18  ;;  %v5670_v18 = vld [vmem:[#allocation5 + $0x2c4] ss:$48 sps:$4 sm:$0xff]  }
 0x10a   :  { %2545 = vmatprep.subr.bf16.mxu1 %v5616_v19 }
 0x10b   :  { %2675 = vmatpush1.bf16.msra.mxu0 %v5584_v9 }
 0x10c   :  { %2676 = vmatprep.subr.bf16.mxu0 %v5589_v22  ;;  %v5673_v22 = vld [vmem:[#allocation5 + $0x324] ss:$48 sps:$4 sm:$0xff]  }
 0x10d   :  { %2546 = vmatpush1.bf16.msra.mxu1 %v5614_v21  ;;  %v5671_v21 = vld [vmem:[#allocation5 + $0x320] ss:$48 sps:$4 sm:$0xff]  }
 0x10e   :  { %2406 = vmatmul.mubr.bf16.gmra.mrb[56].mxu0 %v6136_v31  ;;  %2547 = vmatprep.subr.bf16.mxu1 %v5619_v20  ;;  %v5625_v31 = vld [vmem:[#allocation5 + $0x7f4] ss:$48 sps:$4 sm:$0xff]   ;;  %v5674_v20 = vld [vmem:[#allocation5 + $0x28] ss:$48 sps:$4 sm:$0xff]  }
 0x10f   :  { %2479 = vmatmul.mubr.bf16.gmra.mrb[72].mxu1 %v6134_v29  ;;  %2677 = vmatpush1.bf16.msra.mxu0 %v5587_v24  ;;  %v5623_v29 = vld [vmem:[#allocation5 + $0x7f0] ss:$48 sps:$4 sm:$0xff]  }
 0x110   :  { %2415 = vmatprep.mubr.bf16.mxu0 %v5999_v0  ;;  %2678 = vmatprep.subr.bf16.mxu0 %v5592_v25 }
 0x111   :  { %2488 = vmatprep.mubr.bf16.mxu1 %v6138_v33  ;;  %2548 = vmatpush1.bf16.msra.mxu1 %v5617_v28  ;;  %v5682_v28 = vld [vmem:[#allocation5 + $0x8c] ss:$48 sps:$4 sm:$0xff]  }
 0x112   :  { %2549 = vmatprep.subr.bf16.mxu1 %v5625_v31  ;;  %v5685_v31 = vld [vmem:[#allocation5 + $0x3e4] ss:$48 sps:$4 sm:$0xff]  }
 0x113   :  { %2679 = vmatpush1.bf16.msra.mxu0 %v5590_v26 }
 0x114   :  { %2680 = vmatprep.subr.bf16.mxu0 %v5595_v27  ;;  %v5679_v27 = vld [vmem:[#allocation5 + $0x384] ss:$48 sps:$4 sm:$0xff]  }
 0x115   :  { %2550 = vmatpush1.bf16.msra.mxu1 %v5623_v29  ;;  %v5688_v29 = vld [vmem:[#allocation5 + $0xec] ss:$48 sps:$4 sm:$0xff]  }
 0x116   :  { %2416 = vmatmul.mubr.bf16.gmra.mrb[60].mxu0 %v6146_v42  ;;  %2551 = vmatprep.subr.bf16.mxu1 %v5628_v36  ;;  %v5626_v42 = vld [vmem:[#allocation5 + $0x850] ss:$48 sps:$4 sm:$0xff]  }
 0x117   :  { %2489 = vmatmul.mubr.bf16.gmra.mrb[76].mxu1 %v6144_v41  ;;  %2681 = vmatpush1.bf16.msra.mxu0 %v5593_v30  ;;  %v6276_v30 = vld [vmem:[#allocation2 + $0x68] ss:$12 sps:$4 sm:$0xff]  }
 0x118   :  { %2498 = vmatprep.mubr.bf16.mxu1 %v6148_v45  ;;  %2682 = vmatprep.subr.bf16.mxu0 %v5601_v32  ;;  %v5677_v32 = vld [vmem:[#allocation5 + $0x380] ss:$48 sps:$4 sm:$0xff]  }
 0x119   :  { %2684 = vmatprep.mubr.bf16.mxu0 %v6215_v37  ;;  %2552 = vmatpush1.bf16.msra.mxu1 %v5626_v42 }
 0x11a   :  { %2553 = vmatprep.subr.bf16.mxu1 %v5634_v43  ;;  %v5694_v43 = vld [vmem:[#allocation5 + $0x14c] ss:$48 sps:$4 sm:$0xff]  }
 0x11b   :  { %2683 = vmatpush1.bf16.msra.mxu0 %v5599_v34  ;;  %v5680_v34 = vld [vmem:[#allocation5 + $0x88] ss:$48 sps:$4 sm:$0xff]  }
 0x11c   :  { %2765 = vmatprep.subr.bf16.mxu0 %v5604_v38 }
 0x11d   :  { %2554 = vmatpush1.bf16.msra.mxu1 %v5632_v48  ;;  %v6288_v48 = vld [vmem:[#allocation2 + $0x80] ss:$12 sps:$4 sm:$0xff]  }
 0x11e   :  { %2685 = vmatmul.mubr.bf16.vlgmr.msra.gmra.mrb[64].mxu0 %v6219_v46  ;;  %2878 = vmatprep.subr.bf16.mxu1 %v5640_v44  ;;  %v5692_v44 = vld [vmem:[#allocation5 + $0x148] ss:$48 sps:$4 sm:$0xff]  }
 0x11f   :  { %2499 = vmatmul.mubr.bf16.gmra.mrb[80].mxu1 %v6154_v52  ;;  %2766 = vmatpush1.bf16.msra.mxu0 %v5602_v35  ;;  %v5683_v35 = vld [vmem:[#allocation5 + $0x3e0] ss:$48 sps:$4 sm:$0xff]  }
 0x120   :  { %2508 = vmatprep.mubr.bf16.mxu1 %v6156_v55  ;;  %2694 = vmatprep.mubr.bf16.mxu0 %v6118_v14  ;;  %v5629_v14 = vld [vmem:[#allocation5 + $0x738] ss:$48 sps:$4 sm:$0xff]  }
 0x121   :  { %2767 = vmatprep.subr.bf16.mxu0 %v5613_v39  ;;  %v5686_v39 = vld [vmem:[#allocation5 + $0xe8] ss:$48 sps:$4 sm:$0xff]  }
 0x123   :  { %2768 = vmatpush1.bf16.msra.mxu0 %v5611_v40  ;;  %v5691_v40 = vld [vmem:[#allocation5 + $0x444] ss:$48 sps:$4 sm:$0xff]  }
 0x124   :  { %2769 = vmatprep.subr.bf16.mxu0 %v5622_v47 }
 0x126   :  { %2695 = vmatmul.mubr.bf16.gmra.mrb[68].mxu0 %v6225_v51 }
 0x127   :  { %2509 = vmatmul.mubr.bf16.gmra.mrb[84].mxu1 %v6162_v1  ;;  %2704 = vmatprep.mubr.bf16.mxu0 %v6128_v23  ;;  %v5644_v23 = vld [vmem:[#allocation5 + $0x7f8] ss:$48 sps:$4 sm:$0xff]  }
 0x128   :  { %2518 = vmatprep.mubr.bf16.mxu1 %v6164_v3  ;;  %2770 = vmatpush1.bf16.msra.mxu0 %v5620_v49  ;;  %v5689_v49 = vld [vmem:[#allocation5 + $0x440] ss:$48 sps:$4 sm:$0xff]  }
 0x129   :  { %2771 = vmatprep.subr.bf16.mxu0 %v5631_v50  ;;  %v5697_v50 = vld [vmem:[#allocation5 + $0x4a4] ss:$48 sps:$4 sm:$0xff]  }
 0x12c   :  { %2772 = vmatpush1.bf16.msra.mxu0 %v5629_v14  ;;  %v5700_v14 = vld [vmem:[#allocation5 + $0x1ac] ss:$48 sps:$4 sm:$0xff]  }
 0x12d   :  { %2773 = vmatprep.subr.bf16.mxu0 %v5637_v54 }
 0x12e   :  { %2705 = vmatmul.mubr.bf16.gmra.mrb[72].mxu0 %v6231_v59 }
 0x12f   :  { %2519 = vmatmul.mubr.bf16.gmra.mrb[88].mxu1 %v6170_v7  ;;  %2714 = vmatprep.mubr.bf16.mxu0 %v6138_v33  ;;  %v5676_v33 = vld [vmem:[#allocation5 + $0x2c] ss:$48 sps:$4 sm:$0xff]  }
 0x130   :  { %2528 = vmatprep.mubr.bf16.mxu1 %v6172_v11  ;;  %2774 = vmatpush1.bf16.msra.mxu0 %v5635_v57 }
 0x131   :  { %2775 = vmatprep.subr.bf16.mxu0 %v5646_v58  ;;  %v5695_v58 = vld [vmem:[#allocation5 + $0x4a0] ss:$48 sps:$4 sm:$0xff]  }
 0x134   :  { %2776 = vmatpush1.bf16.msra.mxu0 %v5644_v23  ;;  %v5698_v23 = vld [vmem:[#allocation5 + $0x1a8] ss:$48 sps:$4 sm:$0xff]  }
 0x135   :  { %2777 = vmatprep.subr.bf16.mxu0 %v5655_v60 }
 0x136   :  { %2715 = vmatmul.mubr.bf16.gmra.mrb[76].mxu0 %v6144_v41  ;;  %v5641_v41 = vld [vmem:[#allocation5 + $0x80] ss:$48 sps:$4 sm:$0xff]  }
 0x137   :  { %2529 = vmatmul.mubr.bf16.gmra.mrb[92].mxu1 %v6178_v16  ;;  %2724 = vmatprep.mubr.bf16.mxu0 %v6148_v45  ;;  %v5649_v45 = vld [vmem:[#allocation5 + $0xe4] ss:$48 sps:$4 sm:$0xff]  }
 0x138   :  { %2571 = vmatprep.mubr.bf16.mxu1 %v5999_v0  ;;  %2778 = vmatpush1.bf16.msra.mxu0 %v5653_v53  ;;  %v5703_v53 = vld [vmem:[#allocation5 + $0x504] ss:$48 sps:$4 sm:$0xff]  }
 0x139   :  { %2779 = vmatprep.subr.bf16.mxu0 %v5664_v61  ;;  %v5706_v61 = vld [vmem:[#allocation5 + $0x20c] ss:$48 sps:$4 sm:$0xff]  }
 0x13c   :  { %2780 = vmatpush1.bf16.msra.mxu0 %v5662_v62 }
 0x13d   :  { %3104 = vmatprep.subr.bf16.mxu0 %v5676_v33  ;;  %v6300_v33 = vld [vmem:[#allocation2 + $0x98] ss:$12 sps:$4 sm:$0xff]  }
 0x13e   :  { %2725 = vmatmul.mubr.bf16.gmra.mrb[80].mxu0 %v6154_v52  ;;  %v5650_v52 = vld [vmem:[#allocation5 + $0x140] ss:$48 sps:$4 sm:$0xff]  }
 0x13f   :  { %2572 = vmatmul.mubr.bf16.vlgmr.msra.gmra.mrb[64].mxu1 %v6240_v5  ;;  %2734 = vmatprep.mubr.bf16.mxu0 %v6156_v55  ;;  %v5656_v55 = vld [vmem:[#allocation5 + $0x1a0] ss:$48 sps:$4 sm:$0xff]  }
 0x140   :  { %2879 = vmatpush1.bf16.msra.mxu1 %v5638_v2  ;;  %2581 = vmatprep.mubr.bf16.mxu1 %v5999_v0  ;;  %v5701_v2 = vld [vmem:[#allocation5 + $0x500] ss:$48 sps:$4 sm:$0xff]  }
 0x141   :  { %2880 = vmatprep.subr.bf16.mxu1 %v5643_v4  ;;  %v5704_v4 = vld [vmem:[#allocation5 + $0x208] ss:$48 sps:$4 sm:$0xff]  }
 0x144   :  { %2881 = vmatpush1.bf16.msra.mxu1 %v5641_v41  ;;  %v5709_v41 = vld [vmem:[#allocation5 + $0x564] ss:$48 sps:$4 sm:$0xff]  }
 0x145   :  { %2882 = vmatprep.subr.bf16.mxu1 %v5649_v45  ;;  %v5712_v45 = vld [vmem:[#allocation5 + $0x26c] ss:$48 sps:$4 sm:$0xff]  }
 0x146   :  { %2735 = vmatmul.mubr.bf16.gmra.mrb[84].mxu0 %v6162_v1  ;;  %v5659_v1 = vld [vmem:[#allocation5 + $0x200] ss:$48 sps:$4 sm:$0xff]  }
 0x147   :  { %2582 = vmatmul.mubr.bf16.gmra.mrb[68].mxu1 %v6246_v63  ;;  %2744 = vmatprep.mubr.bf16.mxu0 %v6164_v3 }
 0x148   :  { %2883 = vmatpush1.bf16.msra.mxu1 %v5647_v6  ;;  %2591 = vmatprep.mubr.bf16.mxu1 %v5999_v0 }
 0x149   :  { %2884 = vmatprep.subr.bf16.mxu1 %v5652_v8 }
 0x14c   :  { %2885 = vmatpush1.bf16.msra.mxu1 %v5650_v52 }
 0x14d   :  { %2886 = vmatprep.subr.bf16.mxu1 %v5658_v12 }
 0x14e   :  { %2745 = vmatmul.mubr.bf16.gmra.mrb[88].mxu0 %v6170_v7  ;;  %v6264_v7 = vld [vmem:[#allocation2 + $0x50] ss:$12 sps:$4 sm:$0xff]  }
 0x14f   :  { %2592 = vmatmul.mubr.bf16.gmra.mrb[72].mxu1 %v6252_v13  ;;  %2754 = vmatprep.mubr.bf16.mxu0 %v6172_v11  ;;  %v5668_v11 = vld [vmem:[#allocation5 + $0x2c0] ss:$48 sps:$4 sm:$0xff]  }
 0x150   :  { %2887 = vmatpush1.bf16.msra.mxu1 %v5656_v55  ;;  %2601 = vmatprep.mubr.bf16.mxu1 %v5999_v0 }
 0x151   :  { %2888 = vmatprep.subr.bf16.mxu1 %v5661_v56 }
 0x152   :  { %v6258_v3 = vpop.f32.mrb[0].mxu1 }
 0x153   :  { %v6260_v17 = vpop.f32.mrb[1].mxu1 }
 0x154   :  { %2889 = vmatpush1.bf16.msra.mxu1 %v5659_v1  ;;  %v2125_v9 = vpop.f32.mrb[2].mxu1 }
 0x155   :  { %2890 = vmatprep.subr.bf16.mxu1 %v5667_v15  ;;  %v6262_v19 = vpop.f32.mrb[3].mxu1  ;;  %v5707_v15 = vld [vmem:[#allocation5 + $0x560] ss:$48 sps:$4 sm:$0xff]  }
 0x156   :  { %2755 = vmatmul.mubr.bf16.gmra.mrb[92].mxu0 %v6178_v16 }
 0x157   :  { %2602 = vmatmul.mubr.bf16.gmra.mrb[76].mxu1 %v6264_v7  ;;  %2797 = vmatprep.mubr.bf16.mxu0 %v5999_v0 }
 0x158   :  { %2891 = vmatpush1.bf16.msra.mxu1 %v5665_v10  ;;  %2611 = vmatprep.mubr.bf16.mxu1 %v5999_v0  ;;  %v5710_v10 = vld [vmem:[#allocation5 + $0x268] ss:$48 sps:$4 sm:$0xff]  }
 0x159   :  { %2892 = vmatprep.subr.bf16.mxu1 %v5670_v18 }
 0x15a   :  { %v6270_v24 = vpop.f32.mrb[4].mxu1 }
 0x15b   :  { %v6272_v25 = vpop.f32.mrb[5].mxu1 }
 0x15c   :  { %2893 = vmatpush1.bf16.msra.mxu1 %v5668_v11  ;;  %v2135_v26 = vpop.f32.mrb[6].mxu1  ;;  %v5715_v11 = vld [vmem:[#allocation5 + $0x5c4] ss:$48 sps:$4 sm:$0xff]  }
 0x15d   :  { %2894 = vmatprep.subr.bf16.mxu1 %v5673_v22  ;;  %v6274_v16 = vpop.f32.mrb[7].mxu1  ;;  %v5718_v22 = vld [vmem:[#allocation5 + $0x2cc] ss:$48 sps:$4 sm:$0xff]  }
 0x15e   :  { %2798 = vmatmul.mubr.bf16.vlgmr.msra.gmra.mrb[96].mxu0 %v6240_v5 }
 0x15f   :  { %2612 = vmatmul.mubr.bf16.gmra.mrb[80].mxu1 %v6276_v30  ;;  %3105 = vmatpush1.bf16.msra.mxu0 %v5674_v20  ;;  %v6315_v20 = vld [vmem:[#allocation2 + $0xb0] ss:$12 sps:$4 sm:$0xff]  }
 0x160   :  { %2895 = vmatpush1.bf16.msra.mxu1 %v5671_v21  ;;  %3106 = vmatprep.subr.bf16.mxu0 %v5682_v28  ;;  %v5716_v28 = vld [vmem:[#allocation5 + $0x2c8] ss:$48 sps:$4 sm:$0xff]  }
 0x161   :  { %2896 = vmatprep.subr.bf16.mxu1 %v5679_v27  ;;  %2621 = vmatprep.mubr.bf16.mxu1 %v5999_v0  ;;  %v5713_v27 = vld [vmem:[#allocation5 + $0x5c0] ss:$48 sps:$4 sm:$0xff]  }
 0x162   :  { %2807 = vmatprep.mubr.bf16.mxu0 %v5999_v0  ;;  %v6282_v36 = vpop.f32.mrb[8].mxu1 }
 0x163   :  { %v6284_v38 = vpop.f32.mrb[9].mxu1  ;;  %3107 = vmatpush1.bf16.msra.mxu0 %v5680_v34  ;;  %v5742_v34 = vld [vmem:[#allocation5 + $0x624] ss:$48 sps:$4 sm:$0xff]  }
 0x164   :  { %2897 = vmatpush1.bf16.msra.mxu1 %v5677_v32  ;;  %v2145_v42 = vpop.f32.mrb[10].mxu1  ;;  %3108 = vmatprep.subr.bf16.mxu0 %v5688_v29  ;;  %v5721_v32 = vld [vmem:[#allocation5 + $0x32c] ss:$48 sps:$4 sm:$0xff]  }
 0x165   :  { %2898 = vmatprep.subr.bf16.mxu1 %v5685_v31  ;;  %v6286_v47 = vpop.f32.mrb[11].mxu1 }
 0x166   :  { %2808 = vmatmul.mubr.bf16.gmra.mrb[100].mxu0 %v6246_v63 }
 0x167   :  { %2622 = vmatmul.mubr.bf16.gmra.mrb[84].mxu1 %v6288_v48  ;;  %3109 = vmatpush1.bf16.msra.mxu0 %v5686_v39 }
 0x168   :  { %2899 = vmatpush1.bf16.msra.mxu1 %v5683_v35  ;;  %3110 = vmatprep.subr.bf16.mxu0 %v5694_v43 }
 0x169   :  { %2900 = vmatprep.subr.bf16.mxu1 %v5691_v40  ;;  %2631 = vmatprep.mubr.bf16.mxu1 %v5999_v0 }
 0x16a   :  { %2817 = vmatprep.mubr.bf16.mxu0 %v5999_v0  ;;  %v6294_v54 = vpop.f32.mrb[12].mxu1 }
 0x16b   :  { %v6296_v57 = vpop.f32.mrb[13].mxu1  ;;  %3111 = vmatpush1.bf16.msra.mxu0 %v5692_v44  ;;  %v5719_v44 = vld [vmem:[#allocation5 + $0x328] ss:$48 sps:$4 sm:$0xff]  }
 0x16c   :  { %2901 = vmatpush1.bf16.msra.mxu1 %v5689_v49  ;;  %v2155_v60 = vpop.f32.mrb[14].mxu1  ;;  %3112 = vmatprep.subr.bf16.mxu0 %v5700_v14 }
 0x16d   :  { %2902 = vmatprep.subr.bf16.mxu1 %v5697_v50  ;;  %v6298_v62 = vpop.f32.mrb[15].mxu1 }
 0x16e   :  { %2818 = vmatmul.mubr.bf16.gmra.mrb[104].mxu0 %v6252_v13 }
 0x16f   :  { %2632 = vmatmul.mubr.bf16.gmra.mrb[88].mxu1 %v6300_v33  ;;  %3113 = vmatpush1.bf16.msra.mxu0 %v5698_v23 }
 0x170   :  { %2903 = vmatpush1.bf16.msra.mxu1 %v5695_v58  ;;  %3114 = vmatprep.subr.bf16.mxu0 %v5706_v61  ;;  %v5724_v58 = vld [vmem:[#allocation5 + $0x38c] ss:$48 sps:$4 sm:$0xff]  }
 0x171   :  { %2904 = vmatprep.subr.bf16.mxu1 %v5703_v53  ;;  %v2008_v6 = vpop.f32.mrb[0].mxu0  ;;  %2641 = vmatprep.mubr.bf16.mxu1 %v5999_v0  ;;  %v5740_v53 = vld [vmem:[#allocation5 + $0x620] ss:$48 sps:$4 sm:$0xff]  }
 0x172   :  { %2827 = vmatprep.mubr.bf16.mxu0 %v5999_v0  ;;  %v6306_v8 = vpop.f32.mrb[16].mxu1  ;;  %v2122_v52 = vadd.f32 %v6258_v3, %v2008_v6  ;;  %v2010_v12 = vpop.f32.mrb[1].mxu0 }
 0x173   :  { %v6309_v55 = vpop.f32.mrb[17].mxu1  ;;  %v2124_v56 = vadd.f32 %v6260_v17, %v2010_v12  ;;  %v2012_v1 = vpop.f32.mrb[2].mxu0  ;;  %3115 = vmatpush1.bf16.msra.mxu0 %v5704_v4  ;;  %v6336_v4 = vld [vmem:[#allocation2 + $0x1c] ss:$12 sps:$4 sm:$0xff]  }
 0x174   :  { %2905 = vmatpush1.bf16.msra.mxu1 %v5701_v2  ;;  %v2165_v9 = vpop.f32.mrb[18].mxu1  ;;  %v2014_v18 = vpop.f32.mrb[3].mxu0  ;;  %3116 = vmatprep.subr.bf16.mxu0 %v5712_v45  ;;  %v5722_v2 = vld [vmem:[#allocation5 + $0x388] ss:$48 sps:$4 sm:$0xff]  }
 0x175   :  { %2906 = vmatprep.subr.bf16.mxu1 %v5709_v41  ;;  %v6312_v21 = vpop.f32.mrb[19].mxu1  ;;  %v2128_v3 = vadd.f32 %v6262_v19, %v2014_v18  ;;  %v3351_v17 = vrot.slane %v2124_v56, 1  ;;  %v5727_v41 = vld [vmem:[#allocation5 + $0x3ec] ss:$48 sps:$4 sm:$0xff]   ;;  %v5725_v18 = vld [vmem:[#allocation5 + $0x3e8] ss:$48 sps:$4 sm:$0xff]  }
 0x176   :  { %2828 = vmatmul.mubr.bf16.gmra.mrb[108].mxu0 %v6264_v7 }
 0x177   :  { %2642 = vmatmul.mubr.bf16.gmra.mrb[92].mxu1 %v6315_v20  ;;  %v3352_v26 = vrot.slane %v2128_v3, 1  ;;  %3117 = vmatpush1.bf16.msra.mxu0 %v5710_v10  ;;  %v5730_v3 = vld [vmem:[#allocation5 + $0x44c] ss:$48 sps:$4 sm:$0xff]  }
 0x178   :  { %2907 = vmatpush1.bf16.msra.mxu1 %v5707_v15  ;;  %3118 = vmatprep.subr.bf16.mxu0 %v5718_v22 }
 0x179   :  { %2908 = vmatprep.subr.bf16.mxu1 %v5715_v11  ;;  %v3353_v31 = vsel %vm3350_vm0, %v3351_v17, %v3352_v26  ;;  %v2018_v19 = vpop.f32.mrb[4].mxu0  ;;  %2837 = vmatprep.mubr.bf16.mxu0 %v5999_v0 }
 0x17a   :  { %2910 = vmatprep.mubr.bf16.mxu1 %v6215_v37  ;;  %v6322_v29 = vpop.f32.mrb[20].mxu1  ;;  %v6324_v35 = vadd.f32 %v3353_v31, %v2122_v52  ;;  %v2132_v39 = vadd.f32 %v6270_v24, %v2018_v19  ;;  %v2020_v42 = vpop.f32.mrb[5].mxu0  ;;  %v5751_v24 = vld [vmem:[#allocation5 + $0x684] ss:$48 sps:$4 sm:$0xff]   ;;  %v5749_v52 = vld [vmem:[#allocation5 + $0x680] ss:$48 sps:$4 sm:$0xff]  }
 0x17b   :  { %v6327_v40 = vpop.f32.mrb[21].mxu1  ;;  %v2134_v43 = vadd.f32 %v6272_v25, %v2020_v42  ;;  %v2022_v49 = vpop.f32.mrb[6].mxu0  ;;  %3119 = vmatpush1.bf16.msra.mxu0 %v5716_v28  ;;  %v6354_v31 = vld [vmem:[#allocation2 + $0x34] ss:$12 sps:$4 sm:$0xff]  }
 0x17c   :  { %2909 = vmatpush1.bf16.msra.mxu1 %v5713_v27  ;;  %v2175_v50 = vpop.f32.mrb[22].mxu1  ;;  %v2024_v14 = vpop.f32.mrb[7].mxu0  ;;  %3120 = vmatprep.subr.bf16.mxu0 %v5721_v32  ;;  %v5754_v27 = vld [vmem:[#allocation5 + $0x6e4] ss:$48 sps:$4 sm:$0xff]   ;;  %v5728_v32 = vld [vmem:[#allocation5 + $0x448] ss:$48 sps:$4 sm:$0xff]  }
 0x17d   :  { %v6330_v23 = vpop.f32.mrb[23].mxu1  ;;  %2991 = vmatprep.subr.bf16.mxu1 %v5742_v34  ;;  %v2138_v60 = vadd.f32 %v6274_v16, %v2024_v14  ;;  %v3354_v25 = vrot.slane %v2134_v43, 1  ;;  %v5760_v34 = vld [vmem:[#allocation5 + $0x744] ss:$48 sps:$4 sm:$0xff]  }
 0x17e   :  { %2838 = vmatmul.mubr.bf16.gmra.mrb[112].mxu0 %v6276_v30 }
 0x17f   :  { %2911 = vmatmul.mubr.bf16.vlgmr.msra.gmra.mrb[96].mxu1 %v6219_v46  ;;  %v3355_v61 = vrot.slane %v2138_v60, 1  ;;  %3121 = vmatpush1.bf16.msra.mxu0 %v5719_v44  ;;  %v5731_v60 = vld [vmem:[#allocation5 + $0x4a8] ss:$48 sps:$4 sm:$0xff]  }
 0x180   :  { %2847 = vmatprep.mubr.bf16.mxu0 %v5999_v0  ;;  %3122 = vmatprep.subr.bf16.mxu0 %v5724_v58 }
 0x181   :  { %2920 = vmatprep.mubr.bf16.mxu1 %v6336_v4  ;;  %v3356_v16 = vsel %vm3350_vm0, %v3354_v25, %v3355_v61  ;;  %v2028_v45 = vpop.f32.mrb[8].mxu0  ;;  %2992 = vmatpush1.bf16.msra.mxu1 %v5740_v53  ;;  %v5736_v25 = vld [vmem:[#allocation5 + $0x50c] ss:$48 sps:$4 sm:$0xff]  }
 0x182   :  { %v6340_v6 = vpop.f32.mrb[24].mxu1  ;;  %v6342_v12 = vadd.f32 %v3356_v16, %v2132_v39  ;;  %v2142_v56 = vadd.f32 %v6282_v36, %v2028_v45  ;;  %v2030_v1 = vpop.f32.mrb[9].mxu0  ;;  %2993 = vmatprep.subr.bf16.mxu1 %v5751_v24  ;;  %v5752_v36 = vld [vmem:[#allocation5 + $0x6e0] ss:$48 sps:$4 sm:$0xff]   ;;  %v5734_v45 = vld [vmem:[#allocation5 + $0x508] ss:$48 sps:$4 sm:$0xff]  }
 0x183   :  { %v6345_v15 = vpop.f32.mrb[25].mxu1  ;;  %v2144_v10 = vadd.f32 %v6284_v38, %v2030_v1  ;;  %v2032_v9 = vpop.f32.mrb[10].mxu0  ;;  %3123 = vmatpush1.bf16.msra.mxu0 %v5722_v2 }
 0x184   :  { %v2185_v11 = vpop.f32.mrb[26].mxu1  ;;  %v2034_v22 = vpop.f32.mrb[11].mxu0  ;;  %3124 = vmatprep.subr.bf16.mxu0 %v5727_v41  ;;  %v5758_v41 = vld [vmem:[#allocation5 + $0x740] ss:$48 sps:$4 sm:$0xff]  }
 0x185   :  { %v6348_v17 = vpop.f32.mrb[27].mxu1  ;;  %v2148_v26 = vadd.f32 %v6286_v47, %v2034_v22  ;;  %2994 = vmatpush1.bf16.msra.mxu1 %v5749_v52  ;;  %v3357_v28 = vrot.slane %v2144_v10, 1  ;;  %v5733_v47 = vld [vmem:[#allocation5 + $0x4ac] ss:$48 sps:$4 sm:$0xff]   ;;  %v5761_v9 = vld [vmem:[#allocation5 + $0x7a0] ss:$48 sps:$4 sm:$0xff]  }
 0x186   :  { %2848 = vmatmul.mubr.bf16.gmra.mrb[116].mxu0 %v6288_v48  ;;  %2995 = vmatprep.subr.bf16.mxu1 %v5754_v27  ;;  %v6372_v52 = vld [vmem:[#allocation2 + $0x4c] ss:$12 sps:$4 sm:$0xff]  }
 0x187   :  { %2921 = vmatmul.mubr.bf16.gmra.mrb[100].mxu1 %v6225_v51  ;;  %v3358_v38 = vrot.slane %v2148_v26, 1  ;;  %3125 = vmatpush1.bf16.msra.mxu0 %v5725_v18 }
 0x188   :  { %2857 = vmatprep.mubr.bf16.mxu0 %v5999_v0  ;;  %3126 = vmatprep.subr.bf16.mxu0 %v5730_v3 }
 0x189   :  { %2930 = vmatprep.mubr.bf16.mxu1 %v6354_v31  ;;  %v3359_v19 = vsel %vm3350_vm0, %v3357_v28, %v3358_v38  ;;  %v2038_v39 = vpop.f32.mrb[12].mxu0  ;;  %2996 = vmatpush1.bf16.msra.mxu1 %v5752_v36  ;;  %v5737_v36 = vld [vmem:[#allocation5 + $0x568] ss:$48 sps:$4 sm:$0xff]  }
 0x18a   :  { %v6358_v42 = vpop.f32.mrb[28].mxu1  ;;  %v6360_v43 = vadd.f32 %v3359_v19, %v2142_v56  ;;  %v2152_v49 = vadd.f32 %v6294_v54, %v2038_v39  ;;  %v2040_v44 = vpop.f32.mrb[13].mxu0  ;;  %2997 = vmatprep.subr.bf16.mxu1 %v5760_v34  ;;  %v5763_v54 = vld [vmem:[#allocation5 + $0x7a4] ss:$48 sps:$4 sm:$0xff]   ;;  %v5739_v56 = vld [vmem:[#allocation5 + $0x56c] ss:$48 sps:$4 sm:$0xff]  }
 0x18b   :  { %v6363_v50 = vpop.f32.mrb[29].mxu1  ;;  %v2154_v14 = vadd.f32 %v6296_v57, %v2040_v44  ;;  %v2042_v58 = vpop.f32.mrb[14].mxu0  ;;  %3127 = vmatpush1.bf16.msra.mxu0 %v5728_v32  ;;  %v5745_v32 = vld [vmem:[#allocation5 + $0x5cc] ss:$48 sps:$4 sm:$0xff]   ;;  %v5769_v19 = vld [vmem:[#allocation5 + $0x804] ss:$48 sps:$4 sm:$0xff]  }
 0x18c   :  { %v2195_v53 = vpop.f32.mrb[30].mxu1  ;;  %v2044_v24 = vpop.f32.mrb[15].mxu0  ;;  %3128 = vmatprep.subr.bf16.mxu0 %v5733_v47  ;;  %v5743_v44 = vld [vmem:[#allocation5 + $0x5c8] ss:$48 sps:$4 sm:$0xff]   ;;  %v5772_v58 = vld [vmem:[#allocation5 + $0x864] ss:$48 sps:$4 sm:$0xff]  }
 0x18d   :  { %v6366_v61 = vpop.f32.mrb[31].mxu1  ;;  %v2158_v2 = vadd.f32 %v6298_v62, %v2044_v24  ;;  %v3360_v16 = vrot.slane %v2154_v14, 1  ;;  %2998 = vmatpush1.bf16.msra.mxu1 %v5758_v41  ;;  %v6391_v14 = vld [vmem:[#allocation2 + $0x64] ss:$12 sps:$4 sm:$0xff]  }
 0x18e   :  { %2858 = vmatmul.mubr.bf16.gmra.mrb[120].mxu0 %v6300_v33  ;;  %2999 = vmatprep.subr.bf16.mxu1 %v5763_v54 }
 0x18f   :  { %2931 = vmatmul.mubr.bf16.gmra.mrb[104].mxu1 %v6231_v59  ;;  %v3361_v57 = vrot.slane %v2158_v2, 1  ;;  %3129 = vmatpush1.bf16.msra.mxu0 %v5731_v60 }
 0x190   :  { %2867 = vmatprep.mubr.bf16.mxu0 %v5999_v0  ;;  %3130 = vmatprep.subr.bf16.mxu0 %v5736_v25 }
 0x191   :  { %2940 = vmatprep.mubr.bf16.mxu1 %v6372_v52  ;;  %v3362_v62 = vsel %vm3350_vm0, %v3360_v16, %v3361_v57  ;;  %v2048_v1 = vpop.f32.mrb[16].mxu0  ;;  %3000 = vmatpush1.bf16.msra.mxu1 %v5761_v9  ;;  %v5770_v9 = vld [vmem:[#allocation5 + $0x860] ss:$48 sps:$4 sm:$0xff]  }
 0x192   :  { %v6376_v10 = vpop.f32.mrb[32].mxu1  ;;  %v6378_v18 = vadd.f32 %v3362_v62, %v2152_v49  ;;  %v2162_v11 = vadd.f32 %v6306_v8, %v2048_v1  ;;  %v2050_v22 = vpop.f32.mrb[17].mxu0  ;;  %v6388_v8 = vld [vmem:[#allocation2 + $0x48] ss:$12 sps:$4 sm:$0xff]   ;;  %3001 = vmatprep.subr.bf16.mxu1 %v5769_v19 }
 0x193   :  { %v6381_v3 = vpop.f32.mrb[33].mxu1  ;;  %v2164_v26 = vadd.f32 %v6309_v55, %v2050_v22  ;;  %v2052_v27 = vpop.f32.mrb[18].mxu0  ;;  %3131 = vmatpush1.bf16.msra.mxu0 %v5734_v45  ;;  %v5767_v55 = vld [vmem:[#allocation5 + $0x800] ss:$48 sps:$4 sm:$0xff]  }
 0x194   :  { %v6384_v28 = vpop.f32.mrb[34].mxu1  ;;  %v2054_v38 = vpop.f32.mrb[19].mxu0  ;;  %3132 = vmatprep.subr.bf16.mxu0 %v5739_v56  ;;  %v5757_v56 = vld [vmem:[#allocation5 + $0x68c] ss:$48 sps:$4 sm:$0xff]   ;;  %v5755_v27 = vld [vmem:[#allocation5 + $0x688] ss:$48 sps:$4 sm:$0xff]  }
 0x195   :  { %v2240_v34 = vpop.f32.mrb[35].mxu1  ;;  %v2168_v47 = vadd.f32 %v6312_v21, %v2054_v38  ;;  %v3363_v39 = vrot.slane %v2164_v26, 1  ;;  %v5748_v21 = vld [vmem:[#allocation5 + $0x62c] ss:$48 sps:$4 sm:$0xff]   ;;  %3002 = vmatpush1.bf16.msra.mxu1 %v5767_v55 }
 0x196   :  { %2868 = vmatmul.mubr.bf16.gmra.mrb[124].mxu0 %v6315_v20  ;;  %3003 = vmatprep.subr.bf16.mxu1 %v5772_v58  ;;  %v6411_v26 = vld [vmem:[#allocation2 + $0x7c] ss:$12 sps:$4 sm:$0xff]  }
 0x197   :  { %2941 = vmatmul.mubr.bf16.gmra.mrb[108].mxu1 %v6388_v8  ;;  %v3364_v49 = vrot.slane %v2168_v47, 1  ;;  %3133 = vmatpush1.bf16.msra.mxu0 %v5737_v36  ;;  %v5764_v58 = vld [vmem:[#allocation5 + $0x6e8] ss:$48 sps:$4 sm:$0xff]  }
 0x198   :  { %2950 = vmatprep.mubr.bf16.mxu1 %v6391_v14  ;;  %3134 = vmatprep.subr.bf16.mxu0 %v5745_v32  ;;  %v5776_v32 = vld [vmem:[#allocation5 + $0x8c0] ss:$48 sps:$4 sm:$0xff]  }
 0x199   :  { %3136 = vmatprep.mubr.bf16.mxu0 %v6215_v37  ;;  %v3365_v20 = vsel %vm3350_vm0, %v3363_v39, %v3364_v49  ;;  %v2058_v60 = vpop.f32.mrb[20].mxu0  ;;  %v5746_v37 = vld [vmem:[#allocation5 + $0x628] ss:$48 sps:$4 sm:$0xff]   ;;  %3004 = vmatpush1.bf16.msra.mxu1 %v5770_v9 }
 0x19a   :  { %v6396_v53 = vpop.f32.mrb[36].mxu1  ;;  %v6398_v24 = vadd.f32 %v3365_v20, %v2162_v11  ;;  %v2172_v25 = vadd.f32 %v6322_v29, %v2058_v60  ;;  %v2060_v2 = vpop.f32.mrb[21].mxu0  ;;  %v6407_v29 = vld [vmem:[#allocation2 + $0x60] ss:$12 sps:$4 sm:$0xff]  }
 0x19b   :  { %v6401_v41 = vpop.f32.mrb[37].mxu1  ;;  %v2174_v54 = vadd.f32 %v6327_v40, %v2060_v2  ;;  %v2062_v16 = vpop.f32.mrb[22].mxu0  ;;  %3135 = vmatpush1.bf16.msra.mxu0 %v5743_v44  ;;  %v5778_v40 = vld [vmem:[#allocation5 + $0x8c4] ss:$48 sps:$4 sm:$0xff]   ;;  %v5775_v60 = vld [vmem:[#allocation5 + $0x74c] ss:$48 sps:$4 sm:$0xff]  }
 0x19c   :  { %v6404_v57 = vpop.f32.mrb[38].mxu1  ;;  %v2064_v45 = vpop.f32.mrb[23].mxu0  ;;  %3217 = vmatprep.subr.bf16.mxu0 %v5748_v21  ;;  %3005 = vmatprep.subr.bf16.mxu1 %v5778_v40  ;;  %v6431_v2 = vld [vmem:[#allocation2 + $0x94] ss:$12 sps:$4 sm:$0xff]   ;;  %v6000_v16 = vmov 0.0  }
 0x19d   :  { %v2250_v62 = vpop.f32.mrb[39].mxu1  ;;  %v2178_v1 = vadd.f32 %v6330_v23, %v2064_v45  ;;  %v3366_v11 = vrot.slane %v2174_v54, 1  ;;  %v5766_v23 = vld [vmem:[#allocation5 + $0x6ec] ss:$48 sps:$4 sm:$0xff]   ;;  %3006 = vmatpush1.bf16.msra.mxu1 %v5776_v32  ;;  %v5773_v54 = vld [vmem:[#allocation5 + $0x748] ss:$48 sps:$4 sm:$0xff]  }
 0x19e   :  { %3137 = vmatmul.mubr.bf16.vlgmr.msra.gmra.mrb[128].mxu0 %v6219_v46  ;;  %5155 = vmatprep.subr.bf16.mxu1 %v6000_v16  ;;  %v5781_v45 = vld [vmem:[#allocation5 + $0x7ac] ss:$48 sps:$4 sm:$0xff]  }
 0x19f   :  { %2951 = vmatmul.mubr.bf16.gmra.mrb[112].mxu1 %v6407_v29  ;;  %v3367_v22 = vrot.slane %v2178_v1, 1  ;;  %3218 = vmatpush1.bf16.msra.mxu0 %v5746_v37  ;;  %v5784_v32 = vld [vmem:[#allocation5 + $0x80c] ss:$48 sps:$4 sm:$0xff]  }
 0x1a0   :  { %2960 = vmatprep.mubr.bf16.mxu1 %v6411_v26  ;;  %3146 = vmatprep.mubr.bf16.mxu0 %v6336_v4 }
 0x1a1   :  { %3219 = vmatprep.subr.bf16.mxu0 %v5757_v56  ;;  %v3368_v36 = vsel %vm3350_vm0, %v3366_v11, %v3367_v22  ;;  %v2068_v38 = vpop.f32.mrb[24].mxu0  ;;  %v3331_v11 = vlaneseq }
 0x1a2   :  { %v6416_v34 = vpop.f32.mrb[40].mxu1  ;;  %v6418_v46 = vadd.f32 %v3368_v36, %v2172_v25  ;;  %v2182_v47 = vadd.f32 %v6340_v6, %v2068_v38  ;;  %v2070_v19 = vpop.f32.mrb[25].mxu0  ;;  %v6427_v25 = vld [vmem:[#allocation2 + $0x78] ss:$12 sps:$4 sm:$0xff]  }
 0x1a3   :  { %v6421_v55 = vpop.f32.mrb[41].mxu1  ;;  %v2184_v39 = vadd.f32 %v6345_v15, %v2070_v19  ;;  %v2072_v4 = vpop.f32.mrb[26].mxu0  ;;  %3220 = vmatpush1.bf16.msra.mxu0 %v5755_v27  ;;  %v6452_v19 = vshrl.u32 %v3331_v11, 7  ;;  %v6477_v11 = vld [vmem:[#allocation2 + $0xa8] ss:$12 sps:$4 sm:$0xff]  }
 0x1a4   :  { %v6424_v49 = vpop.f32.mrb[42].mxu1  ;;  %v2074_v44 = vpop.f32.mrb[27].mxu0  ;;  %3221 = vmatprep.subr.bf16.mxu0 %v5766_v23  ;;  %v5779_v23 = vld [vmem:[#allocation5 + $0x7a8] ss:$48 sps:$4 sm:$0xff]  }
 0x1a5   :  { %v2260_v21 = vpop.f32.mrb[43].mxu1  ;;  %v2188_v20 = vadd.f32 %v6348_v17, %v2074_v44  ;;  %v3369_v6 = vrot.slane %v2184_v39, 1  ;;  %v6454_v39 = vld [vmem:[#allocation2 + $0xac] ss:$12 sps:$4 sm:$0xff]   ;;  %vm3518_vm3 = vcmp.lt.s32.totalorder %v6452_v19, 6  ;;  %vm3880_vm13 = vcmp.lt.s32.totalorder %v6452_v19, 5 }
 0x1a6   :  { %3147 = vmatmul.mubr.bf16.gmra.mrb[132].mxu0 %v6225_v51  ;;  %v5787_v21 = vld [vmem:[#allocation5 + $0x86c] ss:$48 sps:$4 sm:$0xff]   ;;  %vm4545_vm14 = vcmp.lt.s32.totalorder %v6452_v19, 4 }
 0x1a7   :  { %2961 = vmatmul.mubr.bf16.gmra.mrb[116].mxu1 %v6427_v25  ;;  %v3370_v15 = vrot.slane %v2188_v20, 1  ;;  %3156 = vmatprep.mubr.bf16.mxu0 %v6354_v31 }
 0x1a8   :  { %2970 = vmatprep.mubr.bf16.mxu1 %v6431_v2  ;;  %3222 = vmatpush1.bf16.msra.mxu0 %v5764_v58 }
 0x1a9   :  { %v3371_v17 = vsel %vm3350_vm0, %v3369_v6, %v3370_v15  ;;  %v2078_v37 = vpop.f32.mrb[28].mxu0  ;;  %3223 = vmatprep.subr.bf16.mxu0 %v5775_v60 }
 0x1aa   :  { %v6437_v56 = vpop.f32.mrb[44].mxu1  ;;  %v6439_v51 = vadd.f32 %v3371_v17, %v2182_v47  ;;  %v2192_v62 = vadd.f32 %v6358_v42, %v2078_v37  ;;  %v2080_v1 = vpop.f32.mrb[29].mxu0  ;;  %v6448_v47 = vld [vmem:[#allocation2 + $0x90] ss:$12 sps:$4 sm:$0xff]  }
 0x1ab   :  { %v6442_v9 = vpop.f32.mrb[45].mxu1  ;;  %v2194_v31 = vadd.f32 %v6363_v50, %v2080_v1  ;;  %v2082_v40 = vpop.f32.mrb[30].mxu0 }
 0x1ac   :  { %v6445_v22 = vpop.f32.mrb[46].mxu1  ;;  %v2084_v27 = vpop.f32.mrb[31].mxu0  ;;  %3224 = vmatpush1.bf16.msra.mxu0 %v5773_v54  ;;  %v6470_v54 = vsub.s32 0, %v6452_v19 }
 0x1ad   :  { %v2270_v36 = vpop.f32.mrb[47].mxu1  ;;  %v2198_v38 = vadd.f32 %v6366_v61, %v2084_v27  ;;  %3225 = vmatprep.subr.bf16.mxu0 %v5781_v45  ;;  %v3372_v42 = vrot.slane %v2194_v31, 1  ;;  %v5782_v61 = vld [vmem:[#allocation5 + $0x808] ss:$48 sps:$4 sm:$0xff]   ;;  %v6475_v45 = vld [vmem:[#allocation7] sm:$0x7] }
 0x1ae   :  { %3157 = vmatmul.mubr.bf16.gmra.mrb[136].mxu0 %v6231_v59  ;;  %v5790_v31 = vld [vmem:[#allocation5 + $0x8cc] ss:$48 sps:$4 sm:$0xff]  }
 0x1af   :  { %2971 = vmatmul.mubr.bf16.gmra.mrb[120].mxu1 %v6448_v47  ;;  %v3373_v50 = vrot.slane %v2198_v38, 1  ;;  %3166 = vmatprep.mubr.bf16.mxu0 %v6372_v52 }
 0x1b0   :  { %2980 = vmatprep.mubr.bf16.mxu1 %v6454_v39  ;;  %3226 = vmatpush1.bf16.msra.mxu0 %v5779_v23  ;;  %v5788_v23 = vld [vmem:[#allocation5 + $0x8c8] ss:$48 sps:$4 sm:$0xff]  }
 0x1b1   :  { %v3374_v4 = vsel %vm3350_vm0, %v3372_v42, %v3373_v50  ;;  %v2347_v44 = vpop.f32.mrb[32].mxu0  ;;  %3227 = vmatprep.subr.bf16.mxu0 %v5784_v32 }
 0x1b2   :  { %v6459_v58 = vpop.f32.mrb[48].mxu1  ;;  %v6461_v59 = vadd.f32 %v3374_v4, %v2192_v62  ;;  %v2348_v20 = vadd.f32 %v2347_v44, %v6376_v10  ;;  %v2349_v60 = vpop.f32.mrb[33].mxu0  ;;  %v5785_v10 = vld [vmem:[#allocation5 + $0x868] ss:$48 sps:$4 sm:$0xff]  }
 0x1b3   :  { %v6464_v6 = vpop.f32.mrb[49].mxu1  ;;  %v6467_v15 = vadd.f32 %v2349_v60, %v6381_v3  ;;  %v2351_v52 = vpop.f32.mrb[34].mxu0 }
 0x1b4   :  { %v6472_v17 = vpop.f32.mrb[50].mxu1  ;;  %v2352_v37 = vadd.f32 %v2351_v52, %v6384_v28  ;;  %v2353_v62 = vpop.f32.mrb[35].mxu0  ;;  %3228 = vmatpush1.bf16.msra.mxu0 %v5782_v61  ;;  %v3424_v40 = vrot.slane %v2348_v20, 2  ;;  %v6483_v28 = vrot.slane %v6475_v45, %v6470_v54 }
 0x1b5   :  { %v2280_v1 = vpop.f32.mrb[51].mxu1  ;;  %3229 = vmatprep.subr.bf16.mxu0 %v5787_v21 }
 0x1b6   :  { %v3425_v3 = vrot.slane %v2352_v37, 2  ;;  %3167 = vmatmul.mubr.bf16.gmra.mrb[140].mxu0 %v6388_v8 }
 0x1b7   :  { %2981 = vmatmul.mubr.bf16.gmra.mrb[124].mxu1 %v6477_v11  ;;  %3176 = vmatprep.mubr.bf16.mxu0 %v6391_v14 }
 0x1b8   :  { %3023 = vmatprep.mubr.bf16.mxu1 %v5999_v0  ;;  %v3426_v27 = vsel %vm3423_vm1, %v3424_v40, %v3425_v3  ;;  %3230 = vmatpush1.bf16.msra.mxu0 %v5785_v10 }
 0x1b9   :  { %v3464_v36 = vadd.f32 %v3426_v27, %v6324_v35  ;;  %v2357_v38 = vpop.f32.mrb[36].mxu0  ;;  %3231 = vmatprep.subr.bf16.mxu0 %v5790_v31 }
 0x1ba   :  { %v6489_v32 = vpop.f32.mrb[52].mxu1  ;;  %v2358_v8 = vadd.f32 %v2357_v38, %v6396_v53  ;;  %v2359_v42 = vpop.f32.mrb[37].mxu0  ;;  %v6001_v53 = vmov -inf  }
 0x1bb   :  { %v6492_v50 = vpop.f32.mrb[53].mxu1  ;;  %v3486_v61 = vadd.f32 %v6483_v28, %v3464_v36  ;;  %v6496_v14 = vadd.f32 %v2359_v42, %v6401_v41  ;;  %v2361_v4 = vpop.f32.mrb[38].mxu0  ;;  %v6503_v52 = vsel %vm3536_vm2, 0.0, %v6001_v53 }
 0x1bc   :  { %v6498_v44 = vpop.f32.mrb[54].mxu1  ;;  %v2362_v35 = vadd.f32 %v2361_v4, %v6404_v57  ;;  %v2363_v21 = vpop.f32.mrb[39].mxu0  ;;  %3232 = vmatpush1.bf16.msra.mxu0 %v5788_v23  ;;  %v3427_v37 = vrot.slane %v2358_v8, 2 }
 0x1bd   :  { %v2290_v20 = vpop.f32.mrb[55].mxu1  ;;  %v3502_v60 = vmax.f32 %v3486_v61, 0.0  ;;  %5175 = vmatprep.subr.bf16.mxu0 %v6000_v16 }
 0x1be   :  { %v3428_v41 = vrot.slane %v2362_v35, 2  ;;  %3177 = vmatmul.mubr.bf16.gmra.mrb[144].mxu0 %v6407_v29 }
 0x1bf   :  { %3024 = vmatmul.mubr.bf16.vlgmr.msra.gmra.mrb[96].mxu1 %v6240_v5  ;;  %v3520_v62 = vsel %vm3518_vm3, %v3502_v60, 0.0  ;;  %3186 = vmatprep.mubr.bf16.mxu0 %v6411_v26 }
 0x1c0   :  { %3033 = vmatprep.mubr.bf16.mxu1 %v5999_v0  ;;  %v3538_v57 = vmax.f32 %v3520_v62, %v6503_v52  ;;  %v3429_v1 = vsel %vm3423_vm1, %v3427_v37, %v3428_v41 }
 0x1c1   :  { %v3466_v10 = vadd.f32 %v3429_v1, %v6342_v12  ;;  %v2367_v31 = vpop.f32.mrb[40].mxu0 }
 0x1c2   :  { %v6515_v40 = vpop.f32.mrb[56].mxu1  ;;  %v3539_v3 = vrot.slane %v3538_v57, 4  ;;  %v2368_v5 = vadd.f32 %v2367_v31, %v6416_v34  ;;  %v2369_v29 = vpop.f32.mrb[41].mxu0 }
 0x1c3   :  { %v6518_v27 = vpop.f32.mrb[57].mxu1  ;;  %v3488_v23 = vadd.f32 %v6483_v28, %v3466_v10  ;;  %v6522_v36 = vadd.f32 %v2369_v29, %v6421_v55  ;;  %v2371_v26 = vpop.f32.mrb[42].mxu0 }
 0x1c4   :  { %v6524_v38 = vpop.f32.mrb[58].mxu1  ;;  %v3540_v8 = vmax.f32 %v3538_v57, %v3539_v3  ;;  %v2372_v12 = vadd.f32 %v2371_v26, %v6424_v49  ;;  %v2373_v42 = vpop.f32.mrb[43].mxu0  ;;  %v3430_v21 = vrot.slane %v2368_v5, 2 }
 0x1c5   :  { %v2300_v61 = vpop.f32.mrb[59].mxu1  ;;  %v3504_v4 = vmax.f32 %v3488_v23, 0.0 }
 0x1c6   :  { %v3541_v35 = vrot.slane %v3540_v8, 2  ;;  %v3431_v34 = vrot.slane %v2372_v12, 2  ;;  %3187 = vmatmul.mubr.bf16.gmra.mrb[148].mxu0 %v6427_v25 }
 0x1c7   :  { %3034 = vmatmul.mubr.bf16.gmra.mrb[100].mxu1 %v6246_v63  ;;  %v3522_v55 = vsel %vm3518_vm3, %v3504_v4, 0.0  ;;  %3196 = vmatprep.mubr.bf16.mxu0 %v6431_v2 }
 0x1c8   :  { %3043 = vmatprep.mubr.bf16.mxu1 %v5999_v0  ;;  %v3542_v20 = vmax.f32 %v3540_v8, %v3541_v35  ;;  %v3546_v49 = vmax.f32 %v3522_v55, %v6503_v52  ;;  %v3432_v60 = vsel %vm3423_vm1, %v3430_v21, %v3431_v34 }
 0x1c9   :  { %v3468_v53 = vadd.f32 %v3432_v60, %v6360_v43  ;;  %v2377_v37 = vpop.f32.mrb[44].mxu0 }
 0x1ca   :  { %v6536_v41 = vpop.f32.mrb[60].mxu1  ;;  %v3547_v63 = vrot.slane %v3546_v49, 4  ;;  %v2378_v25 = vadd.f32 %v2377_v37, %v6437_v56  ;;  %v2379_v62 = vpop.f32.mrb[45].mxu0  ;;  %v3543_v1 = vrot.slane %v3542_v20, 1 }
 0x1cb   :  { %v6539_v57 = vpop.f32.mrb[61].mxu1  ;;  %v3490_v10 = vadd.f32 %v6483_v28, %v3468_v53  ;;  %v6543_v2 = vadd.f32 %v2379_v62, %v6442_v9  ;;  %v2381_v31 = vpop.f32.mrb[46].mxu0 }
 0x1cc   :  { %v6545_v3 = vpop.f32.mrb[62].mxu1  ;;  %v3548_v5 = vmax.f32 %v3546_v49, %v3547_v63  ;;  %v2382_v43 = vadd.f32 %v2381_v31, %v6445_v22  ;;  %v2383_v29 = vpop.f32.mrb[47].mxu0  ;;  %v3433_v56 = vrot.slane %v2378_v25, 2  ;;  %v3544_v42 = vmax.f32 %v3542_v20, %v3543_v1 }
 0x1cd   :  { %v2310_v23 = vpop.f32.mrb[63].mxu1  ;;  %v3506_v26 = vmax.f32 %v3490_v10, 0.0 }
 0x1ce   :  { %v3549_v8 = vrot.slane %v3548_v5, 2  ;;  %v3434_v12 = vrot.slane %v2382_v43, 2  ;;  %3197 = vmatmul.mubr.bf16.gmra.mrb[152].mxu0 %v6448_v47  ;;  %v3601_v20 = vpack.c.bf16 %v3544_v42, %v3544_v42 }
 0x1cf   :  { %3044 = vmatmul.mubr.bf16.gmra.mrb[104].mxu1 %v6252_v13  ;;  %v3524_v9 = vsel %vm3518_vm3, %v3506_v26, 0.0  ;;  %3206 = vmatprep.mubr.bf16.mxu0 %v6454_v39 }
 0x1d0   :  { %3053 = vmatprep.mubr.bf16.mxu1 %v5999_v0  ;;  %v3550_v61 = vmax.f32 %v3548_v5, %v3549_v8  ;;  %v3554_v22 = vmax.f32 %v3524_v9, %v6503_v52  ;;  %v3435_v4 = vsel %vm3423_vm1, %v3433_v56, %v3434_v12 }
 0x1d1   :  { %v3470_v35 = vadd.f32 %v3435_v4, %v6378_v18  ;;  %v2387_v21 = vpop.f32.mrb[48].mxu0 }
 0x1d2   :  { %v3551_v34 = vrot.slane %v3550_v61, 1  ;;  %v3555_v13 = vrot.slane %v3554_v22, 4  ;;  %v2388_v47 = vadd.f32 %v2387_v21, %v6459_v58  ;;  %v2389_v55 = vpop.f32.mrb[49].mxu0  ;;  %v4114_v58 = vunpack.c.l.b16 %v3601_v20 }
 0x1d3   :  { %v3492_v49 = vadd.f32 %v6483_v28, %v3470_v35  ;;  %v6560_v60 = vadd.f32 %v2389_v55, %v6464_v6  ;;  %v2391_v39 = vpop.f32.mrb[50].mxu0 }
 0x1d4   :  { %v3552_v53 = vmax.f32 %v3550_v61, %v3551_v34  ;;  %v3556_v37 = vmax.f32 %v3554_v22, %v3555_v13  ;;  %v2392_v63 = vadd.f32 %v2391_v39, %v6472_v17  ;;  %v2393_v25 = vpop.f32.mrb[51].mxu0  ;;  %v3436_v10 = vrot.slane %v2388_v47, 2 }
 0x1d5   :  { %v3508_v62 = vmax.f32 %v3492_v49, 0.0 }
 0x1d6   :  { %v3602_v18 = vpack.c.bf16 %v3552_v53, %v3552_v53  ;;  %v3557_v1 = vrot.slane %v3556_v37, 2  ;;  %v3437_v31 = vrot.slane %v2392_v63, 2  ;;  %3207 = vmatmul.mubr.bf16.gmra.mrb[156].mxu0 %v6477_v11 }
 0x1d7   :  { %3054 = vmatmul.mubr.bf16.gmra.mrb[108].mxu1 %v6264_v7  ;;  %v3526_v6 = vsel %vm3518_vm3, %v3508_v62, 0.0  ;;  %3249 = vmatprep.mubr.bf16.mxu0 %v5999_v0 }
 0x1d8   :  { %3063 = vmatprep.mubr.bf16.mxu1 %v5999_v0  ;;  %v4115_v17 = vunpack.c.l.b16 %v3602_v18  ;;  %v3558_v5 = vmax.f32 %v3556_v37, %v3557_v1  ;;  %v3562_v43 = vmax.f32 %v3526_v6, %v6503_v52  ;;  %v3438_v29 = vsel %vm3423_vm1, %v3436_v10, %v3437_v31  ;;  %v5792_v37 = vld [vmem:[#allocation8 + $0x8] sm:$0xff]  }
 0x1d9   :  { %v3472_v23 = vadd.f32 %v3438_v29, %v6398_v24  ;;  %v2397_v7 = vpop.f32.mrb[52].mxu0  ;;  %v5791_v24 = vld [vmem:[#allocation8] sm:$0xff]   ;;  %v5793_v29 = vld [vmem:[#allocation8 + $0x10] sm:$0xff]  }
 0x1da   :  { %v4122_v11 = vsel %vm4002_vm4, %v4115_v17, %v4114_v58  ;;  %v3559_v26 = vrot.slane %v3558_v5, 1  ;;  %v3563_v8 = vrot.slane %v3562_v43, 4  ;;  %v2398_v56 = vadd.f32 %v2397_v7, %v6489_v32  ;;  %v2399_v12 = vpop.f32.mrb[53].mxu0  ;;  %v5839_v32 = vld [vmem:[#allocation2 + $0x8] ss:$12 sps:$4 sm:$0xff]  }
 0x1db   :  { %v3494_v42 = vadd.f32 %v6483_v28, %v3472_v23  ;;  %v6576_v9 = vadd.f32 %v2399_v12, %v6492_v50  ;;  %v2401_v61 = vpop.f32.mrb[54].mxu0 }
 0x1dc   :  { %v3560_v22 = vmax.f32 %v3558_v5, %v3559_v26  ;;  %v3564_v4 = vmax.f32 %v3562_v43, %v3563_v8  ;;  %v2402_v35 = vadd.f32 %v2401_v61, %v6498_v44  ;;  %v2403_v21 = vpop.f32.mrb[55].mxu0  ;;  %v3439_v55 = vrot.slane %v2398_v56, 2  ;;  %v5840_v8 = vld [vmem:[#allocation2 + $0x20] ss:$12 sps:$4 sm:$0xff]  }
 0x1dd   :  { %v3510_v34 = vmax.f32 %v3494_v42, 0.0  ;;  %v5794_v61 = vld [vmem:[#allocation8 + $0x18] sm:$0xff]  }
 0x1de   :  { %v3603_v13 = vpack.c.bf16 %v3560_v22, %v3560_v22  ;;  %v3565_v47 = vrot.slane %v3564_v4, 2  ;;  %v3440_v20 = vrot.slane %v2402_v35, 2  ;;  %3250 = vmatmul.mubr.bf16.vlgmr.msra.gmra.mrb[128].mxu0 %v5839_v32 }
 0x1df   :  { %3064 = vmatmul.mubr.bf16.gmra.mrb[112].mxu1 %v6276_v30  ;;  %v3528_v50 = vsel %vm3518_vm3, %v3510_v34, 0.0  ;;  %3259 = vmatprep.mubr.bf16.mxu0 %v5999_v0 }
 0x1e0   :  { %3073 = vmatprep.mubr.bf16.mxu1 %v5999_v0  ;;  %v4116_v44 = vunpack.c.l.b16 %v3603_v13  ;;  %v3566_v49 = vmax.f32 %v3564_v4, %v3565_v47  ;;  %v3570_v39 = vmax.f32 %v3528_v50, %v6503_v52  ;;  %v3441_v53 = vsel %vm3423_vm1, %v3439_v55, %v3440_v20  ;;  %5176 = vmatpush3.bf16.msra.mxu0 %v5791_v24 }
 0x1e1   :  { %v3474_v30 = vadd.f32 %v3441_v53, %v6418_v46  ;;  %v2407_v63 = vpop.f32.mrb[56].mxu0  ;;  %5177 = vmatprep.subr.bf16.mxu0 %v6000_v16 }
 0x1e2   :  { %v3567_v25 = vrot.slane %v3566_v49, 1  ;;  %v3571_v62 = vrot.slane %v3570_v39, 4  ;;  %v2408_v18 = vadd.f32 %v2407_v63, %v6515_v40  ;;  %v2409_v1 = vpop.f32.mrb[57].mxu0  ;;  %v4123_v10 = vsel %vm4004_vm5, %v4116_v44, %v4122_v11  ;;  %v5795_v44 = vld [vmem:[#allocation8 + $0x20] sm:$0xff]  }
 0x1e3   :  { %v3496_v31 = vadd.f32 %v6483_v28, %v3474_v30  ;;  %v6592_v58 = vadd.f32 %v2409_v1, %v6518_v27  ;;  %v2411_v6 = vpop.f32.mrb[58].mxu0  ;;  %v5796_v1 = vld [vmem:[#allocation8 + $0x28] sm:$0xff]  }
 0x1e4   :  { %v3568_v17 = vmax.f32 %v3566_v49, %v3567_v25  ;;  %v3572_v5 = vmax.f32 %v3570_v39, %v3571_v62  ;;  %v2412_v46 = vadd.f32 %v2411_v6, %v6524_v38  ;;  %v2413_v43 = vpop.f32.mrb[59].mxu0  ;;  %5178 = vmatpush3.bf16.msra.mxu0 %v5792_v37  ;;  %v3442_v26 = vrot.slane %v2408_v18, 2 }
 0x1e5   :  { %v3512_v23 = vmax.f32 %v3496_v31, 0.0  ;;  %5179 = vmatprep.subr.bf16.mxu0 %v6000_v16  ;;  %v5800_v31 = vld [vmem:[#allocation8 + $0x48] sm:$0xff]  }
 0x1e6   :  { %v3604_v40 = vpack.c.bf16 %v3568_v17, %v3568_v17  ;;  %v3573_v7 = vrot.slane %v3572_v5, 2  ;;  %v3443_v11 = vrot.slane %v2412_v46, 2  ;;  %3260 = vmatmul.mubr.bf16.gmra.mrb[132].mxu0 %v5840_v8 }
 0x1e7   :  { %3074 = vmatmul.mubr.bf16.gmra.mrb[116].mxu1 %v6288_v48  ;;  %v3530_v27 = vsel %vm3518_vm3, %v3512_v23, 0.0  ;;  %3269 = vmatprep.mubr.bf16.mxu0 %v5999_v0 }
 0x1e8   :  { %3083 = vmatprep.mubr.bf16.mxu1 %v5999_v0  ;;  %v4117_v38 = vunpack.c.l.b16 %v3604_v40  ;;  %v3574_v56 = vmax.f32 %v3572_v5, %v3573_v7  ;;  %v3578_v12 = vmax.f32 %v3530_v27, %v6503_v52  ;;  %v3444_v42 = vsel %vm3423_vm1, %v3442_v26, %v3443_v11  ;;  %5180 = vmatpush3.bf16.msra.mxu0 %v5793_v29  ;;  %v5797_v7 = vld [vmem:[#allocation8 + $0x30] sm:$0xff]  }
 0x1e9   :  { %v3476_v48 = vadd.f32 %v3444_v42, %v6439_v51  ;;  %v2417_v22 = vpop.f32.mrb[60].mxu0  ;;  %5181 = vmatprep.subr.bf16.mxu0 %v6000_v16  ;;  %v5801_v11 = vld [vmem:[#allocation8 + $0x50] sm:$0xff]  }
 0x1ea   :  { %v3575_v4 = vrot.slane %v3574_v56, 1  ;;  %v3579_v35 = vrot.slane %v3578_v12, 4  ;;  %v2418_v21 = vadd.f32 %v2417_v22, %v6536_v41  ;;  %v2419_v24 = vpop.f32.mrb[61].mxu0  ;;  %v4124_v34 = vsel %vm4006_vm6, %v4117_v38, %v4123_v10  ;;  %v5799_v41 = vld [vmem:[#allocation8 + $0x40] sm:$0xff]   ;;  %v6633_v38 = vld [vmem:[#allocation2 + $0xb0] ss:$12 sps:$4 sm:$0xff]  }
 0x1eb   :  { %v3498_v13 = vadd.f32 %v6483_v28, %v3476_v48  ;;  %v6609_v47 = vadd.f32 %v2419_v24, %v6539_v57  ;;  %v2421_v55 = vpop.f32.mrb[62].mxu0  ;;  %v5841_v57 = vld [vmem:[#allocation2 + $0x38] ss:$12 sps:$4 sm:$0xff]   ;;  %5156 = vmatpush3.bf16.msra.mxu1 %v5799_v41  ;;  %v5798_v48 = vld [vmem:[#allocation8 + $0x38] sm:$0xff]  }
 0x1ec   :  { %v3576_v20 = vmax.f32 %v3574_v56, %v3575_v4  ;;  %v3580_v32 = vmax.f32 %v3578_v12, %v3579_v35  ;;  %v2422_v51 = vadd.f32 %v2421_v55, %v6545_v3  ;;  %v2423_v50 = vpop.f32.mrb[63].mxu0  ;;  %5182 = vmatpush3.bf16.msra.mxu0 %v5794_v61  ;;  %v3445_v37 = vrot.slane %v2418_v21, 2  ;;  %5157 = vmatprep.subr.bf16.mxu1 %v6000_v16  ;;  %v5802_v4 = vld [vmem:[#allocation8 + $0x58] sm:$0xff]  }
 0x1ed   :  { %v3514_v49 = vmax.f32 %v3498_v13, 0.0  ;;  %5183 = vmatprep.subr.bf16.mxu0 %v6000_v16 }
 0x1ee   :  { %v3605_v39 = vpack.c.bf16 %v3576_v20, %v3576_v20  ;;  %v3581_v53 = vrot.slane %v3580_v32, 2  ;;  %v3446_v30 = vrot.slane %v2422_v51, 2  ;;  %3270 = vmatmul.mubr.bf16.gmra.mrb[136].mxu0 %v5841_v57  ;;  %v5803_v51 = vld [vmem:[#allocation8 + $0x60] sm:$0xff]  }
 0x1ef   :  { %3084 = vmatmul.mubr.bf16.gmra.mrb[120].mxu1 %v6300_v33  ;;  %v3532_v63 = vsel %vm3518_vm3, %v3514_v49, 0.0  ;;  %3279 = vmatprep.mubr.bf16.mxu0 %v5999_v0  ;;  %v5844_v49 = vld [vmem:[#allocation2 + $0x68] ss:$12 sps:$4 sm:$0xff]  }
 0x1f0   :  { %3093 = vmatprep.mubr.bf16.mxu1 %v5999_v0  ;;  %v4118_v3 = vunpack.c.l.b16 %v3605_v39  ;;  %v3582_v25 = vmax.f32 %v3580_v32, %v3581_v53  ;;  %v3586_v62 = vmax.f32 %v3532_v63, %v6503_v52  ;;  %v3447_v18 = vsel %vm3423_vm1, %v3445_v37, %v3446_v30  ;;  %5184 = vmatpush3.bf16.msra.mxu0 %v5795_v44  ;;  %v5804_v37 = vld [vmem:[#allocation8 + $0x68] sm:$0xff]  }
 0x1f1   :  { %v3478_v33 = vadd.f32 %v3447_v18, %v6461_v59  ;;  %v6621_v10 = vpop.f32.mrb[64].mxu0  ;;  %5185 = vmatprep.subr.bf16.mxu0 %v6000_v16  ;;  %5158 = vmatpush3.bf16.msra.mxu1 %v5800_v31  ;;  %v5805_v18 = vld [vmem:[#allocation8 + $0x70] sm:$0xff]  }
 0x1f2   :  { %v3583_v6 = vrot.slane %v3582_v25, 1  ;;  %v3587_v17 = vrot.slane %v3586_v62, 4  ;;  %v6625_v5 = vpop.f32.mrb[65].mxu0  ;;  %v4125_v46 = vsel %vm4008_vm7, %v4118_v3, %v4124_v34  ;;  %5159 = vmatprep.subr.bf16.mxu1 %v6000_v16 }
 0x1f3   :  { %v3500_v43 = vadd.f32 %v6483_v28, %v3478_v33  ;;  %v6629_v29 = vpop.f32.mrb[66].mxu0  ;;  %v5843_v28 = vld [vmem:[#allocation2 + $0x50] ss:$12 sps:$4 sm:$0xff]  }
 0x1f4   :  { %v3584_v23 = vmax.f32 %v3582_v25, %v3583_v6  ;;  %v3588_v40 = vmax.f32 %v3586_v62, %v3587_v17  ;;  %v2692_v59 = vpop.f32.mrb[67].mxu0  ;;  %5186 = vmatpush3.bf16.msra.mxu0 %v5796_v1  ;;  %v5845_v1 = vld [vmem:[#allocation2 + $0x80] ss:$12 sps:$4 sm:$0xff]  }
 0x1f5   :  { %v3516_v26 = vmax.f32 %v3500_v43, 0.0  ;;  %5187 = vmatprep.subr.bf16.mxu0 %v6000_v16  ;;  %5160 = vmatpush3.bf16.msra.mxu1 %v5801_v11  ;;  %v5806_v6 = vld [vmem:[#allocation8 + $0x78] sm:$0xff]   ;;  %v5846_v59 = vld [vmem:[#allocation2 + $0x98] ss:$12 sps:$4 sm:$0xff]  }
 0x1f6   :  { %v3606_v8 = vpack.c.bf16 %v3584_v23, %v3584_v23  ;;  %v3589_v27 = vrot.slane %v3588_v40, 2  ;;  %3280 = vmatmul.mubr.bf16.gmra.mrb[140].mxu0 %v5843_v28  ;;  %5161 = vmatprep.subr.bf16.mxu1 %v6000_v16 }
 0x1f7   :  { %3094 = vmatmul.mubr.bf16.gmra.mrb[124].mxu1 %v6633_v38  ;;  %v3534_v56 = vsel %vm3518_vm3, %v3516_v26, 0.0  ;;  %3289 = vmatprep.mubr.bf16.mxu0 %v5999_v0 }
 0x1f8   :  { %5171 = vmatprep.mubr.msk.bf16.mxu1 %vm6002_vm9, %v6000_v16  ;;  %v4119_v12 = vunpack.c.l.b16 %v3606_v8  ;;  %v3590_v42 = vmax.f32 %v3588_v40, %v3589_v27  ;;  %v3594_v61 = vmax.f32 %v3534_v56, %v6503_v52  ;;  %5188 = vmatpush3.bf16.msra.mxu0 %v5797_v7 }
 0x1f9   :  { %v6642_v22 = vpop.f32.mrb[68].mxu0  ;;  %5189 = vmatprep.subr.bf16.mxu0 %v6000_v16  ;;  %5162 = vmatpush3.bf16.msra.mxu1 %v5802_v4 }
 0x1fa   :  { %v3591_v35 = vrot.slane %v3590_v42, 1  ;;  %v3595_v21 = vrot.slane %v3594_v61, 4  ;;  %v6646_v24 = vpop.f32.mrb[69].mxu0  ;;  %v4126_v34 = vsel %vm4010_vm8, %v4119_v12, %v4125_v46  ;;  %5163 = vmatprep.subr.bf16.mxu1 %v6000_v16 }
 0x1fb   :  { %v6649_v13 = vpop.f32.mrb[70].mxu0 }
 0x1fc   :  { %v3592_v55 = vmax.f32 %v3590_v42, %v3591_v35  ;;  %v3596_v20 = vmax.f32 %v3594_v61, %v3595_v21  ;;  %v2702_v32 = vpop.f32.mrb[71].mxu0  ;;  %5190 = vmatpush3.bf16.msra.mxu0 %v5798_v48 }
 0x1fd   :  { %5164 = vmatpush3.bf16.msra.mxu1 %v5803_v51 }
 0x1fe   :  { %v3607_v50 = vpack.c.bf16 %v3592_v55, %v3592_v55  ;;  %v3597_v44 = vrot.slane %v3596_v20, 2  ;;  %3290 = vmatmul.mubr.bf16.gmra.mrb[144].mxu0 %v5844_v49  ;;  %5165 = vmatprep.subr.bf16.mxu1 %v6000_v16 }
 0x1ff   :  { %3299 = vmatprep.mubr.bf16.mxu0 %v5999_v0 }
 0x200   :  { %v3598_v41 = vmax.f32 %v3596_v20, %v3597_v44  ;;  %v4120_v39 = vunpack.c.l.b16 %v3607_v50 }
 0x201   :  { %v6653_v53 = vpop.f32.mrb[72].mxu0  ;;  %5166 = vmatpush3.bf16.msra.mxu1 %v5804_v37 }
 0x202   :  { %v3599_v30 = vrot.slane %v3598_v41, 1  ;;  %v6656_v57 = vpop.f32.mrb[73].mxu0  ;;  %v4127_v63 = vsel %vm4012_vm10, %v4120_v39, %v4126_v34  ;;  %5167 = vmatprep.subr.bf16.mxu1 %v6000_v16 }
 0x203   :  { %v6659_v3 = vpop.f32.mrb[74].mxu0 }
 0x204   :  { %v2712_v25 = vpop.f32.mrb[75].mxu0  ;;  %v3600_v62 = vmax.f32 %v3598_v41, %v3599_v30 }
 0x205   :  { %5168 = vmatpush3.bf16.msra.mxu1 %v5805_v18 }
 0x206   :  { %3300 = vmatmul.mubr.bf16.gmra.mrb[148].mxu0 %v5845_v1  ;;  %v3608_v33 = vpack.c.bf16 %v3600_v62, %v3600_v62  ;;  %5169 = vmatprep.subr.bf16.mxu1 %v6000_v16 }
 0x207   :  { %3309 = vmatprep.mubr.bf16.mxu0 %v5999_v0 }
 0x208   :  { %v4121_v31 = vunpack.c.l.b16 %v3608_v33 }
 0x209   :  { %v6663_v17 = vpop.f32.mrb[76].mxu0  ;;  %5170 = vmatpush3.bf16.msra.mxu1 %v5806_v6 }
 0x20a   :  { %v6666_v46 = vpop.f32.mrb[77].mxu0  ;;  %v4128_v43 = vsel %vm4014_vm11, %v4121_v31, %v4127_v63  ;;  %5195 = vmatprep.subr.bf16.mxu1 %v6000_v16 }
 0x20b   :  { %v6669_v23 = vpop.f32.mrb[78].mxu0  ;;  %v4129_v39 = vpack.c.b16 %v4128_v43, %v4128_v43 }
 0x20c   :  { %v2722_v40 = vpop.f32.mrb[79].mxu0 }
 0x20e   :  { %3310 = vmatmul.mubr.bf16.gmra.mrb[152].mxu0 %v5846_v59 }
 0x20f   :  { %3319 = vmatprep.mubr.bf16.mxu0 %v5999_v0 }
 0x211   :  { %v6673_v26 = vpop.f32.mrb[80].mxu0 }
 0x212   :  { %v2573_v7 = vpop.f32.mrb[64].mxu1  ;;  %v6675_v8 = vpop.f32.mrb[81].mxu0 }
 0x213   :  { %v2575_v11 = vpop.f32.mrb[65].mxu1  ;;  %v6677_v28 = vpop.f32.mrb[82].mxu0  ;;  %v3641_v56 = vrot.slane %v2573_v7, 1 }
 0x214   :  { %v2577_v27 = vpop.f32.mrb[66].mxu1  ;;  %v2732_v61 = vpop.f32.mrb[83].mxu0  ;;  %v3713_v48 = vrot.slane %v2575_v11, 2 }
 0x215   :  { %v3642_v12 = vrot.slane %v2577_v27, 1  ;;  %v2579_v42 = vpop.f32.mrb[67].mxu1 }
 0x216   :  { %v3714_v4 = vrot.slane %v2579_v42, 2  ;;  %3320 = vmatmul.mubr.bf16.gmra.mrb[156].mxu0 %v6633_v38 }
 0x217   :  { %v3643_v35 = vsel %vm3350_vm0, %v3641_v56, %v3642_v12  ;;  %5191 = vmatprep.mubr.msk.bf16.mxu0 %vm6002_vm9, %v6000_v16 }
 0x218   :  { %v3681_v0 = vadd.f32 %v3643_v35, %v6467_v15  ;;  %v3715_v21 = vsel %vm3423_vm1, %v3713_v48, %v3714_v4 }
 0x219   :  { %v6687_v20 = vpop.f32.mrb[84].mxu0 }
 0x21a   :  { %v6685_v34 = vadd.f32 %v3715_v21, %v3681_v0  ;;  %v2583_v55 = vpop.f32.mrb[68].mxu1  ;;  %v6689_v51 = vpop.f32.mrb[85].mxu0 }
 0x21b   :  { %v2585_v32 = vpop.f32.mrb[69].mxu1  ;;  %v6691_v44 = vpop.f32.mrb[86].mxu0  ;;  %v3644_v49 = vrot.slane %v2583_v55, 1 }
 0x21c   :  { %v2587_v50 = vpop.f32.mrb[70].mxu1  ;;  %v2742_v15 = vpop.f32.mrb[87].mxu0  ;;  %v3716_v37 = vrot.slane %v2585_v32, 2 }
 0x21d   :  { %v3645_v38 = vrot.slane %v2587_v50, 1  ;;  %v2589_v41 = vpop.f32.mrb[71].mxu1 }
 0x21e   :  { %v3717_v30 = vrot.slane %v2589_v41, 2  ;;  %5192 = vmatmul.mubr.bf16.vlgmr.msra.gmra.mrb[160].mxu0 %v4129_v39 }
 0x21f   :  { %v3646_v63 = vsel %vm3350_vm0, %v3644_v49, %v3645_v38 }
 0x220   :  { %v3683_v25 = vadd.f32 %v3646_v63, %v6496_v14  ;;  %v3718_v62 = vsel %vm3423_vm1, %v3716_v37, %v3717_v30 }
 0x221   :  { %v6698_v33 = vpop.f32.mrb[88].mxu0 }
 0x222   :  { %v6696_v18 = vadd.f32 %v3718_v62, %v3683_v25  ;;  %v2593_v1 = vpop.f32.mrb[72].mxu1  ;;  %v6700_v6 = vpop.f32.mrb[89].mxu0 }
 0x223   :  { %v2595_v31 = vpop.f32.mrb[73].mxu1  ;;  %v6702_v59 = vpop.f32.mrb[90].mxu0  ;;  %v3647_v43 = vrot.slane %v2593_v1, 1 }
 0x224   :  { %v2597_v40 = vpop.f32.mrb[74].mxu1  ;;  %v2752_v27 = vpop.f32.mrb[91].mxu0  ;;  %v3719_v56 = vrot.slane %v2595_v31, 2 }
 0x225   :  { %v3648_v7 = vrot.slane %v2597_v40, 1  ;;  %v2599_v11 = vpop.f32.mrb[75].mxu1  ;;  %v3842_v27 = vrot.slane %v6475_v45, 1 }
 0x226   :  { %v3720_v12 = vrot.slane %v2599_v11, 2 }
 0x227   :  { %v3649_v14 = vsel %vm3350_vm0, %v3647_v43, %v3648_v7 }
 0x228   :  { %v3685_v42 = vadd.f32 %v3649_v14, %v6522_v36  ;;  %v3721_v61 = vsel %vm3423_vm1, %v3719_v56, %v3720_v12 }
 0x229   :  { %v6709_v35 = vpop.f32.mrb[92].mxu0 }
 0x22a   :  { %v6707_v48 = vadd.f32 %v3721_v61, %v3685_v42  ;;  %v2603_v4 = vpop.f32.mrb[76].mxu1  ;;  %v6711_v21 = vpop.f32.mrb[93].mxu0 }
 0x22b   :  { %v2605_v0 = vpop.f32.mrb[77].mxu1  ;;  %v6713_v32 = vpop.f32.mrb[94].mxu0  ;;  %v3650_v50 = vrot.slane %v2603_v4, 1 }
 0x22c   :  { %v2607_v55 = vpop.f32.mrb[78].mxu1  ;;  %v2762_v41 = vpop.f32.mrb[95].mxu0  ;;  %v3722_v15 = vrot.slane %v2605_v0, 2 }
 0x22d   :  { %v3651_v49 = vrot.slane %v2607_v55, 1  ;;  %v2609_v38 = vpop.f32.mrb[79].mxu1 }
 0x22e   :  { %v3723_v39 = vrot.slane %v2609_v38, 2 }
 0x22f   :  { %v3652_v36 = vsel %vm3350_vm0, %v3650_v50, %v3651_v49  ;;  %v6729_v50 = vrot.slane %v3842_v27, %v6470_v54 }
 0x230   :  { %v3687_v37 = vadd.f32 %v3652_v36, %v6543_v2  ;;  %v3724_v30 = vsel %vm3423_vm1, %v3722_v15, %v3723_v39 }
 0x231   :  { %v2799_v62 = vpop.f32.mrb[96].mxu0 }
 0x232   :  { %v6718_v63 = vadd.f32 %v3724_v30, %v3687_v37  ;;  %v2613_v25 = vpop.f32.mrb[80].mxu1  ;;  %v2800_v1 = vadd.f32 %v2799_v62, %v6621_v10  ;;  %v2801_v40 = vpop.f32.mrb[97].mxu0 }
 0x233   :  { %v2615_v31 = vpop.f32.mrb[81].mxu1  ;;  %v6722_v43 = vadd.f32 %v2801_v40, %v6625_v5  ;;  %v2803_v11 = vpop.f32.mrb[98].mxu0  ;;  %v3653_v56 = vrot.slane %v2613_v25, 1 }
 0x234   :  { %v2617_v7 = vpop.f32.mrb[82].mxu1  ;;  %v2804_v2 = vadd.f32 %v2803_v11, %v6629_v29  ;;  %v2805_v42 = vpop.f32.mrb[99].mxu0  ;;  %v3725_v61 = vrot.slane %v2615_v31, 2  ;;  %v3786_v0 = vrot.slane %v2800_v1, 3 }
 0x235   :  { %v3654_v12 = vrot.slane %v2617_v7, 1  ;;  %v2619_v14 = vpop.f32.mrb[83].mxu1 }
 0x236   :  { %v3726_v4 = vrot.slane %v2619_v14, 2  ;;  %v3787_v55 = vrot.slane %v2804_v2, 3 }
 0x237   :  { %v3655_v10 = vsel %vm3350_vm0, %v3653_v56, %v3654_v12 }
 0x238   :  { %v3689_v5 = vadd.f32 %v3655_v10, %v6560_v60  ;;  %v3727_v45 = vsel %vm3423_vm1, %v3725_v61, %v3726_v4  ;;  %v3788_v49 = vsel %vm3785_vm12, %v3786_v0, %v3787_v55 }
 0x239   :  { %v3826_v29 = vadd.f32 %v3788_v49, %v6685_v34  ;;  %v2809_v15 = vpop.f32.mrb[100].mxu0 }
 0x23a   :  { %v6734_v38 = vadd.f32 %v3727_v45, %v3689_v5  ;;  %v2623_v41 = vpop.f32.mrb[84].mxu1  ;;  %v2810_v39 = vadd.f32 %v2809_v15, %v6642_v22  ;;  %v2811_v37 = vpop.f32.mrb[101].mxu0 }
 0x23b   :  { %v2625_v36 = vpop.f32.mrb[85].mxu1  ;;  %v3848_v30 = vadd.f32 %v6729_v50, %v3826_v29  ;;  %v6739_v60 = vadd.f32 %v2811_v37, %v6646_v24  ;;  %v2813_v62 = vpop.f32.mrb[102].mxu0  ;;  %v3656_v1 = vrot.slane %v2623_v41, 1 }
 0x23c   :  { %v2627_v25 = vpop.f32.mrb[86].mxu1  ;;  %v2814_v34 = vadd.f32 %v2813_v62, %v6649_v13  ;;  %v2815_v7 = vpop.f32.mrb[103].mxu0  ;;  %v3728_v27 = vrot.slane %v2625_v36, 2  ;;  %v3789_v56 = vrot.slane %v2810_v39, 3 }
 0x23d   :  { %v3657_v31 = vrot.slane %v2627_v25, 1  ;;  %v2629_v40 = vpop.f32.mrb[87].mxu1  ;;  %v3864_v11 = vmax.f32 %v3848_v30, 0.0 }
 0x23e   :  { %v3729_v22 = vrot.slane %v2629_v40, 2  ;;  %v3790_v2 = vrot.slane %v2814_v34, 3 }
 0x23f   :  { %v3658_v12 = vsel %vm3350_vm0, %v3656_v1, %v3657_v31  ;;  %v3882_v24 = vsel %vm3880_vm13, %v3864_v11, 0.0 }
 0x240   :  { %v3691_v14 = vadd.f32 %v3658_v12, %v6576_v9  ;;  %v3730_v42 = vsel %vm3423_vm1, %v3728_v27, %v3729_v22  ;;  %v3899_v61 = vmax.f32 %v3882_v24, %v6503_v52  ;;  %v3791_v13 = vsel %vm3785_vm12, %v3789_v56, %v3790_v2 }
 0x241   :  { %v3828_v4 = vadd.f32 %v3791_v13, %v6696_v18  ;;  %v2819_v55 = vpop.f32.mrb[104].mxu0 }
 0x242   :  { %v6751_v0 = vadd.f32 %v3730_v42, %v3691_v14  ;;  %v2633_v10 = vpop.f32.mrb[88].mxu1  ;;  %v3900_v5 = vrot.slane %v3899_v61, 4  ;;  %v2820_v45 = vadd.f32 %v2819_v55, %v6653_v53  ;;  %v2821_v29 = vpop.f32.mrb[105].mxu0 }
 0x243   :  { %v2635_v49 = vpop.f32.mrb[89].mxu1  ;;  %v3850_v41 = vadd.f32 %v6729_v50, %v3828_v4  ;;  %v6756_v9 = vadd.f32 %v2821_v29, %v6656_v57  ;;  %v2823_v39 = vpop.f32.mrb[106].mxu0  ;;  %v3659_v37 = vrot.slane %v2633_v10, 1 }
 0x244   :  { %v2637_v15 = vpop.f32.mrb[90].mxu1  ;;  %v3901_v36 = vmax.f32 %v3899_v61, %v3900_v5  ;;  %v2824_v18 = vadd.f32 %v2823_v39, %v6659_v3  ;;  %v2825_v62 = vpop.f32.mrb[107].mxu0  ;;  %v3731_v31 = vrot.slane %v2635_v49, 2  ;;  %v3792_v40 = vrot.slane %v2820_v45, 3 }
 0x245   :  { %v3660_v30 = vrot.slane %v2637_v15, 1  ;;  %v2639_v25 = vpop.f32.mrb[91].mxu1  ;;  %v3866_v1 = vmax.f32 %v3850_v41, 0.0 }
 0x246   :  { %v3732_v34 = vrot.slane %v2639_v25, 2  ;;  %v3902_v53 = vrot.slane %v3901_v36, 2  ;;  %v3793_v11 = vrot.slane %v2824_v18, 3 }
 0x247   :  { %v3661_v7 = vsel %vm3350_vm0, %v3659_v37, %v3660_v30  ;;  %v3884_v57 = vsel %vm3880_vm13, %v3866_v1, 0.0 }
 0x248   :  { %v3693_v27 = vadd.f32 %v3661_v7, %v6592_v58  ;;  %v3733_v22 = vsel %vm3423_vm1, %v3731_v31, %v3732_v34  ;;  %v3903_v56 = vmax.f32 %v3901_v36, %v3902_v53  ;;  %v3907_v3 = vmax.f32 %v3884_v57, %v6503_v52 }
 0x249   :  { %v3794_v12 = vsel %vm3785_vm12, %v3792_v40, %v3793_v11  ;;  %v2829_v42 = vpop.f32.mrb[108].mxu0 }
 0x24a   :  { %v3830_v2 = vadd.f32 %v3794_v12, %v6707_v48  ;;  %v6767_v24 = vadd.f32 %v3733_v22, %v3693_v27  ;;  %v2643_v14 = vpop.f32.mrb[92].mxu1  ;;  %v3908_v61 = vrot.slane %v3907_v3, 4  ;;  %v2830_v13 = vadd.f32 %v2829_v42, %v6663_v17  ;;  %v2831_v10 = vpop.f32.mrb[109].mxu0 }
 0x24b   :  { %v2645_v4 = vpop.f32.mrb[93].mxu1  ;;  %v6772_v55 = vadd.f32 %v2831_v10, %v6666_v46  ;;  %v2833_v45 = vpop.f32.mrb[110].mxu0  ;;  %v3904_v49 = vrot.slane %v3903_v56, 1  ;;  %v3662_v41 = vrot.slane %v2643_v14, 1 }
 0x24c   :  { %v3852_v58 = vadd.f32 %v6729_v50, %v3830_v2  ;;  %v2647_v5 = vpop.f32.mrb[94].mxu1  ;;  %v3909_v29 = vmax.f32 %v3907_v3, %v3908_v61  ;;  %v2835_v39 = vpop.f32.mrb[111].mxu0  ;;  %v3734_v37 = vrot.slane %v2645_v4, 2  ;;  %v2834_v30 = vadd.f32 %v2833_v45, %v6669_v23 }
 0x24d   :  { %v3663_v48 = vrot.slane %v2647_v5, 1  ;;  %v2649_v15 = vpop.f32.mrb[95].mxu1  ;;  %v3795_v25 = vrot.slane %v2830_v13, 3  ;;  %v3905_v53 = vmax.f32 %v3903_v56, %v3904_v49 }
 0x24e   :  { %v3868_v36 = vmax.f32 %v3852_v58, 0.0  ;;  %v3735_v17 = vrot.slane %v2649_v15, 2  ;;  %v3910_v18 = vrot.slane %v3909_v29, 2  ;;  %v3796_v31 = vrot.slane %v2834_v30, 3 }
 0x24f   :  { %v3664_v62 = vsel %vm3350_vm0, %v3662_v41, %v3663_v48  ;;  %v3962_v56 = vpack.c.bf16 %v3905_v53, %v3905_v53 }
 0x250   :  { %v3886_v46 = vsel %vm3880_vm13, %v3868_v36, 0.0  ;;  %v3695_v1 = vadd.f32 %v3664_v62, %v6609_v47  ;;  %v3736_v34 = vsel %vm3423_vm1, %v3734_v37, %v3735_v17  ;;  %v3911_v40 = vmax.f32 %v3909_v29, %v3910_v18 }
 0x251   :  { %v3915_v7 = vmax.f32 %v3886_v46, %v6503_v52  ;;  %v3797_v11 = vsel %vm3785_vm12, %v3795_v25, %v3796_v31  ;;  %v2839_v57 = vpop.f32.mrb[112].mxu0  ;;  %v3994_v29 = vunpack.c.l.b16 %v3962_v56 }
 0x252   :  { %v6782_v23 = vadd.f32 %v3736_v34, %v3695_v1  ;;  %v3912_v27 = vrot.slane %v3911_v40, 1  ;;  %v3832_v3 = vadd.f32 %v3797_v11, %v6718_v63  ;;  %v2840_v12 = vadd.f32 %v2839_v57, %v6673_v26  ;;  %v2841_v2 = vpop.f32.mrb[113].mxu0 }
 0x253   :  { %v3916_v22 = vrot.slane %v3915_v7, 4  ;;  %v6787_v47 = vadd.f32 %v2841_v2, %v6675_v8  ;;  %v2843_v14 = vpop.f32.mrb[114].mxu0 }
 0x254   :  { %v3913_v42 = vmax.f32 %v3911_v40, %v3912_v27  ;;  %v3854_v13 = vadd.f32 %v6729_v50, %v3832_v3  ;;  %v2845_v4 = vpop.f32.mrb[115].mxu0  ;;  %v2844_v10 = vadd.f32 %v2843_v14, %v6677_v28  ;;  %v3798_v49 = vrot.slane %v2840_v12, 3 }
 0x255   :  { %v3917_v61 = vmax.f32 %v3915_v7, %v3916_v22 }
 0x256   :  { %v3963_v58 = vpack.c.bf16 %v3913_v42, %v3913_v42  ;;  %v3870_v45 = vmax.f32 %v3854_v13, 0.0  ;;  %v3799_v63 = vrot.slane %v2844_v10, 3 }
 0x257   :  { %v3918_v5 = vrot.slane %v3917_v61, 2 }
 0x258   :  { %v3995_v26 = vunpack.c.l.b16 %v3963_v58  ;;  %v3888_v8 = vsel %vm3880_vm13, %v3870_v45, 0.0  ;;  %v3800_v15 = vsel %vm3785_vm12, %v3798_v49, %v3799_v63 }
 0x259   :  { %v3919_v41 = vmax.f32 %v3917_v61, %v3918_v5  ;;  %v3923_v48 = vmax.f32 %v3888_v8, %v6503_v52  ;;  %v2849_v39 = vpop.f32.mrb[116].mxu0  ;;  %v3834_v28 = vadd.f32 %v3800_v15, %v6734_v38 }
 0x25a   :  { %v4003_v36 = vsel %vm4002_vm4, %v3995_v26, %v3994_v29  ;;  %v2850_v30 = vadd.f32 %v2849_v39, %v6687_v20  ;;  %v2851_v17 = vpop.f32.mrb[117].mxu0 }
 0x25b   :  { %v3920_v37 = vrot.slane %v3919_v41, 1  ;;  %v3924_v18 = vrot.slane %v3923_v48, 4  ;;  %v6799_v25 = vadd.f32 %v2851_v17, %v6689_v51  ;;  %v2853_v62 = vpop.f32.mrb[118].mxu0  ;;  %v3856_v1 = vadd.f32 %v6729_v50, %v3834_v28 }
 0x25c   :  { %v2854_v31 = vadd.f32 %v2853_v62, %v6691_v44  ;;  %v2855_v34 = vpop.f32.mrb[119].mxu0  ;;  %v3801_v11 = vrot.slane %v2850_v30, 3 }
 0x25d   :  { %v3921_v46 = vmax.f32 %v3919_v41, %v3920_v37  ;;  %v3925_v53 = vmax.f32 %v3923_v48, %v3924_v18  ;;  %v3872_v7 = vmax.f32 %v3856_v1, 0.0 }
 0x25e   :  { %v3802_v57 = vrot.slane %v2854_v31, 3 }
 0x25f   :  { %v3964_v40 = vpack.c.bf16 %v3921_v46, %v3921_v46  ;;  %v3926_v38 = vrot.slane %v3925_v53, 2  ;;  %v3890_v20 = vsel %vm3880_vm13, %v3872_v7, 0.0 }
 0x260   :  { %v3803_v51 = vsel %vm3785_vm12, %v3801_v11, %v3802_v57  ;;  %v3931_v3 = vmax.f32 %v3890_v20, %v6503_v52 }
 0x261   :  { %v3996_v27 = vunpack.c.l.b16 %v3964_v40  ;;  %v3927_v22 = vmax.f32 %v3925_v53, %v3926_v38  ;;  %v3836_v12 = vadd.f32 %v3803_v51, %v6751_v0  ;;  %v2859_v2 = vpop.f32.mrb[120].mxu0 }
 0x262   :  { %v2860_v44 = vadd.f32 %v2859_v2, %v6698_v33  ;;  %v2861_v14 = vpop.f32.mrb[121].mxu0  ;;  %v3932_v61 = vrot.slane %v3931_v3, 4 }
 0x263   :  { %v4005_v56 = vsel %vm4004_vm5, %v3996_v27, %v4003_v36  ;;  %v3928_v42 = vrot.slane %v3927_v22, 1  ;;  %v3858_v13 = vadd.f32 %v6729_v50, %v3836_v12  ;;  %v6812_v4 = vadd.f32 %v2861_v14, %v6700_v6  ;;  %v2863_v10 = vpop.f32.mrb[122].mxu0 }
 0x264   :  { %v2864_v58 = vadd.f32 %v2863_v10, %v6702_v59  ;;  %v2865_v5 = vpop.f32.mrb[123].mxu0  ;;  %v3933_v49 = vmax.f32 %v3931_v3, %v3932_v61  ;;  %v3804_v63 = vrot.slane %v2860_v44, 3 }
 0x265   :  { %v3929_v45 = vmax.f32 %v3927_v22, %v3928_v42  ;;  %v3874_v0 = vmax.f32 %v3858_v13, 0.0 }
 0x266   :  { %v3805_v29 = vrot.slane %v2864_v58, 3  ;;  %v3934_v26 = vrot.slane %v3933_v49, 2 }
 0x267   :  { %v3965_v33 = vpack.c.bf16 %v3929_v45, %v3929_v45  ;;  %v3892_v41 = vsel %vm3880_vm13, %v3874_v0, 0.0 }
 0x268   :  { %v3939_v8 = vmax.f32 %v3892_v41, %v6503_v52  ;;  %v3806_v48 = vsel %vm3785_vm12, %v3804_v63, %v3805_v29  ;;  %v3935_v15 = vmax.f32 %v3933_v49, %v3934_v26 }
 0x269   :  { %v3997_v6 = vunpack.c.l.b16 %v3965_v33  ;;  %v3838_v39 = vadd.f32 %v3806_v48, %v6767_v24  ;;  %v2869_v59 = vpop.f32.mrb[124].mxu0 }
 0x26a   :  { %v3940_v36 = vrot.slane %v3939_v8, 4  ;;  %v2870_v37 = vadd.f32 %v2869_v59, %v6709_v35  ;;  %v2871_v28 = vpop.f32.mrb[125].mxu0  ;;  %v3936_v30 = vrot.slane %v3935_v15, 1 }
 0x26b   :  { %v3860_v17 = vadd.f32 %v6729_v50, %v3838_v39  ;;  %v6823_v18 = vadd.f32 %v2871_v28, %v6711_v21  ;;  %v2873_v62 = vpop.f32.mrb[126].mxu0  ;;  %v4007_v46 = vsel %vm4006_vm6, %v3997_v6, %v4005_v56  ;;  %v5807_v39 = vld [vmem:[#allocation8 + $0x80] sm:$0xff]  }
 0x26c   :  { %v3941_v1 = vmax.f32 %v3939_v8, %v3940_v36  ;;  %v2874_v31 = vadd.f32 %v2873_v62, %v6713_v32  ;;  %v2875_v34 = vpop.f32.mrb[127].mxu0  ;;  %v3937_v53 = vmax.f32 %v3935_v15, %v3936_v30  ;;  %v3807_v7 = vrot.slane %v2870_v37, 3  ;;  %v5808_v36 = vld [vmem:[#allocation8 + $0x88] sm:$0xff]   ;;  %v5809_v30 = vld [vmem:[#allocation8 + $0x90] sm:$0xff]  }
 0x26d   :  { %v3876_v24 = vmax.f32 %v3860_v17, 0.0 }
 0x26e   :  { %v3942_v40 = vrot.slane %v3941_v1, 2  ;;  %v3808_v11 = vrot.slane %v2874_v31, 3  ;;  %v3966_v35 = vpack.c.bf16 %v3937_v53, %v3937_v53 }
 0x26f   :  { %v3894_v57 = vsel %vm3880_vm13, %v3876_v24, 0.0  ;;  %v5810_v24 = vld [vmem:[#allocation8 + $0x98] sm:$0xff]  }
 0x270   :  { %v3943_v38 = vmax.f32 %v3941_v1, %v3942_v40  ;;  %v3947_v21 = vmax.f32 %v3894_v57, %v6503_v52  ;;  %v3809_v27 = vsel %vm3785_vm12, %v3807_v7, %v3808_v11  ;;  %v3998_v20 = vunpack.c.l.b16 %v3966_v35 }
 0x271   :  { %v3840_v51 = vadd.f32 %v3809_v27, %v6782_v23 }
 0x272   :  { %v3944_v22 = vrot.slane %v3943_v38, 1  ;;  %v3948_v32 = vrot.slane %v3947_v21, 4  ;;  %v4009_v12 = vsel %vm4008_vm7, %v3998_v20, %v4007_v46 }
 0x273   :  { %v3862_v3 = vadd.f32 %v6729_v50, %v3840_v51 }
 0x274   :  { %v3945_v2 = vmax.f32 %v3943_v38, %v3944_v22  ;;  %v3949_v44 = vmax.f32 %v3947_v21, %v3948_v32  ;;  %v5811_v38 = vld [vmem:[#allocation8 + $0xa0] sm:$0xff]  }
 0x275   :  { %v3878_v14 = vmax.f32 %v3862_v3, 0.0  ;;  %v5812_v3 = vld [vmem:[#allocation8 + $0xa8] sm:$0xff]  }
 0x276   :  { %v3967_v56 = vpack.c.bf16 %v3945_v2, %v3945_v2  ;;  %v3950_v42 = vrot.slane %v3949_v44, 2 }
 0x277   :  { %v3896_v61 = vsel %vm3880_vm13, %v3878_v14, 0.0 }
 0x278   :  { %v3999_v13 = vunpack.c.l.b16 %v3967_v56  ;;  %v3951_v10 = vmax.f32 %v3949_v44, %v3950_v42  ;;  %v3955_v58 = vmax.f32 %v3896_v61, %v6503_v52  ;;  %v5813_v42 = vld [vmem:[#allocation8 + $0xb0] sm:$0xff]  }
 0x27a   :  { %v3952_v5 = vrot.slane %v3951_v10, 1  ;;  %v3956_v23 = vrot.slane %v3955_v58, 4  ;;  %v4011_v45 = vsel %vm4010_vm8, %v3999_v13, %v4009_v12 }
 0x27c   :  { %v3953_v49 = vmax.f32 %v3951_v10, %v3952_v5  ;;  %v3957_v50 = vmax.f32 %v3955_v58, %v3956_v23 }
 0x27e   :  { %v3968_v0 = vpack.c.bf16 %v3953_v49, %v3953_v49  ;;  %v3958_v63 = vrot.slane %v3957_v50, 2 }
 0x280   :  { %v3959_v29 = vmax.f32 %v3957_v50, %v3958_v63  ;;  %v4000_v33 = vunpack.c.l.b16 %v3968_v0 }
 0x282   :  { %v3960_v26 = vrot.slane %v3959_v29, 1  ;;  %v4013_v41 = vsel %vm4012_vm10, %v4000_v33, %v4011_v45  ;;  %v5814_v45 = vld [vmem:[#allocation8 + $0xb8] sm:$0xff]  }
 0x284   :  { %v3961_v8 = vmax.f32 %v3959_v29, %v3960_v26 }
 0x286   :  { %v3969_v48 = vpack.c.bf16 %v3961_v8, %v3961_v8 }
 0x288   :  { %v4001_v6 = vunpack.c.l.b16 %v3969_v48 }
 0x28a   :  { %v4015_v15 = vsel %vm4014_vm11, %v4001_v6, %v4013_v41 }
 0x28b   :  { %v4016_v59 = vpack.c.b16 %v4015_v15, %v4015_v15 }
 0x28d   :  { %5172 = vmatmul.mubr.bf16.vlgmr.msra.gmra.mrb[128].mxu1 %v4016_v59 }
 0x28e   :  { %5196 = vmatpush3.bf16.msra.mxu1 %v5807_v39  ;;  %5211 = vmatprep.mubr.msk.bf16.mxu1 %vm6002_vm9, %v6000_v16 }
 0x28f   :  { %5197 = vmatprep.subr.bf16.mxu1 %v6000_v16 }
 0x292   :  { %v3025_v37 = vpop.f32.mrb[96].mxu1  ;;  %5198 = vmatpush3.bf16.msra.mxu1 %v5808_v36 }
 0x293   :  { %v3027_v28 = vpop.f32.mrb[97].mxu1  ;;  %5199 = vmatprep.subr.bf16.mxu1 %v6000_v16  ;;  %v4235_v62 = vrot.slane %v3025_v37, 1 }
 0x294   :  { %v3029_v17 = vpop.f32.mrb[98].mxu1  ;;  %v4307_v31 = vrot.slane %v3027_v28, 2 }
 0x295   :  { %v4236_v46 = vrot.slane %v3029_v17, 1  ;;  %v3031_v1 = vpop.f32.mrb[99].mxu1 }
 0x296   :  { %v4308_v34 = vrot.slane %v3031_v1, 2  ;;  %5200 = vmatpush3.bf16.msra.mxu1 %v5809_v30  ;;  %v5847_v30 = vld [vmem:[#allocation7] sm:$0x7] }
 0x297   :  { %v4237_v53 = vsel %vm3350_vm0, %v4235_v62, %v4236_v46  ;;  %5201 = vmatprep.subr.bf16.mxu1 %v6000_v16  ;;  %v4507_v17 = vrot.slane %v5847_v30, 2 }
 0x298   :  { %v4275_v40 = vadd.f32 %v4237_v53, %v6722_v43  ;;  %v4309_v7 = vsel %vm3423_vm1, %v4307_v31, %v4308_v34 }
 0x29a   :  { %v6848_v11 = vadd.f32 %v4309_v7, %v4275_v40  ;;  %v3035_v35 = vpop.f32.mrb[100].mxu1  ;;  %5202 = vmatpush3.bf16.msra.mxu1 %v5810_v24 }
 0x29b   :  { %v3037_v57 = vpop.f32.mrb[101].mxu1  ;;  %5203 = vmatprep.subr.bf16.mxu1 %v6000_v16  ;;  %v4238_v27 = vrot.slane %v3035_v35, 1 }
 0x29c   :  { %v3039_v21 = vpop.f32.mrb[102].mxu1  ;;  %v4310_v22 = vrot.slane %v3037_v57, 2 }
 0x29d   :  { %v4239_v20 = vrot.slane %v3039_v21, 1  ;;  %v3041_v51 = vpop.f32.mrb[103].mxu1 }
 0x29e   :  { %v4311_v32 = vrot.slane %v3041_v51, 2  ;;  %5204 = vmatpush3.bf16.msra.mxu1 %v5811_v38 }
 0x29f   :  { %v4240_v43 = vsel %vm3350_vm0, %v4238_v27, %v4239_v20  ;;  %5205 = vmatprep.subr.bf16.mxu1 %v6000_v16  ;;  %v6872_v27 = vrot.slane %v4507_v17, %v6470_v54 }
 0x2a0   :  { %v4277_v12 = vadd.f32 %v4240_v43, %v6739_v60  ;;  %v4312_v2 = vsel %vm3423_vm1, %v4310_v22, %v4311_v32 }
 0x2a2   :  { %v6855_v44 = vadd.f32 %v4312_v2, %v4277_v12  ;;  %v3045_v14 = vpop.f32.mrb[104].mxu1  ;;  %5206 = vmatpush3.bf16.msra.mxu1 %v5812_v3 }
 0x2a3   :  { %v3047_v56 = vpop.f32.mrb[105].mxu1  ;;  %5207 = vmatprep.subr.bf16.mxu1 %v6000_v16  ;;  %v4241_v13 = vrot.slane %v3045_v14, 1 }
 0x2a4   :  { %v3049_v61 = vpop.f32.mrb[106].mxu1  ;;  %v4313_v5 = vrot.slane %v3047_v56, 2 }
 0x2a5   :  { %v4242_v10 = vrot.slane %v3049_v61, 1  ;;  %v3051_v58 = vpop.f32.mrb[107].mxu1 }
 0x2a6   :  { %v4314_v23 = vrot.slane %v3051_v58, 2  ;;  %5208 = vmatpush3.bf16.msra.mxu1 %v5813_v42 }
 0x2a7   :  { %v4243_v60 = vsel %vm3350_vm0, %v4241_v13, %v4242_v10  ;;  %5209 = vmatprep.subr.bf16.mxu1 %v6000_v16 }
 0x2a8   :  { %v4279_v49 = vadd.f32 %v4243_v60, %v6756_v9  ;;  %v4315_v50 = vsel %vm3423_vm1, %v4313_v5, %v4314_v23 }
 0x2aa   :  { %v6862_v0 = vadd.f32 %v4315_v50, %v4279_v49  ;;  %v3055_v63 = vpop.f32.mrb[108].mxu1  ;;  %5210 = vmatpush3.bf16.msra.mxu1 %v5814_v45 }
 0x2ab   :  { %v3057_v29 = vpop.f32.mrb[109].mxu1  ;;  %v4244_v26 = vrot.slane %v3055_v63, 1 }
 0x2ac   :  { %v3059_v33 = vpop.f32.mrb[110].mxu1  ;;  %v4316_v48 = vrot.slane %v3057_v29, 2 }
 0x2ad   :  { %v4245_v41 = vrot.slane %v3059_v33, 1  ;;  %v3061_v8 = vpop.f32.mrb[111].mxu1 }
 0x2ae   :  { %v4317_v6 = vrot.slane %v3061_v8, 2 }
 0x2af   :  { %v4246_v15 = vsel %vm3350_vm0, %v4244_v26, %v4245_v41 }
 0x2b0   :  { %v4281_v39 = vadd.f32 %v4246_v15, %v6772_v55  ;;  %v4318_v9 = vsel %vm3423_vm1, %v4316_v48, %v4317_v6 }
 0x2b1   :  { %v3251_v36 = vpop.f32.mrb[128].mxu0 }
 0x2b2   :  { %v6867_v59 = vadd.f32 %v4318_v9, %v4281_v39  ;;  %v3065_v16 = vpop.f32.mrb[112].mxu1  ;;  %v3253_v28 = vpop.f32.mrb[129].mxu0  ;;  %v4379_v31 = vrot.slane %v3251_v36, 3 }
 0x2b3   :  { %v3067_v37 = vpop.f32.mrb[113].mxu1  ;;  %v3255_v46 = vpop.f32.mrb[130].mxu0  ;;  %v4247_v1 = vrot.slane %v3065_v16, 1  ;;  %v4451_v55 = vrot.slane %v3253_v28, 4 }
 0x2b4   :  { %v3069_v62 = vpop.f32.mrb[114].mxu1  ;;  %v4380_v53 = vrot.slane %v3255_v46, 3  ;;  %v3257_v40 = vpop.f32.mrb[131].mxu0  ;;  %v4319_v7 = vrot.slane %v3067_v37, 2 }
 0x2b5   :  { %v4248_v34 = vrot.slane %v3069_v62, 1  ;;  %v3071_v24 = vpop.f32.mrb[115].mxu1  ;;  %v4452_v57 = vrot.slane %v3257_v40, 4 }
 0x2b6   :  { %v4320_v35 = vrot.slane %v3071_v24, 2  ;;  %v4381_v21 = vsel %vm3785_vm12, %v4379_v31, %v4380_v53 }
 0x2b7   :  { %v4249_v38 = vsel %vm3350_vm0, %v4247_v1, %v4248_v34  ;;  %v4419_v51 = vadd.f32 %v4381_v21, %v6848_v11  ;;  %v4453_v32 = vsel %vm3536_vm2, %v4451_v55, %v4452_v57 }
 0x2b8   :  { %v4283_v20 = vadd.f32 %v4249_v38, %v6787_v47  ;;  %v4321_v22 = vsel %vm3423_vm1, %v4319_v7, %v4320_v35 }
 0x2b9   :  { %v4491_v3 = vadd.f32 %v4453_v32, %v4419_v51  ;;  %v3261_v2 = vpop.f32.mrb[132].mxu0 }
 0x2ba   :  { %v6878_v43 = vadd.f32 %v4321_v22, %v4283_v20  ;;  %v3075_v12 = vpop.f32.mrb[116].mxu1  ;;  %v3263_v56 = vpop.f32.mrb[133].mxu0  ;;  %v4382_v13 = vrot.slane %v3261_v2, 3 }
 0x2bb   :  { %v3077_v14 = vpop.f32.mrb[117].mxu1  ;;  %v4513_v42 = vadd.f32 %v6872_v27, %v4491_v3  ;;  %v3265_v61 = vpop.f32.mrb[134].mxu0  ;;  %v4250_v47 = vrot.slane %v3075_v12, 1  ;;  %v4454_v50 = vrot.slane %v3263_v56, 4 }
 0x2bc   :  { %v3079_v54 = vpop.f32.mrb[118].mxu1  ;;  %v4383_v10 = vrot.slane %v3265_v61, 3  ;;  %v3267_v5 = vpop.f32.mrb[135].mxu0  ;;  %v4322_v60 = vrot.slane %v3077_v14, 2 }
 0x2bd   :  { %v4251_v11 = vrot.slane %v3079_v54, 1  ;;  %v3081_v58 = vpop.f32.mrb[119].mxu1  ;;  %v4529_v23 = vmax.f32 %v4513_v42, 0.0  ;;  %v4455_v49 = vrot.slane %v3267_v5, 4 }
 0x2be   :  { %v4323_v45 = vrot.slane %v3081_v58, 2  ;;  %v4384_v29 = vsel %vm3785_vm12, %v4382_v13, %v4383_v10 }
 0x2bf   :  { %v4252_v63 = vsel %vm3350_vm0, %v4250_v47, %v4251_v11  ;;  %v4547_v33 = vsel %vm4545_vm14, %v4529_v23, 0.0  ;;  %v4421_v41 = vadd.f32 %v4384_v29, %v6855_v44  ;;  %v4456_v6 = vsel %vm3536_vm2, %v4454_v50, %v4455_v49 }
 0x2c0   :  { %v4285_v26 = vadd.f32 %v4252_v63, %v6799_v25  ;;  %v4324_v8 = vsel %vm3423_vm1, %v4322_v60, %v4323_v45  ;;  %v4564_v48 = vmax.f32 %v4547_v33, %v6503_v52 }
 0x2c1   :  { %v4493_v39 = vadd.f32 %v4456_v6, %v4421_v41  ;;  %v3271_v16 = vpop.f32.mrb[136].mxu0 }
 0x2c2   :  { %v6891_v15 = vadd.f32 %v4324_v8, %v4285_v26  ;;  %v3085_v9 = vpop.f32.mrb[120].mxu1  ;;  %v4565_v36 = vrot.slane %v4564_v48, 4  ;;  %v3273_v28 = vpop.f32.mrb[137].mxu0  ;;  %v4385_v46 = vrot.slane %v3271_v16, 3 }
 0x2c3   :  { %v3087_v37 = vpop.f32.mrb[121].mxu1  ;;  %v4515_v30 = vadd.f32 %v6872_v27, %v4493_v39  ;;  %v4253_v17 = vrot.slane %v3085_v9, 1  ;;  %v3275_v62 = vpop.f32.mrb[138].mxu0  ;;  %v4457_v57 = vrot.slane %v3273_v28, 4 }
 0x2c4   :  { %v3089_v25 = vpop.f32.mrb[122].mxu1  ;;  %v4566_v44 = vmax.f32 %v4564_v48, %v4565_v36  ;;  %v4386_v31 = vrot.slane %v3275_v62, 3  ;;  %v3277_v53 = vpop.f32.mrb[139].mxu0  ;;  %v4325_v40 = vrot.slane %v3087_v37, 2 }
 0x2c5   :  { %v4254_v1 = vrot.slane %v3089_v25, 1  ;;  %v3091_v34 = vpop.f32.mrb[123].mxu1  ;;  %v4531_v24 = vmax.f32 %v4515_v30, 0.0  ;;  %v4458_v55 = vrot.slane %v3277_v53, 4 }
 0x2c6   :  { %v4326_v7 = vrot.slane %v3091_v34, 2  ;;  %v4567_v35 = vrot.slane %v4566_v44, 2  ;;  %v4387_v21 = vsel %vm3785_vm12, %v4385_v46, %v4386_v31 }
 0x2c7   :  { %v4255_v38 = vsel %vm3350_vm0, %v4253_v17, %v4254_v1  ;;  %v4549_v20 = vsel %vm4545_vm14, %v4531_v24, 0.0  ;;  %v4423_v22 = vadd.f32 %v4387_v21, %v6862_v0  ;;  %v4459_v2 = vsel %vm3536_vm2, %v4457_v57, %v4458_v55 }
 0x2c8   :  { %v4287_v51 = vadd.f32 %v4255_v38, %v6812_v4  ;;  %v4327_v32 = vsel %vm3423_vm1, %v4325_v40, %v4326_v7  ;;  %v4568_v3 = vmax.f32 %v4566_v44, %v4567_v35  ;;  %v4572_v12 = vmax.f32 %v4549_v20, %v6503_v52 }
 0x2c9   :  { %v4495_v56 = vadd.f32 %v4459_v2, %v4423_v22  ;;  %v3281_v54 = vpop.f32.mrb[140].mxu0 }
 0x2ca   :  { %v6903_v14 = vadd.f32 %v4327_v32, %v4287_v51  ;;  %v3095_v42 = vpop.f32.mrb[124].mxu1  ;;  %v4569_v61 = vrot.slane %v4568_v3, 1  ;;  %v4573_v47 = vrot.slane %v4572_v12, 4  ;;  %v3283_v11 = vpop.f32.mrb[141].mxu0  ;;  %v4388_v0 = vrot.slane %v3281_v54, 3 }
 0x2cb   :  { %v3097_v13 = vpop.f32.mrb[125].mxu1  ;;  %v4517_v4 = vadd.f32 %v6872_v27, %v4495_v56  ;;  %v4256_v10 = vrot.slane %v3095_v42, 1  ;;  %v3285_v5 = vpop.f32.mrb[142].mxu0  ;;  %v4460_v33 = vrot.slane %v3283_v11, 4 }
 0x2cc   :  { %v3099_v58 = vpop.f32.mrb[126].mxu1  ;;  %v4574_v23 = vmax.f32 %v4572_v12, %v4573_v47  ;;  %v4328_v60 = vrot.slane %v3097_v13, 2  ;;  %v4389_v49 = vrot.slane %v3285_v5, 3  ;;  %v3287_v63 = vpop.f32.mrb[143].mxu0  ;;  %v4570_v8 = vmax.f32 %v4568_v3, %v4569_v61 }
 0x2cd   :  { %v4257_v45 = vrot.slane %v3099_v58, 1  ;;  %v3101_v50 = vpop.f32.mrb[127].mxu1  ;;  %v4533_v29 = vmax.f32 %v4517_v4, 0.0  ;;  %v4461_v41 = vrot.slane %v3287_v63, 4 }
 0x2ce   :  { %v4329_v26 = vrot.slane %v3101_v50, 2  ;;  %v4575_v48 = vrot.slane %v4574_v23, 2  ;;  %v4390_v39 = vsel %vm3785_vm12, %v4388_v0, %v4389_v49  ;;  %v4627_v34 = vpack.c.bf16 %v4570_v8, %v4570_v8 }
 0x2cf   :  { %v4258_v6 = vsel %vm3350_vm0, %v4256_v10, %v4257_v45  ;;  %v4551_v9 = vsel %vm4545_vm14, %v4533_v29, 0.0  ;;  %v4425_v36 = vadd.f32 %v4390_v39, %v6867_v59  ;;  %v4462_v17 = vsel %vm3536_vm2, %v4460_v33, %v4461_v41 }
 0x2d0   :  { %v4289_v16 = vadd.f32 %v4258_v6, %v6823_v18  ;;  %v4330_v37 = vsel %vm3423_vm1, %v4328_v60, %v4329_v26  ;;  %v4576_v28 = vmax.f32 %v4574_v23, %v4575_v48  ;;  %v4580_v30 = vmax.f32 %v4551_v9, %v6503_v52 }
 0x2d1   :  { %v4497_v62 = vadd.f32 %v4462_v17, %v4425_v36  ;;  %v3291_v44 = vpop.f32.mrb[144].mxu0  ;;  %v4659_v12 = vunpack.c.l.b16 %v4627_v34 }
 0x2d2   :  { %v6915_v25 = vadd.f32 %v4330_v37, %v4289_v16  ;;  %v4577_v46 = vrot.slane %v4576_v28, 1  ;;  %v4581_v1 = vrot.slane %v4580_v30, 4  ;;  %v3293_v31 = vpop.f32.mrb[145].mxu0  ;;  %v4391_v40 = vrot.slane %v3291_v44, 3 }
 0x2d3   :  { %v4519_v53 = vadd.f32 %v6872_v27, %v4497_v62  ;;  %v3295_v18 = vpop.f32.mrb[146].mxu0  ;;  %v4463_v57 = vrot.slane %v3293_v31, 4 }
 0x2d4   :  { %v4578_v24 = vmax.f32 %v4576_v28, %v4577_v46  ;;  %v4582_v59 = vmax.f32 %v4580_v30, %v4581_v1  ;;  %v4392_v7 = vrot.slane %v3295_v18, 3  ;;  %v3297_v55 = vpop.f32.mrb[147].mxu0 }
 0x2d5   :  { %v4535_v35 = vmax.f32 %v4519_v53, 0.0  ;;  %v4464_v38 = vrot.slane %v3297_v55, 4 }
 0x2d6   :  { %v4628_v21 = vpack.c.bf16 %v4578_v24, %v4578_v24  ;;  %v4583_v20 = vrot.slane %v4582_v59, 2  ;;  %v4393_v51 = vsel %vm3785_vm12, %v4391_v40, %v4392_v7 }
 0x2d7   :  { %v4553_v22 = vsel %vm4545_vm14, %v4535_v35, 0.0  ;;  %v4427_v32 = vadd.f32 %v4393_v51, %v6878_v43  ;;  %v4465_v3 = vsel %vm3536_vm2, %v4463_v57, %v4464_v38 }
 0x2d8   :  { %v4660_v2 = vunpack.c.l.b16 %v4628_v21  ;;  %v4584_v56 = vmax.f32 %v4582_v59, %v4583_v20  ;;  %v4588_v42 = vmax.f32 %v4553_v22, %v6503_v52 }
 0x2d9   :  { %v4499_v54 = vadd.f32 %v4465_v3, %v4427_v32  ;;  %v3301_v61 = vpop.f32.mrb[148].mxu0 }
 0x2da   :  { %v4585_v47 = vrot.slane %v4584_v56, 1  ;;  %v4589_v13 = vrot.slane %v4588_v42, 4  ;;  %v3303_v11 = vpop.f32.mrb[149].mxu0  ;;  %v4667_v4 = vsel %vm4002_vm4, %v4660_v2, %v4659_v12  ;;  %v4394_v43 = vrot.slane %v3301_v61, 3 }
 0x2db   :  { %v4521_v10 = vadd.f32 %v6872_v27, %v4499_v54  ;;  %v3305_v0 = vpop.f32.mrb[150].mxu0  ;;  %v4466_v49 = vrot.slane %v3303_v11, 4 }
 0x2dc   :  { %v4586_v58 = vmax.f32 %v4584_v56, %v4585_v47  ;;  %v4590_v5 = vmax.f32 %v4588_v42, %v4589_v13  ;;  %v4395_v23 = vrot.slane %v3305_v0, 3  ;;  %v3307_v60 = vpop.f32.mrb[151].mxu0 }
 0x2dd   :  { %v4537_v45 = vmax.f32 %v4521_v10, 0.0  ;;  %v4467_v50 = vrot.slane %v3307_v60, 4 }
 0x2de   :  { %v4629_v63 = vpack.c.bf16 %v4586_v58, %v4586_v58  ;;  %v4591_v29 = vrot.slane %v4590_v5, 2  ;;  %v4396_v33 = vsel %vm3785_vm12, %v4394_v43, %v4395_v23 }
 0x2df   :  { %v4555_v26 = vsel %vm4545_vm14, %v4537_v45, 0.0  ;;  %v4429_v41 = vadd.f32 %v4396_v33, %v6891_v15  ;;  %v4468_v8 = vsel %vm3536_vm2, %v4466_v49, %v4467_v50 }
 0x2e0   :  { %v4661_v48 = vunpack.c.l.b16 %v4629_v63  ;;  %v4592_v6 = vmax.f32 %v4590_v5, %v4591_v29  ;;  %v4596_v39 = vmax.f32 %v4555_v26, %v6503_v52 }
 0x2e1   :  { %v4501_v9 = vadd.f32 %v4468_v8, %v4429_v41  ;;  %v3311_v16 = vpop.f32.mrb[152].mxu0 }
 0x2e2   :  { %v4593_v36 = vrot.slane %v4592_v6, 1  ;;  %v4597_v37 = vrot.slane %v4596_v39, 4  ;;  %v3313_v28 = vpop.f32.mrb[153].mxu0  ;;  %v4668_v30 = vsel %vm4004_vm5, %v4661_v48, %v4667_v4  ;;  %v4397_v1 = vrot.slane %v3311_v16, 3 }
 0x2e3   :  { %v4523_v17 = vadd.f32 %v6872_v27, %v4501_v9  ;;  %v3315_v62 = vpop.f32.mrb[154].mxu0  ;;  %v4469_v53 = vrot.slane %v3313_v28, 4 }
 0x2e4   :  { %v4594_v44 = vmax.f32 %v4592_v6, %v4593_v36  ;;  %v4598_v46 = vmax.f32 %v4596_v39, %v4597_v37  ;;  %v4398_v15 = vrot.slane %v3315_v62, 3  ;;  %v3317_v31 = vpop.f32.mrb[155].mxu0 }
 0x2e5   :  { %v4539_v34 = vmax.f32 %v4523_v17, 0.0  ;;  %v4470_v18 = vrot.slane %v3317_v31, 4 }
 0x2e6   :  { %v4630_v24 = vpack.c.bf16 %v4594_v44, %v4594_v44  ;;  %v4599_v59 = vrot.slane %v4598_v46, 2  ;;  %v4399_v40 = vsel %vm3785_vm12, %v4397_v1, %v4398_v15 }
 0x2e7   :  { %v4557_v7 = vsel %vm4545_vm14, %v4539_v34, 0.0  ;;  %v4431_v55 = vadd.f32 %v4399_v40, %v6903_v14  ;;  %v4471_v35 = vsel %vm3536_vm2, %v4469_v53, %v4470_v18 }
 0x2e8   :  { %v4662_v57 = vunpack.c.l.b16 %v4630_v24  ;;  %v4600_v38 = vmax.f32 %v4598_v46, %v4599_v59  ;;  %v4604_v21 = vmax.f32 %v4557_v7, %v6503_v52 }
 0x2e9   :  { %v4503_v20 = vadd.f32 %v4471_v35, %v4431_v55  ;;  %v3321_v51 = vpop.f32.mrb[156].mxu0 }
 0x2ea   :  { %v4601_v22 = vrot.slane %v4600_v38, 1  ;;  %v4605_v32 = vrot.slane %v4604_v21, 4  ;;  %v3323_v3 = vpop.f32.mrb[157].mxu0  ;;  %v4669_v12 = vsel %vm4006_vm6, %v4662_v57, %v4668_v30  ;;  %v4400_v61 = vrot.slane %v3321_v51, 3  ;;  %v5127_v51 = vld [vmem:[#allocation10] ss:$0 sm:$0xff] }
 0x2eb   :  { %v4525_v2 = vadd.f32 %v6872_v27, %v4503_v20  ;;  %v3325_v56 = vpop.f32.mrb[158].mxu0  ;;  %v4472_v11 = vrot.slane %v3323_v3, 4 }
 0x2ec   :  { %v4602_v42 = vmax.f32 %v4600_v38, %v4601_v22  ;;  %v4606_v54 = vmax.f32 %v4604_v21, %v4605_v32  ;;  %v4401_v14 = vrot.slane %v3325_v56, 3  ;;  %v3327_v47 = vpop.f32.mrb[159].mxu0 }
 0x2ed   :  { %v4541_v13 = vmax.f32 %v4525_v2, 0.0  ;;  %v4473_v4 = vrot.slane %v3327_v47, 4 }
 0x2ee   :  { %v4631_v10 = vpack.c.bf16 %v4602_v42, %v4602_v42  ;;  %v4607_v0 = vrot.slane %v4606_v54, 2  ;;  %v4402_v58 = vsel %vm3785_vm12, %v4400_v61, %v4401_v14 }
 0x2ef   :  { %v4559_v5 = vsel %vm4545_vm14, %v4541_v13, 0.0  ;;  %v4433_v43 = vadd.f32 %v4402_v58, %v6915_v25  ;;  %v4474_v23 = vsel %vm3536_vm2, %v4472_v11, %v4473_v4 }
 0x2f0   :  { %v4663_v60 = vunpack.c.l.b16 %v4631_v10  ;;  %v4608_v45 = vmax.f32 %v4606_v54, %v4607_v0  ;;  %v4612_v49 = vmax.f32 %v4559_v5, %v6503_v52 }
 0x2f1   :  { %v4505_v50 = vadd.f32 %v4474_v23, %v4433_v43  ;;  %v4213_v63 = vpop.f32.mrb[160].mxu0 }
 0x2f2   :  { %v4609_v29 = vrot.slane %v4608_v45, 1  ;;  %v4613_v33 = vrot.slane %v4612_v49, 4  ;;  %v5193_v26 = vpop.f32.mrb[161].mxu0  ;;  %v4670_v41 = vsel %vm4008_vm7, %v4663_v60, %v4669_v12 }
 0x2f3   :  { %v4527_v8 = vadd.f32 %v6872_v27, %v4505_v50  ;;  %v4216_v48 = vpop.f32.mrb[162].mxu0 }
 0x2f4   :  { %v4610_v6 = vmax.f32 %v4608_v45, %v4609_v29  ;;  %v4614_v39 = vmax.f32 %v4612_v49, %v4613_v33  ;;  %v5194_v9 = vpop.f32.mrb[163].mxu0 }
 0x2f5   :  { %v4543_v25 = vmax.f32 %v4527_v8, 0.0 }
 0x2f6   :  { %v4615_v16 = vrot.slane %v4614_v39, 2  ;;  %v4632_v36 = vpack.c.bf16 %v4610_v6, %v4610_v6 }
 0x2f7   :  { %v4561_v37 = vsel %vm4545_vm14, %v4543_v25, 0.0 }
 0x2f8   :  { %v4616_v28 = vmax.f32 %v4614_v39, %v4615_v16  ;;  %v4620_v30 = vmax.f32 %v4561_v37, %v6503_v52  ;;  %v4664_v17 = vunpack.c.l.b16 %v4632_v36 }
 0x2fa   :  { %v4621_v62 = vrot.slane %v4620_v30, 4  ;;  %v4617_v44 = vrot.slane %v4616_v28, 1  ;;  %v4671_v46 = vsel %vm4010_vm8, %v4664_v17, %v4670_v41 }
 0x2fc   :  { %v4622_v1 = vmax.f32 %v4620_v30, %v4621_v62  ;;  %v4618_v27 = vmax.f32 %v4616_v28, %v4617_v44 }
 0x2fe   :  { %v4623_v15 = vrot.slane %v4622_v1, 2  ;;  %v4633_v31 = vpack.c.bf16 %v4618_v27, %v4618_v27 }
 0x300   :  { %v4624_v34 = vmax.f32 %v4622_v1, %v4623_v15  ;;  %v4665_v53 = vunpack.c.l.b16 %v4633_v31 }
 0x302   :  { %v4625_v18 = vrot.slane %v4624_v34, 1  ;;  %v4672_v24 = vsel %vm4012_vm10, %v4665_v53, %v4671_v46 }
 0x304   :  { %v4626_v59 = vmax.f32 %v4624_v34, %v4625_v18 }
 0x306   :  { %v4634_v19 = vpack.c.bf16 %v4626_v59, %v4626_v59 }
 0x308   :  { %v4666_v40 = vunpack.c.l.b16 %v4634_v19 }
 0x30a   :  { %v4673_v7 = vsel %vm4014_vm11, %v4666_v40, %v4672_v24 }
 0x30b   :  { %v4674_v52 = vpack.c.b16 %v4673_v7, %v4673_v7 }
 0x30d   :  { %5212 = vmatmul.mubr.bf16.vlgmr.msra.gmra.mrb[132].mxu1 %v4674_v52 }
 0x360   :  { %v4100_v55 = vpop.f32.mrb[128].mxu1 }
 0x361   :  { %v4214_v35 = vadd.f32 %v4213_v63, %v4100_v55  ;;  %v5173_v57 = vpop.f32.mrb[129].mxu1 }
 0x362   :  { %v4103_v38 = vpop.f32.mrb[130].mxu1 }
 0x363   :  { %v5174_v21 = vpop.f32.mrb[131].mxu1 }
 0x3e0   :  { %v4758_v20 = vpop.f32.mrb[132].mxu1 }
 0x3e1   :  { %v4764_v22 = vadd.f32 %v4758_v20, %v4214_v35  ;;  %v5213_v32 = vpop.f32.mrb[133].mxu1 }
 0x3e2   :  { %v4761_v3 = vpop.f32.mrb[134].mxu1 }
 0x3e3   :  { %v4772_v12 = vadd.f32 %v5127_v51, %v4764_v22  ;;  %v5214_v2 = vpop.f32.mrb[135].mxu1 }
 0x3e5   :  { %4773 = vst [vmem:[#allocation11] sm:$0xff] %v4772_v12 }
 0x3e6   :  { %5969 = shalt.err (!%p5966_p2)
}
 0x3e7   :  { %s5970_s9 = scalar_lea.hbm %s6973_s5, 128 }
 0x3e8   :  { %p5971_p3 = scmp.ne.s32.totalorder %s6973_s5, %s5970_s9  ;;  %p5974_p4 = scmp.lt.u32.totalorder %s5970_s9, %s6973_s5 }
 0x3ea   :  { %p5976_p5 = pnand %p5974_p4, %p5971_p3 }
 0x3ec   :  { %5979 = shalt.err (!%p5976_p5)
}
 0x3ed   :  { %4783 = dma.vmem_to_hbm [thread:$0]  %s4781_s30, 128, %s6973_s5, [#allocation4]  }
 0x3ee   :  { %5986 = dma.done.wait [#allocation4], 128  }
 0x3ef   :  { %5987 = vsyncadd [#allocation4], 4294967168 }
 0x3f0   :  { %4787 = vsyncpa [#allocation3], 1 }
 0x3f1   :  { %4788 = vsyncpa [#allocation6], 1 }
 0x3f2   :  { %4789 = vsyncpa [#allocation9], 1 }
 0x3f3   :  { %4790 = vsyncpa [#allocation4], 1 }

</bundles_post_ra>
